<compile_context>
chip_gen: v7x
topology: tpu7x:2x2x1
jax: 0.10.0
libtpu: 0.0.40
codegen_flags: <defaults>
</compile_context>

<pallas_src>
import jax
import jax.numpy as jnp
from jax.experimental import pallas as pl
from jax.experimental.pallas import tpu as pltpu

_EPS = 1e-5


# ----------------------------- pass 1: conv1 + stats -----------------------------
def _conv1_kernel(x_ref, w1_ref, a1_ref, st1_ref):
    # x_ref : (1, H+2, W+2, Cin) f32, zero padded input image
    # w1_ref: (9*Cin, C)         bf16
    # a1_ref: (1, H*W, C)        f32 conv1 output
    # st1_ref: (1, 2, C)         f32 per-image [sum, sum_of_squares]
    _, Hp, Wp, Cin = x_ref.shape
    H, W = Hp - 2, Wp - 2

    # im2col: 9 shifted slabs concatenated along the lane axis -> ONE MXU matmul.
    taps = [
        x_ref[0, dy:dy + H, dx:dx + W, :].reshape(H * W, Cin)
        for dy in range(3) for dx in range(3)
    ]
    patches = jnp.concatenate(taps, axis=1).astype(jnp.bfloat16)          # (H*W, 9*Cin)
    acc = jnp.dot(patches, w1_ref[...], preferred_element_type=jnp.float32)  # (H*W, C) f32

    a1_ref[0] = acc
    # single-pass BN statistics (var = E[x^2] - mean^2, folded in the wrapper)
    st1_ref[0, 0:1, :] = jnp.sum(acc, axis=0, keepdims=True)
    st1_ref[0, 1:2, :] = jnp.sum(acc * acc, axis=0, keepdims=True)


# ---------------- pass 2: bn1 + relu + maxpool2x2 + conv2 + stats ----------------
def _bn1_pool_conv2_kernel(a1_ref, s1_ref, b1_ref, w2_ref,
                           a2_ref, st2_ref, rm_ref, pp_ref):
    # a1_ref : (1, H*W, C) f32 conv1 output
    # s1_ref, b1_ref : (1, C) f32 fused BN1 scale / shift
    # w2_ref : (9*C, C) bf16
    # a2_ref : (1, Hh*Wh, C) f32 conv2 output
    # st2_ref: (1, 2, C) f32 per-image [sum, sum_of_squares]
    # rm_ref : (Hh*W, C) f32 scratch  (row-pair max, flattened)
    # pp_ref : (Hh+2, Wh+2, C) f32 scratch (zero-padded pooled map)
    C = a1_ref.shape[2]
    Hh = pp_ref.shape[0] - 2
    Wh = pp_ref.shape[1] - 2
    W = rm_ref.shape[0] // Hh

    # BN1 (precomputed per-channel affine) + ReLU, all on the VPU.
    y = jnp.maximum(a1_ref[0] * s1_ref[...] + b1_ref[...], 0.0)          # (H*W, C)

    # MaxPool 2x2 stride 2 (VPU/XLU, no MXU):
    #  - row pairs: tile-aligned reshape + elementwise max
    #  - column pairs: sublane-strided reads from scratch (even/odd columns)
    y4 = y.reshape(Hh, 2, W, C)
    rm = jnp.maximum(y4[:, 0], y4[:, 1])                                  # (Hh, W, C)
    rm_ref[...] = rm.reshape(Hh * W, C)
    ev = rm_ref[pl.ds(0, Hh * Wh, stride=2), :]                           # even cols
    od = rm_ref[pl.ds(1, Hh * Wh, stride=2), :]                           # odd cols
    pooled = jnp.maximum(ev, od)                                          # (Hh*Wh, C)

    # Zero-padded pooled map so conv2 gets its 1-pixel halo for free.
    # (only the halo ring strictly needs zeros; buffer is tiny, so zero it all)
    pp_ref[...] = jnp.zeros_like(pp_ref)
    pp_ref[1:1 + Hh, 1:1 + Wh, :] = pooled.reshape(Hh, Wh, C)

    # conv2 as a single im2col matmul.
    taps = [
        pp_ref[dy:dy + Hh, dx:dx + Wh, :].reshape(Hh * Wh, C)
        for dy in range(3) for dx in range(3)
    ]
    patches = jnp.concatenate(taps, axis=1).astype(jnp.bfloat16)          # (Hh*Wh, 9*C)
    acc = jnp.dot(patches, w2_ref[...], preferred_element_type=jnp.float32)

    a2_ref[0] = acc
    st2_ref[0, 0:1, :] = jnp.sum(acc, axis=0, keepdims=True)
    st2_ref[0, 1:2, :] = jnp.sum(acc * acc, axis=0, keepdims=True)


# ------------------------------ pass 3: bn2 + relu ------------------------------
def _bn2_relu_kernel(a2_ref, s2_ref, b2_ref, out_ref):
    out_ref[0] = jnp.maximum(a2_ref[0] * s2_ref[...] + b2_ref[...], 0.0)


# --------------------------------- wrapper glue ---------------------------------
def _affine_from_stats(stats, gamma, beta, count):
    """Fold training-mode batch stats into a per-channel scale/shift (O(C))."""
    tot = jnp.sum(stats, axis=0)                        # (2, C)
    mean = tot[0] / count
    var = jnp.maximum(tot[1] / count - mean * mean, 0.0)   # biased variance
    scale = gamma.astype(jnp.float32) * jax.lax.rsqrt(var + _EPS)
    shift = beta.astype(jnp.float32) - mean * scale
    return scale.reshape(1, -1), shift.reshape(1, -1)


def _params(block_bytes):
    # Explicit VMEM budget: double-buffered pipeline blocks + headroom for
    # scratch / relayout temporaries (don't rely on the platform default).
    limit = int(min(100 * 1024 * 1024, 4 * block_bytes + 8 * 1024 * 1024))
    return pltpu.CompilerParams(
        dimension_semantics=("parallel",),   # batch axis -> v7x dual TensorCores
        vmem_limit_bytes=limit,
    )


@jax.jit
def basic_block_forward(x_nchw, w1, g1, b1, w2, g2, b2):
    """x_nchw: (N, Cin, H, W); w*: PyTorch OIHW conv weights; g/b: BN affine."""
    N, Cin, H, W = x_nchw.shape
    C = w1.shape[0]
    Hh, Wh = H // 2, W // 2

    # Layout glue (plain JAX): NCHW -> padded NHWC, OIHW -> (kh*kw*Cin, Cout) bf16.
    x_nhwc = jnp.transpose(x_nchw, (0, 2, 3, 1)).astype(jnp.float32)
    x_pad = jnp.pad(x_nhwc, ((0, 0), (1, 1), (1, 1), (0, 0)))
    w1_t = jnp.transpose(w1, (2, 3, 1, 0)).reshape(9 * Cin, C).astype(jnp.bfloat16)
    w2_t = jnp.transpose(w2, (2, 3, 1, 0)).reshape(9 * C, C).astype(jnp.bfloat16)

    # ------------------- pass 1: conv1 + BN1 statistics -------------------
    k1_bytes = ((H + 2) * (W + 2) * Cin * 4 + 9 * Cin * C * 2
                + H * W * C * 4 + 2 * C * 4)
    a1, st1 = pl.pallas_call(
        _conv1_kernel,
        grid_spec=pltpu.PrefetchScalarGridSpec(
            num_scalar_prefetch=0,
            grid=(N,),
            in_specs=[
                pl.BlockSpec((1, H + 2, W + 2, Cin), lambda n: (n, 0, 0, 0)),
                pl.BlockSpec((9 * Cin, C), lambda n: (0, 0)),
            ],
            out_specs=[
                pl.BlockSpec((1, H * W, C), lambda n: (n, 0, 0)),
                pl.BlockSpec((1, 2, C), lambda n: (n, 0, 0)),
            ],
        ),
        out_shape=(
            jax.ShapeDtypeStruct((N, H * W, C), jnp.float32),
            jax.ShapeDtypeStruct((N, 2, C), jnp.float32),
        ),
        compiler_params=_params(k1_bytes),
    )(x_pad, w1_t)

    scale1, shift1 = _affine_from_stats(st1, g1, b1, N * H * W)

    # -------- pass 2: BN1 + ReLU + maxpool 2x2 + conv2 + BN2 statistics --------
    k2_bytes = (H * W * C * 4 + 2 * C * 4 + 9 * C * C * 2
                + Hh * Wh * C * 4 + 2 * C * 4
                + Hh * W * C * 4 + (Hh + 2) * (Wh + 2) * C * 4)
    a2, st2 = pl.pallas_call(
        _bn1_pool_conv2_kernel,
        grid_spec=pltpu.PrefetchScalarGridSpec(
            num_scalar_prefetch=0,
            grid=(N,),
            in_specs=[
                pl.BlockSpec((1, H * W, C), lambda n: (n, 0, 0)),
                pl.BlockSpec((1, C), lambda n: (0, 0)),
                pl.BlockSpec((1, C), lambda n: (0, 0)),
                pl.BlockSpec((9 * C, C), lambda n: (0, 0)),
            ],
            out_specs=[
                pl.BlockSpec((1, Hh * Wh, C), lambda n: (n, 0, 0)),
                pl.BlockSpec((1, 2, C), lambda n: (n, 0, 0)),
            ],
            scratch_shapes=[
                pltpu.VMEM((Hh * W, C), jnp.float32),              # row-pair max
                pltpu.VMEM((Hh + 2, Wh + 2, C), jnp.float32),      # padded pooled map
            ],
        ),
        out_shape=(
            jax.ShapeDtypeStruct((N, Hh * Wh, C), jnp.float32),
            jax.ShapeDtypeStruct((N, 2, C), jnp.float32),
        ),
        compiler_params=_params(k2_bytes),
    )(a1, scale1, shift1, w2_t)

    scale2, shift2 = _affine_from_stats(st2, g2, b2, N * Hh * Wh)

    # --------------------------- pass 3: BN2 + ReLU ---------------------------
    k3_bytes = 2 * Hh * Wh * C * 4 + 4 * C * 4
    out_flat = pl.pallas_call(
        _bn2_relu_kernel,
        grid_spec=pltpu.PrefetchScalarGridSpec(
            num_scalar_prefetch=0,
            grid=(N,),
            in_specs=[
                pl.BlockSpec((1, Hh * Wh, C), lambda n: (n, 0, 0)),
                pl.BlockSpec((1, C), lambda n: (0, 0)),
                pl.BlockSpec((1, C), lambda n: (0, 0)),
            ],
            out_specs=pl.BlockSpec((1, Hh * Wh, C), lambda n: (n, 0, 0)),
        ),
        out_shape=jax.ShapeDtypeStruct((N, Hh * Wh, C), jnp.float32),
        compiler_params=_params(k3_bytes),
    )(a2, scale2, shift2)

    out_nhwc = out_flat.reshape(N, Hh, Wh, C)
    return jnp.transpose(out_nhwc, (0, 3, 1, 2))   # back to NCHW


# ------------------------------- pure-JAX reference -------------------------------
def _reference_forward(x, w1, g1, b1, w2, g2, b2):
    """Mirrors the PyTorch forward (train-mode BN, biased variance)."""
    def conv(x, w):
        return jax.lax.conv_general_dilated(
            x, w, window_strides=(1, 1), padding=((1, 1), (1, 1)),
            dimension_numbers=("NCHW", "OIHW", "NCHW"))

    def bn(x, g, b):
        m = jnp.mean(x, axis=(0, 2, 3), keepdims=True)
        v = jnp.mean((x - m) ** 2, axis=(0, 2, 3), keepdims=True)
        return ((x - m) * jax.lax.rsqrt(v + _EPS) * g.reshape(1, -1, 1, 1)
                + b.reshape(1, -1, 1, 1))

    y = jnp.maximum(bn(conv(x, w1), g1, b1), 0.0)
    y = jax.lax.reduce_window(y, -jnp.inf, jax.lax.max,
                              (1, 1, 2, 2), (1, 1, 2, 2), "VALID")
    y = jnp.maximum(bn(conv(y, w2), g2, b2), 0.0)
    return y


if __name__ == "__main__":
    key = jax.random.PRNGKey(0)
    k = jax.random.split(key, 6)

    # BasicBlock(inplanes=4, planes=8); small deterministic example input.
    N, Cin, C, H, W = 2, 4, 8, 16, 16

    x = jax.random.normal(k[0], (N, Cin, H, W), dtype=jnp.float32)
    w1 = 0.2 * jax.random.normal(k[1], (C, Cin, 3, 3), dtype=jnp.float32)
    w2 = 0.2 * jax.random.normal(k[2], (C, C, 3, 3), dtype=jnp.float32)
    g1 = 1.0 + 0.1 * jax.random.normal(k[3], (C,), dtype=jnp.float32)
    b1 = 0.1 * jax.random.normal(k[4], (C,), dtype=jnp.float32)
    g2 = 1.0 + 0.1 * jax.random.normal(k[5], (C,), dtype=jnp.float32)
    b2 = jnp.zeros((C,), dtype=jnp.float32)

    out = jax.block_until_ready(basic_block_forward(x, w1, g1, b1, w2, g2, b2))
    assert out.shape == (N, C, H // 2, W // 2), out.shape

    ref = _reference_forward(x, w1, g1, b1, w2, g2, b2)
    err = float(jnp.max(jnp.abs(out - ref)))
    # loose tolerance: conv operands are cast to bf16 for the MXU (f32 accumulate)
    assert err < 5e-2, f"max abs error vs reference: {err}"

    print("KERNEL_OK")
</pallas_src>

<mosaic_0001>
module attributes {stable_mosaic.version = 11 : i64} {
  func.func @_conv1_kernel(%arg0: i32, %arg1: memref<1x18x18x4xf32, #tpu.memory_space<vmem>>, %arg2: memref<36x8xbf16, #tpu.memory_space<vmem>>, %arg3: memref<1x256x8xf32, #tpu.memory_space<vmem>>, %arg4: memref<1x2x8xf32, #tpu.memory_space<vmem>>) attributes {dimension_semantics = [#tpu.dimension_semantics<parallel>], iteration_bounds = array<i64: 2>, scalar_prefetch = 0 : i64, scratch_operands = 0 : i64, tpu.core_type = #tpu.core_type<tc>, window_params = [{transform_indices = @transform_0, window_bounds = array<i64: 1, 18, 18, 4>}, {pipeline_mode = #tpu.pipeline_mode<synchronous>, transform_indices = @transform_1, window_bounds = array<i64: 36, 8>}, {transform_indices = @transform_2, window_bounds = array<i64: 1, 256, 8>}, {transform_indices = @transform_3, window_bounds = array<i64: 1, 2, 8>}]} {
    %c0 = arith.constant 0 : index
    %c0_0 = arith.constant 0 : index
    %c0_1 = arith.constant 0 : index
    %c0_2 = arith.constant 0 : index
    %0 = vector.load %arg1[%c0, %c0_0, %c0_1, %c0_2] : memref<1x18x18x4xf32, #tpu.memory_space<vmem>>, vector<1x16x16x4xf32>
    %1 = vector.shape_cast %0 : vector<1x16x16x4xf32> to vector<16x16x4xf32>
    %2 = vector.shape_cast %1 : vector<16x16x4xf32> to vector<256x4xf32>
    %c0_3 = arith.constant 0 : index
    %c0_4 = arith.constant 0 : index
    %c1 = arith.constant 1 : index
    %c0_5 = arith.constant 0 : index
    %3 = vector.load %arg1[%c0_3, %c0_4, %c1, %c0_5] : memref<1x18x18x4xf32, #tpu.memory_space<vmem>>, vector<1x16x16x4xf32>
    %4 = vector.shape_cast %3 : vector<1x16x16x4xf32> to vector<16x16x4xf32>
    %5 = vector.shape_cast %4 : vector<16x16x4xf32> to vector<256x4xf32>
    %c0_6 = arith.constant 0 : index
    %c0_7 = arith.constant 0 : index
    %c2 = arith.constant 2 : index
    %c0_8 = arith.constant 0 : index
    %6 = vector.load %arg1[%c0_6, %c0_7, %c2, %c0_8] : memref<1x18x18x4xf32, #tpu.memory_space<vmem>>, vector<1x16x16x4xf32>
    %7 = vector.shape_cast %6 : vector<1x16x16x4xf32> to vector<16x16x4xf32>
    %8 = vector.shape_cast %7 : vector<16x16x4xf32> to vector<256x4xf32>
    %c0_9 = arith.constant 0 : index
    %c1_10 = arith.constant 1 : index
    %c0_11 = arith.constant 0 : index
    %c0_12 = arith.constant 0 : index
    %9 = vector.load %arg1[%c0_9, %c1_10, %c0_11, %c0_12] : memref<1x18x18x4xf32, #tpu.memory_space<vmem>>, vector<1x16x16x4xf32>
    %10 = vector.shape_cast %9 : vector<1x16x16x4xf32> to vector<16x16x4xf32>
    %11 = vector.shape_cast %10 : vector<16x16x4xf32> to vector<256x4xf32>
    %c0_13 = arith.constant 0 : index
    %c1_14 = arith.constant 1 : index
    %c1_15 = arith.constant 1 : index
    %c0_16 = arith.constant 0 : index
    %12 = vector.load %arg1[%c0_13, %c1_14, %c1_15, %c0_16] : memref<1x18x18x4xf32, #tpu.memory_space<vmem>>, vector<1x16x16x4xf32>
    %13 = vector.shape_cast %12 : vector<1x16x16x4xf32> to vector<16x16x4xf32>
    %14 = vector.shape_cast %13 : vector<16x16x4xf32> to vector<256x4xf32>
    %c0_17 = arith.constant 0 : index
    %c1_18 = arith.constant 1 : index
    %c2_19 = arith.constant 2 : index
    %c0_20 = arith.constant 0 : index
    %15 = vector.load %arg1[%c0_17, %c1_18, %c2_19, %c0_20] : memref<1x18x18x4xf32, #tpu.memory_space<vmem>>, vector<1x16x16x4xf32>
    %16 = vector.shape_cast %15 : vector<1x16x16x4xf32> to vector<16x16x4xf32>
    %17 = vector.shape_cast %16 : vector<16x16x4xf32> to vector<256x4xf32>
    %c0_21 = arith.constant 0 : index
    %c2_22 = arith.constant 2 : index
    %c0_23 = arith.constant 0 : index
    %c0_24 = arith.constant 0 : index
    %18 = vector.load %arg1[%c0_21, %c2_22, %c0_23, %c0_24] : memref<1x18x18x4xf32, #tpu.memory_space<vmem>>, vector<1x16x16x4xf32>
    %19 = vector.shape_cast %18 : vector<1x16x16x4xf32> to vector<16x16x4xf32>
    %20 = vector.shape_cast %19 : vector<16x16x4xf32> to vector<256x4xf32>
    %c0_25 = arith.constant 0 : index
    %c2_26 = arith.constant 2 : index
    %c1_27 = arith.constant 1 : index
    %c0_28 = arith.constant 0 : index
    %21 = vector.load %arg1[%c0_25, %c2_26, %c1_27, %c0_28] : memref<1x18x18x4xf32, #tpu.memory_space<vmem>>, vector<1x16x16x4xf32>
    %22 = vector.shape_cast %21 : vector<1x16x16x4xf32> to vector<16x16x4xf32>
    %23 = vector.shape_cast %22 : vector<16x16x4xf32> to vector<256x4xf32>
    %c0_29 = arith.constant 0 : index
    %c2_30 = arith.constant 2 : index
    %c2_31 = arith.constant 2 : index
    %c0_32 = arith.constant 0 : index
    %24 = vector.load %arg1[%c0_29, %c2_30, %c2_31, %c0_32] : memref<1x18x18x4xf32, #tpu.memory_space<vmem>>, vector<1x16x16x4xf32>
    %25 = vector.shape_cast %24 : vector<1x16x16x4xf32> to vector<16x16x4xf32>
    %26 = vector.shape_cast %25 : vector<16x16x4xf32> to vector<256x4xf32>
    %27 = tpu.concatenate %2, %5, %8, %11, %14, %17, %20, %23, %26 in 1 : vector<256x4xf32>, vector<256x4xf32>, vector<256x4xf32>, vector<256x4xf32>, vector<256x4xf32>, vector<256x4xf32>, vector<256x4xf32>, vector<256x4xf32>, vector<256x4xf32> -> vector<256x36xf32>
    %28 = arith.truncf %27 : vector<256x36xf32> to vector<256x36xbf16>
    %c0_33 = arith.constant 0 : index
    %c0_34 = arith.constant 0 : index
    %29 = vector.load %arg2[%c0_33, %c0_34] : memref<36x8xbf16, #tpu.memory_space<vmem>>, vector<36x8xbf16>
    %cst = arith.constant dense<0.000000e+00> : vector<256x8xf32>
    %30 = tpu.matmul %28, %29, %cst {dimension_numbers = #tpu.dot_dimension_numbers<[1], [0], [0], [1], [0, 0, 1, 1], [], []>} : vector<256x36xbf16>, vector<36x8xbf16>, vector<256x8xf32> -> vector<256x8xf32>
    %c0_35 = arith.constant 0 : index
    %c0_36 = arith.constant 0 : index
    %c0_37 = arith.constant 0 : index
    %31 = vector.load %arg3[%c0_35, %c0_36, %c0_37] : memref<1x256x8xf32, #tpu.memory_space<vmem>>, vector<1x256x8xf32>
    %32 = vector.shape_cast %31 : vector<1x256x8xf32> to vector<256x8xf32>
    %33 = vector.shape_cast %30 : vector<256x8xf32> to vector<1x256x8xf32>
    tpu.vector_store %arg3[%c0_35, %c0_36, %c0_37], %33 {strides = array<i32>} : memref<1x256x8xf32, #tpu.memory_space<vmem>>, vector<1x256x8xf32>,
    %cst_38 = arith.constant dense<0.000000e+00> : vector<8xf32>
    %34 = vector.multi_reduction <add>, %30, %cst_38 [0] : vector<256x8xf32> to vector<8xf32>
    %35 = vector.shape_cast %34 : vector<8xf32> to vector<1x8xf32>
    %c0_39 = arith.constant 0 : index
    %c0_40 = arith.constant 0 : index
    %c0_41 = arith.constant 0 : index
    %36 = vector.load %arg4[%c0_39, %c0_40, %c0_41] : memref<1x2x8xf32, #tpu.memory_space<vmem>>, vector<1x1x8xf32>
    %37 = vector.shape_cast %36 : vector<1x1x8xf32> to vector<1x8xf32>
    %38 = vector.shape_cast %35 : vector<1x8xf32> to vector<1x1x8xf32>
    tpu.vector_store %arg4[%c0_39, %c0_40, %c0_41], %38 {strides = array<i32>} : memref<1x2x8xf32, #tpu.memory_space<vmem>>, vector<1x1x8xf32>,
    %39 = arith.mulf %30, %30 : vector<256x8xf32>
    %cst_42 = arith.constant dense<0.000000e+00> : vector<8xf32>
    %40 = vector.multi_reduction <add>, %39, %cst_42 [0] : vector<256x8xf32> to vector<8xf32>
    %41 = vector.shape_cast %40 : vector<8xf32> to vector<1x8xf32>
    %c0_43 = arith.constant 0 : index
    %c1_44 = arith.constant 1 : index
    %c0_45 = arith.constant 0 : index
    %42 = vector.load %arg4[%c0_43, %c1_44, %c0_45] : memref<1x2x8xf32, #tpu.memory_space<vmem>>, vector<1x1x8xf32>
    %43 = vector.shape_cast %42 : vector<1x1x8xf32> to vector<1x8xf32>
    %44 = vector.shape_cast %41 : vector<1x8xf32> to vector<1x1x8xf32>
    tpu.vector_store %arg4[%c0_43, %c1_44, %c0_45], %44 {strides = array<i32>} : memref<1x2x8xf32, #tpu.memory_space<vmem>>, vector<1x1x8xf32>,
    return
  }
  func.func @transform_0(%arg0: i32) -> (i32, i32, i32, i32) {
    %c0_i32 = arith.constant 0 : i32
    %c0_i32_0 = arith.constant 0 : i32
    %c0_i32_1 = arith.constant 0 : i32
    %c0_i32_2 = arith.constant 0 : i32
    return %arg0, %c0_i32, %c0_i32_0, %c0_i32_1 : i32, i32, i32, i32
  }
  func.func @transform_1(%arg0: i32) -> (i32, i32) {
    %c0_i32 = arith.constant 0 : i32
    %c0_i32_0 = arith.constant 0 : i32
    %c0_i32_1 = arith.constant 0 : i32
    return %c0_i32, %c0_i32_0 : i32, i32
  }
  func.func @transform_2(%arg0: i32) -> (i32, i32, i32) {
    %c0_i32 = arith.constant 0 : i32
    %c0_i32_0 = arith.constant 0 : i32
    %c0_i32_1 = arith.constant 0 : i32
    return %arg0, %c0_i32, %c0_i32_0 : i32, i32, i32
  }
  func.func @transform_3(%arg0: i32) -> (i32, i32, i32) {
    %c0_i32 = arith.constant 0 : i32
    %c0_i32_0 = arith.constant 0 : i32
    %c0_i32_1 = arith.constant 0 : i32
    return %arg0, %c0_i32, %c0_i32_0 : i32, i32, i32
  }
}

module attributes {stable_mosaic.version = 11 : i64} {
  func.func @_bn1_pool_conv2_kernel(%arg0: i32, %arg1: memref<1x256x8xf32, #tpu.memory_space<vmem>>, %arg2: memref<1x8xf32, #tpu.memory_space<vmem>>, %arg3: memref<1x8xf32, #tpu.memory_space<vmem>>, %arg4: memref<72x8xbf16, #tpu.memory_space<vmem>>, %arg5: memref<1x64x8xf32, #tpu.memory_space<vmem>>, %arg6: memref<1x2x8xf32, #tpu.memory_space<vmem>>, %arg7: memref<128x8xf32, #tpu.memory_space<vmem>>, %arg8: memref<10x10x8xf32, #tpu.memory_space<vmem>>) attributes {dimension_semantics = [#tpu.dimension_semantics<parallel>], iteration_bounds = array<i64: 2>, scalar_prefetch = 0 : i64, scratch_operands = 2 : i64, tpu.core_type = #tpu.core_type<tc>, window_params = [{transform_indices = @transform_0, window_bounds = array<i64: 1, 256, 8>}, {pipeline_mode = #tpu.pipeline_mode<synchronous>, transform_indices = @transform_1, window_bounds = array<i64: 1, 8>}, {pipeline_mode = #tpu.pipeline_mode<synchronous>, transform_indices = @transform_2, window_bounds = array<i64: 1, 8>}, {pipeline_mode = #tpu.pipeline_mode<synchronous>, transform_indices = @transform_3, window_bounds = array<i64: 72, 8>}, {transform_indices = @transform_4, window_bounds = array<i64: 1, 64, 8>}, {transform_indices = @transform_5, window_bounds = array<i64: 1, 2, 8>}]} {
    %c0 = arith.constant 0 : index
    %c0_0 = arith.constant 0 : index
    %c0_1 = arith.constant 0 : index
    %0 = vector.load %arg1[%c0, %c0_0, %c0_1] : memref<1x256x8xf32, #tpu.memory_space<vmem>>, vector<1x256x8xf32>
    %1 = vector.shape_cast %0 : vector<1x256x8xf32> to vector<256x8xf32>
    %c0_2 = arith.constant 0 : index
    %c0_3 = arith.constant 0 : index
    %2 = vector.load %arg2[%c0_2, %c0_3] : memref<1x8xf32, #tpu.memory_space<vmem>>, vector<1x8xf32>
    %3 = vector.broadcast %2 : vector<1x8xf32> to vector<256x8xf32>
    %4 = arith.mulf %1, %3 : vector<256x8xf32>
    %c0_4 = arith.constant 0 : index
    %c0_5 = arith.constant 0 : index
    %5 = vector.load %arg3[%c0_4, %c0_5] : memref<1x8xf32, #tpu.memory_space<vmem>>, vector<1x8xf32>
    %6 = vector.broadcast %5 : vector<1x8xf32> to vector<256x8xf32>
    %7 = arith.addf %4, %6 : vector<256x8xf32>
    %cst = arith.constant 0.000000e+00 : f32
    %8 = vector.broadcast %cst : f32 to vector<256x8xf32>
    %9 = arith.maximumf %7, %8 : vector<256x8xf32>
    %10 = vector.shape_cast %9 : vector<256x8xf32> to vector<8x2x16x8xf32>
    %11 = vector.extract_strided_slice %10 {offsets = [0, 0, 0, 0], sizes = [8, 1, 16, 8], strides = [1, 1, 1, 1]} : vector<8x2x16x8xf32> to vector<8x1x16x8xf32>
    %12 = vector.shape_cast %11 : vector<8x1x16x8xf32> to vector<8x16x8xf32>
    %13 = vector.extract_strided_slice %10 {offsets = [0, 1, 0, 0], sizes = [8, 1, 16, 8], strides = [1, 1, 1, 1]} : vector<8x2x16x8xf32> to vector<8x1x16x8xf32>
    %14 = vector.shape_cast %13 : vector<8x1x16x8xf32> to vector<8x16x8xf32>
    %15 = arith.maximumf %12, %14 : vector<8x16x8xf32>
    %16 = vector.shape_cast %15 : vector<8x16x8xf32> to vector<128x8xf32>
    %c0_6 = arith.constant 0 : index
    %c0_7 = arith.constant 0 : index
    %17 = vector.load %arg7[%c0_6, %c0_7] : memref<128x8xf32, #tpu.memory_space<vmem>>, vector<128x8xf32>
    tpu.vector_store %arg7[%c0_6, %c0_7], %16 {strides = array<i32>} : memref<128x8xf32, #tpu.memory_space<vmem>>, vector<128x8xf32>,
    %c0_8 = arith.constant 0 : index
    %c0_9 = arith.constant 0 : index
    %18 = tpu.strided_load %arg7[%c0_8, %c0_9] {strides = array<i32: 2, 1>} : memref<128x8xf32, #tpu.memory_space<vmem>>, vector<64x8xf32>
    %c1 = arith.constant 1 : index
    %c0_10 = arith.constant 0 : index
    %19 = tpu.strided_load %arg7[%c1, %c0_10] {strides = array<i32: 2, 1>} : memref<128x8xf32, #tpu.memory_space<vmem>>, vector<64x8xf32>
    %20 = arith.maximumf %18, %19 : vector<64x8xf32>
    %cst_11 = arith.constant 0.000000e+00 : f32
    %21 = vector.broadcast %cst_11 : f32 to vector<10x10x8xf32>
    %c0_12 = arith.constant 0 : index
    %c0_13 = arith.constant 0 : index
    %c0_14 = arith.constant 0 : index
    %22 = vector.load %arg8[%c0_12, %c0_13, %c0_14] : memref<10x10x8xf32, #tpu.memory_space<vmem>>, vector<10x10x8xf32>
    tpu.vector_store %arg8[%c0_12, %c0_13, %c0_14], %21 {strides = array<i32>} : memref<10x10x8xf32, #tpu.memory_space<vmem>>, vector<10x10x8xf32>,
    %23 = vector.shape_cast %20 : vector<64x8xf32> to vector<8x8x8xf32>
    %c1_15 = arith.constant 1 : index
    %c1_16 = arith.constant 1 : index
    %c0_17 = arith.constant 0 : index
    %24 = vector.load %arg8[%c1_15, %c1_16, %c0_17] : memref<10x10x8xf32, #tpu.memory_space<vmem>>, vector<8x8x8xf32>
    tpu.vector_store %arg8[%c1_15, %c1_16, %c0_17], %23 {strides = array<i32>} : memref<10x10x8xf32, #tpu.memory_space<vmem>>, vector<8x8x8xf32>,
    %c0_18 = arith.constant 0 : index
    %c0_19 = arith.constant 0 : index
    %c0_20 = arith.constant 0 : index
    %25 = vector.load %arg8[%c0_18, %c0_19, %c0_20] : memref<10x10x8xf32, #tpu.memory_space<vmem>>, vector<8x8x8xf32>
    %26 = vector.shape_cast %25 : vector<8x8x8xf32> to vector<64x8xf32>
    %c0_21 = arith.constant 0 : index
    %c1_22 = arith.constant 1 : index
    %c0_23 = arith.constant 0 : index
    %27 = vector.load %arg8[%c0_21, %c1_22, %c0_23] : memref<10x10x8xf32, #tpu.memory_space<vmem>>, vector<8x8x8xf32>
    %28 = vector.shape_cast %27 : vector<8x8x8xf32> to vector<64x8xf32>
    %c0_24 = arith.constant 0 : index
    %c2 = arith.constant 2 : index
    %c0_25 = arith.constant 0 : index
    %29 = vector.load %arg8[%c0_24, %c2, %c0_25] : memref<10x10x8xf32, #tpu.memory_space<vmem>>, vector<8x8x8xf32>
    %30 = vector.shape_cast %29 : vector<8x8x8xf32> to vector<64x8xf32>
    %c1_26 = arith.constant 1 : index
    %c0_27 = arith.constant 0 : index
    %c0_28 = arith.constant 0 : index
    %31 = vector.load %arg8[%c1_26, %c0_27, %c0_28] : memref<10x10x8xf32, #tpu.memory_space<vmem>>, vector<8x8x8xf32>
    %32 = vector.shape_cast %31 : vector<8x8x8xf32> to vector<64x8xf32>
    %c1_29 = arith.constant 1 : index
    %c1_30 = arith.constant 1 : index
    %c0_31 = arith.constant 0 : index
    %33 = vector.load %arg8[%c1_29, %c1_30, %c0_31] : memref<10x10x8xf32, #tpu.memory_space<vmem>>, vector<8x8x8xf32>
    %34 = vector.shape_cast %33 : vector<8x8x8xf32> to vector<64x8xf32>
    %c1_32 = arith.constant 1 : index
    %c2_33 = arith.constant 2 : index
    %c0_34 = arith.constant 0 : index
    %35 = vector.load %arg8[%c1_32, %c2_33, %c0_34] : memref<10x10x8xf32, #tpu.memory_space<vmem>>, vector<8x8x8xf32>
    %36 = vector.shape_cast %35 : vector<8x8x8xf32> to vector<64x8xf32>
    %c2_35 = arith.constant 2 : index
    %c0_36 = arith.constant 0 : index
    %c0_37 = arith.constant 0 : index
    %37 = vector.load %arg8[%c2_35, %c0_36, %c0_37] : memref<10x10x8xf32, #tpu.memory_space<vmem>>, vector<8x8x8xf32>
    %38 = vector.shape_cast %37 : vector<8x8x8xf32> to vector<64x8xf32>
    %c2_38 = arith.constant 2 : index
    %c1_39 = arith.constant 1 : index
    %c0_40 = arith.constant 0 : index
    %39 = vector.load %arg8[%c2_38, %c1_39, %c0_40] : memref<10x10x8xf32, #tpu.memory_space<vmem>>, vector<8x8x8xf32>
    %40 = vector.shape_cast %39 : vector<8x8x8xf32> to vector<64x8xf32>
    %c2_41 = arith.constant 2 : index
    %c2_42 = arith.constant 2 : index
    %c0_43 = arith.constant 0 : index
    %41 = vector.load %arg8[%c2_41, %c2_42, %c0_43] : memref<10x10x8xf32, #tpu.memory_space<vmem>>, vector<8x8x8xf32>
    %42 = vector.shape_cast %41 : vector<8x8x8xf32> to vector<64x8xf32>
    %43 = tpu.concatenate %26, %28, %30, %32, %34, %36, %38, %40, %42 in 1 : vector<64x8xf32>, vector<64x8xf32>, vector<64x8xf32>, vector<64x8xf32>, vector<64x8xf32>, vector<64x8xf32>, vector<64x8xf32>, vector<64x8xf32>, vector<64x8xf32> -> vector<64x72xf32>
    %44 = arith.truncf %43 : vector<64x72xf32> to vector<64x72xbf16>
    %c0_44 = arith.constant 0 : index
    %c0_45 = arith.constant 0 : index
    %45 = vector.load %arg4[%c0_44, %c0_45] : memref<72x8xbf16, #tpu.memory_space<vmem>>, vector<72x8xbf16>
    %cst_46 = arith.constant dense<0.000000e+00> : vector<64x8xf32>
    %46 = tpu.matmul %44, %45, %cst_46 {dimension_numbers = #tpu.dot_dimension_numbers<[1], [0], [0], [1], [0, 0, 1, 1], [], []>} : vector<64x72xbf16>, vector<72x8xbf16>, vector<64x8xf32> -> vector<64x8xf32>
    %c0_47 = arith.constant 0 : index
    %c0_48 = arith.constant 0 : index
    %c0_49 = arith.constant 0 : index
    %47 = vector.load %arg5[%c0_47, %c0_48, %c0_49] : memref<1x64x8xf32, #tpu.memory_space<vmem>>, vector<1x64x8xf32>
    %48 = vector.shape_cast %47 : vector<1x64x8xf32> to vector<64x8xf32>
    %49 = vector.shape_cast %46 : vector<64x8xf32> to vector<1x64x8xf32>
    tpu.vector_store %arg5[%c0_47, %c0_48, %c0_49], %49 {strides = array<i32>} : memref<1x64x8xf32, #tpu.memory_space<vmem>>, vector<1x64x8xf32>,
    %cst_50 = arith.constant dense<0.000000e+00> : vector<8xf32>
    %50 = vector.multi_reduction <add>, %46, %cst_50 [0] : vector<64x8xf32> to vector<8xf32>
    %51 = vector.shape_cast %50 : vector<8xf32> to vector<1x8xf32>
    %c0_51 = arith.constant 0 : index
    %c0_52 = arith.constant 0 : index
    %c0_53 = arith.constant 0 : index
    %52 = vector.load %arg6[%c0_51, %c0_52, %c0_53] : memref<1x2x8xf32, #tpu.memory_space<vmem>>, vector<1x1x8xf32>
    %53 = vector.shape_cast %52 : vector<1x1x8xf32> to vector<1x8xf32>
    %54 = vector.shape_cast %51 : vector<1x8xf32> to vector<1x1x8xf32>
    tpu.vector_store %arg6[%c0_51, %c0_52, %c0_53], %54 {strides = array<i32>} : memref<1x2x8xf32, #tpu.memory_space<vmem>>, vector<1x1x8xf32>,
    %55 = arith.mulf %46, %46 : vector<64x8xf32>
    %cst_54 = arith.constant dense<0.000000e+00> : vector<8xf32>
    %56 = vector.multi_reduction <add>, %55, %cst_54 [0] : vector<64x8xf32> to vector<8xf32>
    %57 = vector.shape_cast %56 : vector<8xf32> to vector<1x8xf32>
    %c0_55 = arith.constant 0 : index
    %c1_56 = arith.constant 1 : index
    %c0_57 = arith.constant 0 : index
    %58 = vector.load %arg6[%c0_55, %c1_56, %c0_57] : memref<1x2x8xf32, #tpu.memory_space<vmem>>, vector<1x1x8xf32>
    %59 = vector.shape_cast %58 : vector<1x1x8xf32> to vector<1x8xf32>
    %60 = vector.shape_cast %57 : vector<1x8xf32> to vector<1x1x8xf32>
    tpu.vector_store %arg6[%c0_55, %c1_56, %c0_57], %60 {strides = array<i32>} : memref<1x2x8xf32, #tpu.memory_space<vmem>>, vector<1x1x8xf32>,
    return
  }
  func.func @transform_0(%arg0: i32) -> (i32, i32, i32) {
    %c0_i32 = arith.constant 0 : i32
    %c0_i32_0 = arith.constant 0 : i32
    %c0_i32_1 = arith.constant 0 : i32
    return %arg0, %c0_i32, %c0_i32_0 : i32, i32, i32
  }
  func.func @transform_1(%arg0: i32) -> (i32, i32) {
    %c0_i32 = arith.constant 0 : i32
    %c0_i32_0 = arith.constant 0 : i32
    %c0_i32_1 = arith.constant 0 : i32
    return %c0_i32, %c0_i32_0 : i32, i32
  }
  func.func @transform_2(%arg0: i32) -> (i32, i32) {
    %c0_i32 = arith.constant 0 : i32
    %c0_i32_0 = arith.constant 0 : i32
    %c0_i32_1 = arith.constant 0 : i32
    return %c0_i32, %c0_i32_0 : i32, i32
  }
  func.func @transform_3(%arg0: i32) -> (i32, i32) {
    %c0_i32 = arith.constant 0 : i32
    %c0_i32_0 = arith.constant 0 : i32
    %c0_i32_1 = arith.constant 0 : i32
    return %c0_i32, %c0_i32_0 : i32, i32
  }
  func.func @transform_4(%arg0: i32) -> (i32, i32, i32) {
    %c0_i32 = arith.constant 0 : i32
    %c0_i32_0 = arith.constant 0 : i32
    %c0_i32_1 = arith.constant 0 : i32
    return %arg0, %c0_i32, %c0_i32_0 : i32, i32, i32
  }
  func.func @transform_5(%arg0: i32) -> (i32, i32, i32) {
    %c0_i32 = arith.constant 0 : i32
    %c0_i32_0 = arith.constant 0 : i32
    %c0_i32_1 = arith.constant 0 : i32
    return %arg0, %c0_i32, %c0_i32_0 : i32, i32, i32
  }
}

module attributes {stable_mosaic.version = 11 : i64} {
  func.func @_bn2_relu_kernel(%arg0: i32, %arg1: memref<1x64x8xf32, #tpu.memory_space<vmem>>, %arg2: memref<1x8xf32, #tpu.memory_space<vmem>>, %arg3: memref<1x8xf32, #tpu.memory_space<vmem>>, %arg4: memref<1x64x8xf32, #tpu.memory_space<vmem>>) attributes {dimension_semantics = [#tpu.dimension_semantics<parallel>], iteration_bounds = array<i64: 2>, scalar_prefetch = 0 : i64, scratch_operands = 0 : i64, tpu.core_type = #tpu.core_type<tc>, window_params = [{transform_indices = @transform_0, window_bounds = array<i64: 1, 64, 8>}, {pipeline_mode = #tpu.pipeline_mode<synchronous>, transform_indices = @transform_1, window_bounds = array<i64: 1, 8>}, {pipeline_mode = #tpu.pipeline_mode<synchronous>, transform_indices = @transform_2, window_bounds = array<i64: 1, 8>}, {transform_indices = @transform_3, window_bounds = array<i64: 1, 64, 8>}]} {
    %c0 = arith.constant 0 : index
    %c0_0 = arith.constant 0 : index
    %c0_1 = arith.constant 0 : index
    %0 = vector.load %arg1[%c0, %c0_0, %c0_1] : memref<1x64x8xf32, #tpu.memory_space<vmem>>, vector<1x64x8xf32>
    %1 = vector.shape_cast %0 : vector<1x64x8xf32> to vector<64x8xf32>
    %c0_2 = arith.constant 0 : index
    %c0_3 = arith.constant 0 : index
    %2 = vector.load %arg2[%c0_2, %c0_3] : memref<1x8xf32, #tpu.memory_space<vmem>>, vector<1x8xf32>
    %3 = vector.broadcast %2 : vector<1x8xf32> to vector<64x8xf32>
    %4 = arith.mulf %1, %3 : vector<64x8xf32>
    %c0_4 = arith.constant 0 : index
    %c0_5 = arith.constant 0 : index
    %5 = vector.load %arg3[%c0_4, %c0_5] : memref<1x8xf32, #tpu.memory_space<vmem>>, vector<1x8xf32>
    %6 = vector.broadcast %5 : vector<1x8xf32> to vector<64x8xf32>
    %7 = arith.addf %4, %6 : vector<64x8xf32>
    %cst = arith.constant 0.000000e+00 : f32
    %8 = vector.broadcast %cst : f32 to vector<64x8xf32>
    %9 = arith.maximumf %7, %8 : vector<64x8xf32>
    %c0_6 = arith.constant 0 : index
    %c0_7 = arith.constant 0 : index
    %c0_8 = arith.constant 0 : index
    %10 = vector.load %arg4[%c0_6, %c0_7, %c0_8] : memref<1x64x8xf32, #tpu.memory_space<vmem>>, vector<1x64x8xf32>
    %11 = vector.shape_cast %10 : vector<1x64x8xf32> to vector<64x8xf32>
    %12 = vector.shape_cast %9 : vector<64x8xf32> to vector<1x64x8xf32>
    tpu.vector_store %arg4[%c0_6, %c0_7, %c0_8], %12 {strides = array<i32>} : memref<1x64x8xf32, #tpu.memory_space<vmem>>, vector<1x64x8xf32>,
    return
  }
  func.func @transform_0(%arg0: i32) -> (i32, i32, i32) {
    %c0_i32 = arith.constant 0 : i32
    %c0_i32_0 = arith.constant 0 : i32
    %c0_i32_1 = arith.constant 0 : i32
    return %arg0, %c0_i32, %c0_i32_0 : i32, i32, i32
  }
  func.func @transform_1(%arg0: i32) -> (i32, i32) {
    %c0_i32 = arith.constant 0 : i32
    %c0_i32_0 = arith.constant 0 : i32
    %c0_i32_1 = arith.constant 0 : i32
    return %c0_i32, %c0_i32_0 : i32, i32
  }
  func.func @transform_2(%arg0: i32) -> (i32, i32) {
    %c0_i32 = arith.constant 0 : i32
    %c0_i32_0 = arith.constant 0 : i32
    %c0_i32_1 = arith.constant 0 : i32
    return %c0_i32, %c0_i32_0 : i32, i32
  }
  func.func @transform_3(%arg0: i32) -> (i32, i32, i32) {
    %c0_i32 = arith.constant 0 : i32
    %c0_i32_0 = arith.constant 0 : i32
    %c0_i32_1 = arith.constant 0 : i32
    return %arg0, %c0_i32, %c0_i32_0 : i32, i32, i32
  }
}

</mosaic_0001>

<bundles_post_ra>
// kernel: basic_block_forward.5
= control target key start
LH: loop header
LB: loop body
LE: loop exit
PB: predicated region body
PF: predicated region fallthrough
CT: control target
= control target key end

     0   :  { %s332_s12 = smov 0   ;;  %s363_s0 = inlined_call_operand.vmem [shape: f32[2,64,8], index: 0, kind: input, shape index: {}]   ;;  %s364_s1 = inlined_call_operand.vmem [shape: f32[1,8], index: 1, kind: input, shape index: {}]   ;;  %s365_s2 = inlined_call_operand.vmem [shape: f32[1,8], index: 2, kind: input, shape index: {}]   ;;  %s366_s3 = inlined_call_operand.vmem [shape: f32[2,64,8], index: 3, kind: output, shape index: {}]  }
   0x1 LB: > { %s281_s13 = sadd.s32 4294967295, %s310_s12   ;;  %p285_p0 = scmp.ge.s32.totalorder %s310_s12, 1  ;;  %s310_s12 = sphi %s332_s12, %s13_s12  }
   0x2   : > { %p137_p1 = scmp.lt.s32.totalorder %s310_s12, 3 }
   0x4   : > { %p138_p2 = pnand %p285_p0, %p137_p1 }
   0x5   : > { %p161_p3 = scmp.lt.s32.totalorder (!%p138_p2), %s281_s13, 1  ;;  %v290_v0 = vld [vmem:[%s364_s1] ss:$0 sm:$0xff] (!%p138_p2)  ;;  %vm217_vm0 = vcmask (!%p138_p2), 64512  }
   0x6   : > { %141 = sbr.rel (%p138_p2) target bundleno = 27 (0x1b), region = 32  ;;  %v291_v1 = vld [vmem:[%s365_s2] ss:$0 sm:$0xff] (!%p138_p2) }
   0xd   : > { %s368_s13 = smov (!%p161_p3, %s281_s13), 1 }
   0xe   : > { %s294_s14 = sshll.u32 %s368_s13, 6 }
   0xf   : > { %s165_s19 = scalar_lea.vmem %s363_s0, %s294_s14  ;;  %s170_s24 = scalar_lea.vmem %s366_s3, %s294_s14 }
  0x10   : > { %v171_v2 = vld [vmem:[%s165_s19] sm:$0xff]  ;;  %v172_v3 = vld [vmem:[%s165_s19 + $0x8] sm:$0xff]  ;;  %v173_v4 = vld [vmem:[%s165_s19 + $0x10] sm:$0xff] }
  0x11   : > { %v186_v5 = vmul.f32 %v290_v0, %v171_v2  ;;  %v187_v6 = vmul.f32 %v290_v0, %v172_v3  ;;  %v188_v7 = vmul.f32 %v290_v0, %v173_v4  ;;  %v174_v8 = vld [vmem:[%s165_s19 + $0x18] sm:$0xff]  ;;  %v175_v9 = vld [vmem:[%s165_s19 + $0x20] sm:$0xff]  ;;  %v176_v10 = vld [vmem:[%s165_s19 + $0x28] sm:$0xff] }
  0x12   : > { %v189_v11 = vmul.f32 %v290_v0, %v174_v8  ;;  %v190_v12 = vmul.f32 %v290_v0, %v175_v9  ;;  %v191_v13 = vmul.f32 %v290_v0, %v176_v10  ;;  %v177_v14 = vld [vmem:[%s165_s19 + $0x30] sm:$0xff]  ;;  %v178_v15 = vld [vmem:[%s165_s19 + $0x38] sm:$0xff] }
  0x13   : > { %v201_v16 = vadd.f32 %v291_v1, %v186_v5  ;;  %v202_v17 = vadd.f32 %v291_v1, %v187_v6  ;;  %v203_v18 = vadd.f32 %v291_v1, %v188_v7  ;;  %v192_v19 = vmul.f32 %v290_v0, %v177_v14 }
  0x14   : > { %v204_v20 = vadd.f32 %v291_v1, %v189_v11  ;;  %v205_v21 = vadd.f32 %v291_v1, %v190_v12  ;;  %v206_v22 = vadd.f32 %v291_v1, %v191_v13  ;;  %v193_v23 = vmul.f32 %v290_v0, %v178_v15 }
  0x15   : > { %v209_v24 = vmax.f32 %v201_v16, 0.0  ;;  %v210_v25 = vmax.f32 %v202_v17, 0.0  ;;  %v211_v26 = vmax.f32 %v203_v18, 0.0  ;;  %v207_v27 = vadd.f32 %v291_v1, %v192_v19 }
  0x16   : > { %v212_v28 = vmax.f32 %v204_v20, 0.0  ;;  %v213_v29 = vmax.f32 %v205_v21, 0.0  ;;  %v214_v30 = vmax.f32 %v206_v22, 0.0  ;;  %v208_v31 = vadd.f32 %v291_v1, %v193_v23 }
  0x17   : > { %218 = vst.msk [vmem:[%s170_s24] sm:$0xff] %vm217_vm0, %v209_v24  ;;  %219 = vst.msk [vmem:[%s170_s24 + $0x8] sm:$0xff] %vm217_vm0, %v210_v25  ;;  %v215_v32 = vmax.f32 %v207_v27, 0.0 }
  0x18   : > { %220 = vst.msk [vmem:[%s170_s24 + $0x10] sm:$0xff] %vm217_vm0, %v211_v26  ;;  %221 = vst.msk [vmem:[%s170_s24 + $0x18] sm:$0xff] %vm217_vm0, %v212_v28  ;;  %v216_v33 = vmax.f32 %v208_v31, 0.0 }
  0x19   : > { %222 = vst.msk [vmem:[%s170_s24 + $0x20] sm:$0xff] %vm217_vm0, %v213_v29  ;;  %223 = vst.msk [vmem:[%s170_s24 + $0x28] sm:$0xff] %vm217_vm0, %v214_v30 }
  0x1a   : > { %224 = vst.msk [vmem:[%s170_s24 + $0x30] sm:$0xff] %vm217_vm0, %v215_v32  ;;  %225 = vst.msk [vmem:[%s170_s24 + $0x38] sm:$0xff] %vm217_vm0, %v216_v33 }
  0x1b PF: > { %s13_s12 = sadd.s32 1, %s310_s12  }
  0x1c   : > { %p10_p4 = scmp.ge.s32.totalorder %s13_s12, 4  }
  0x1e   :  { %12 = sbr.rel (!%p10_p4) target bundleno = 1 (0x1), region = 62 }

// kernel: basic_block_forward.4
= control target key start
LH: loop header
LB: loop body
LE: loop exit
PB: predicated region body
PF: predicated region fallthrough
CT: control target
= control target key end

     0   :  { %s1443_s18 = smov 0   ;;  %s1827_s0 = inlined_call_operand.vmem [shape: f32[2,256,8], index: 0, kind: input, shape index: {}]   ;;  %s1828_s1 = inlined_call_operand.vmem [shape: f32[1,8], index: 1, kind: input, shape index: {}]   ;;  %s1829_s2 = inlined_call_operand.vmem [shape: f32[1,8], index: 2, kind: input, shape index: {}]   ;;  %s1830_s3 = inlined_call_operand.vmem [shape: bf16[72,8], index: 3, kind: input, shape index: {}]   ;;  %s1831_s4 = inlined_call_operand.vmem [shape: f32[2,64,8], index: 4, kind: output, shape index: {0}]   ;;  %s1832_s5 = inlined_call_operand.vmem [shape: f32[2,2,8], index: 5, kind: output, shape index: {1}]  }
   0x1 LB: > { %s1150_s19 = sadd.s32 4294967295, %s1402_s18   ;;  %p1154_p0 = scmp.ge.s32.totalorder %s1402_s18, 1  ;;  %s1402_s18 = sphi %s1443_s18, %s16_s18  }
   0x2   : > { %p190_p1 = scmp.lt.s32.totalorder %s1402_s18, 3 }
   0x4   : > { %p191_p2 = pnand %p1154_p0, %p190_p1 }
   0x5   : > { %p222_p3 = scmp.lt.s32.totalorder (!%p191_p2), %s1150_s19, 1  ;;  %vm395_vm0 = vcmask (!%p191_p2), 64512   ;;  %vm452_vm1 = vcmask (!%p191_p2), 58368   ;;  %v1404_v0 = vmov (!%p191_p2), 0.0   ;;  %v1476_v1 = vld [vmem:[%s1828_s1] ss:$0 sm:$0xff] (!%p191_p2) }
   0x6   : > { %194 = sbr.rel (%p191_p2) target bundleno = 467 (0x1d3), region = 36  ;;  %451 = vst.msk [vmem:[#allocation3] sm:$0xff] (!%p191_p2), %vm395_vm0, %v1404_v0  ;;  %454 = vst.msk [vmem:[#allocation3 + $0x10] sm:$0xff] (!%p191_p2), %vm395_vm0, %v1404_v0  ;;  %v1487_v2 = vld [vmem:[%s1829_s2] ss:$0 sm:$0xff] (!%p191_p2)  ;;  %s1405_s28 = smov (!%p191_p2), 16  }
   0x7   : > { %453 = vst.msk [vmem:[#allocation3 + $0x8] sm:$0x3] (!%p191_p2), %vm452_vm1, %v1404_v0  ;;  %455 = vst.msk [vmem:[#allocation3 + $0x18] sm:$0x3] (!%p191_p2), %vm452_vm1, %v1404_v0  ;;  %s1406_s29 = smov (!%p191_p2), 8   ;;  %s1407_s7 = smov (!%p191_p2), 24  }
   0x8   : > { %456 = vst.msk [vmem:[#allocation3 + $0x20] sm:$0xff] (!%p191_p2), %vm395_vm0, %v1404_v0  ;;  %458 = vst.msk [vmem:[#allocation3 + $0x30] sm:$0xff] (!%p191_p2), %vm395_vm0, %v1404_v0  ;;  %s1408_s10 = smov (!%p191_p2), 32   ;;  %s1409_s13 = smov (!%p191_p2), 40   ;;  %vm934_vm2 = vcmask (!%p191_p2), 1043456   ;;  %vm818_vm3 = vcmask (!%p191_p2), 130048  }
   0x9   : > { %457 = vst.msk [vmem:[#allocation3 + $0x28] sm:$0x3] (!%p191_p2), %vm452_vm1, %v1404_v0  ;;  %459 = vst.msk [vmem:[#allocation3 + $0x38] sm:$0x3] (!%p191_p2), %vm452_vm1, %v1404_v0  ;;  %s1410_s16 = smov (!%p191_p2), 48   ;;  %s1411_s21 = smov (!%p191_p2), 56  }
   0xa   : > { %460 = vst.msk [vmem:[#allocation3 + $0x40] sm:$0xff] (!%p191_p2), %vm395_vm0, %v1404_v0  ;;  %462 = vst.msk [vmem:[#allocation3 + $0x50] sm:$0xff] (!%p191_p2), %vm395_vm0, %v1404_v0  ;;  %vm827_vm4 = vcmask (!%p191_p2), 195584   ;;  %vm836_vm5 = vcmask (!%p191_p2), 261120   ;;  %vm845_vm6 = vcmask (!%p191_p2), 326656   ;;  %vm854_vm7 = vcmask (!%p191_p2), 392192  }
   0xb   : > { %461 = vst.msk [vmem:[#allocation3 + $0x48] sm:$0x3] (!%p191_p2), %vm452_vm1, %v1404_v0  ;;  %463 = vst.msk [vmem:[#allocation3 + $0x58] sm:$0x3] (!%p191_p2), %vm452_vm1, %v1404_v0  ;;  %vm863_vm8 = vcmask (!%p191_p2), 457728   ;;  %vm872_vm9 = vcmask (!%p191_p2), 523264  }
   0xc   : > { %464 = vst.msk [vmem:[#allocation3 + $0x60] sm:$0xff] (!%p191_p2), %vm395_vm0, %v1404_v0  ;;  %466 = vst.msk [vmem:[#allocation3 + $0x70] sm:$0xff] (!%p191_p2), %vm395_vm0, %v1404_v0  ;;  %vm921_vm10 = vcmask (!%p191_p2), 588800   ;;  %vm1032_vm11 = vcmask (!%p191_p2), 57344  }
   0xd   : > { %s1834_s19 = smov (!%p222_p3, %s1150_s19), 1  ;;  %465 = vst.msk [vmem:[#allocation3 + $0x68] sm:$0x3] %vm452_vm1, %v1404_v0  ;;  %467 = vst.msk [vmem:[#allocation3 + $0x78] sm:$0x3] %vm452_vm1, %v1404_v0 }
   0xe   : > { %468 = vst.msk [vmem:[#allocation3 + $0x80] sm:$0xff] %vm395_vm0, %v1404_v0  ;;  %470 = vst.msk [vmem:[#allocation3 + $0x90] sm:$0xff] %vm395_vm0, %v1404_v0  ;;  %s1173_s22 = sshll.u32 %s1834_s19, 8  ;;  %s1174_s23 = sshll.u32 %s1834_s19, 6 }
   0xf   : > { %469 = vst.msk [vmem:[#allocation3 + $0x88] sm:$0x3] %vm452_vm1, %v1404_v0  ;;  %471 = vst.msk [vmem:[#allocation3 + $0x98] sm:$0x3] %vm452_vm1, %v1404_v0  ;;  %s1482_s25 = scalar_lea.vmem %s1827_s0, %s1173_s22  ;;  %s1412_s22 = smov 64  }
  0x10   : > { %v237_v3 = vld [vmem:[%s1482_s25] sm:$0xff]  ;;  %v238_v4 = vld [vmem:[%s1482_s25 + $0x8] sm:$0xff]  ;;  %v239_v5 = vld [vmem:[%s1482_s25 + $0x10] sm:$0xff]  ;;  %s1786_s26 = scalar_lea.vmem %s1831_s4, %s1174_s23  ;;  %s1159_s27 = sshll.u32 %s1834_s19, 1 }
  0x11   : > { %v240_v6 = vld [vmem:[%s1482_s25 + $0x18] sm:$0xff]  ;;  %v276_v7 = vmul.f32 %v1476_v1, %v237_v3  ;;  %v277_v8 = vmul.f32 %v1476_v1, %v238_v4  ;;  %v278_v9 = vmul.f32 %v1476_v1, %v239_v5  ;;  %v241_v10 = vld [vmem:[%s1482_s25 + $0x20] sm:$0xff]  ;;  %v242_v11 = vld [vmem:[%s1482_s25 + $0x28] sm:$0xff]  ;;  %s235_s30 = scalar_lea.vmem %s1832_s5, %s1159_s27 }
  0x12   : > { %v279_v12 = vmul.f32 %v1476_v1, %v240_v6  ;;  %v243_v13 = vld [vmem:[%s1482_s25 + $0x30] sm:$0xff]  ;;  %v244_v14 = vld [vmem:[%s1482_s25 + $0x38] sm:$0xff]  ;;  %v245_v15 = vld [vmem:[%s1482_s25 + $0x40] sm:$0xff]  ;;  %v280_v16 = vmul.f32 %v1476_v1, %v241_v10  ;;  %v281_v17 = vmul.f32 %v1476_v1, %v242_v11 }
  0x13   : > { %v315_v18 = vadd.f32 %v1487_v2, %v276_v7  ;;  %v316_v19 = vadd.f32 %v1487_v2, %v277_v8  ;;  %v317_v20 = vadd.f32 %v1487_v2, %v278_v9  ;;  %v246_v21 = vld [vmem:[%s1482_s25 + $0x48] sm:$0xff]  ;;  %v282_v22 = vmul.f32 %v1476_v1, %v243_v13  ;;  %v247_v24 = vld [vmem:[%s1482_s25 + $0x50] sm:$0xff]  ;;  %v248_v25 = vld [vmem:[%s1482_s25 + $0x58] sm:$0xff] }
  0x14   : > { %v318_v23 = vadd.f32 %v1487_v2, %v279_v12  ;;  %v283_v26 = vmul.f32 %v1476_v1, %v244_v14  ;;  %v284_v27 = vmul.f32 %v1476_v1, %v245_v15  ;;  %v285_v28 = vmul.f32 %v1476_v1, %v246_v21  ;;  %v249_v45 = vld [vmem:[%s1482_s25 + $0x60] sm:$0xff]  ;;  %v250_v46 = vld [vmem:[%s1482_s25 + $0x68] sm:$0xff]  ;;  %v251_v51 = vld [vmem:[%s1482_s25 + $0x70] sm:$0xff] }
  0x15   : > { %v347_v29 = vmax.f32 %v315_v18, 0.0  ;;  %v348_v30 = vmax.f32 %v316_v19, 0.0  ;;  %v349_v31 = vmax.f32 %v317_v20, 0.0  ;;  %v286_v32 = vmul.f32 %v1476_v1, %v247_v24  ;;  %v252_v52 = vld [vmem:[%s1482_s25 + $0x78] sm:$0xff]  ;;  %v253_v57 = vld [vmem:[%s1482_s25 + $0x80] sm:$0xff]  ;;  %v254_v58 = vld [vmem:[%s1482_s25 + $0x88] sm:$0xff] }
  0x16   : > { %v350_v33 = vmax.f32 %v318_v23, 0.0  ;;  %v287_v34 = vmul.f32 %v1476_v1, %v248_v25  ;;  %v319_v35 = vadd.f32 %v1487_v2, %v280_v16  ;;  %v320_v36 = vadd.f32 %v1487_v2, %v281_v17  ;;  %v255_v63 = vld [vmem:[%s1482_s25 + $0x90] sm:$0xff]  ;;  %v256_v0 = vld [vmem:[%s1482_s25 + $0x98] sm:$0xff]  ;;  %v257_v15 = vld [vmem:[%s1482_s25 + $0xa0] sm:$0xff] }
  0x17   : > { %v379_v37 = vmax.f32 %v347_v29, %v349_v31  ;;  %v321_v38 = vadd.f32 %v1487_v2, %v282_v22  ;;  %v322_v39 = vadd.f32 %v1487_v2, %v283_v26  ;;  %v323_v40 = vadd.f32 %v1487_v2, %v284_v27  ;;  %v258_v16 = vld [vmem:[%s1482_s25 + $0xa8] sm:$0xff]  ;;  %v259_v21 = vld [vmem:[%s1482_s25 + $0xb0] sm:$0xff]  ;;  %v260_v22 = vld [vmem:[%s1482_s25 + $0xb8] sm:$0xff] }
  0x18   : > { %v380_v41 = vmax.f32 %v348_v30, %v350_v33  ;;  %v324_v42 = vadd.f32 %v1487_v2, %v285_v28  ;;  %v325_v43 = vadd.f32 %v1487_v2, %v286_v32  ;;  %v326_v44 = vadd.f32 %v1487_v2, %v287_v34  ;;  %v261_v23 = vld [vmem:[%s1482_s25 + $0xc0] sm:$0xff]  ;;  %v262_v28 = vld [vmem:[%s1482_s25 + $0xc8] sm:$0xff]  ;;  %v263_v29 = vld [vmem:[%s1482_s25 + $0xd0] sm:$0xff] }
  0x19   : > { %396 = vst.msk [vmem:[#allocation2] sm:$0xff] %vm395_vm0, %v379_v37  ;;  %v351_v47 = vmax.f32 %v319_v35, 0.0  ;;  %v352_v48 = vmax.f32 %v320_v36, 0.0  ;;  %v353_v49 = vmax.f32 %v321_v38, 0.0  ;;  %v354_v50 = vmax.f32 %v322_v39, 0.0  ;;  %v264_v30 = vld [vmem:[%s1482_s25 + $0xd8] sm:$0xff] }
  0x1a   : > { %397 = vst.msk [vmem:[#allocation2 + $0x8] sm:$0xff] %vm395_vm0, %v380_v41  ;;  %v355_v53 = vmax.f32 %v323_v40, 0.0  ;;  %v356_v54 = vmax.f32 %v324_v42, 0.0  ;;  %v357_v55 = vmax.f32 %v325_v43, 0.0  ;;  %v358_v56 = vmax.f32 %v326_v44, 0.0 }
  0x1b   : > { %v381_v59 = vmax.f32 %v351_v47, %v353_v49  ;;  %v382_v60 = vmax.f32 %v352_v48, %v354_v50  ;;  %v288_v61 = vmul.f32 %v1476_v1, %v249_v45  ;;  %v289_v62 = vmul.f32 %v1476_v1, %v250_v46 }
  0x1c   : > { %v383_v3 = vmax.f32 %v355_v53, %v357_v55  ;;  %v384_v4 = vmax.f32 %v356_v54, %v358_v56  ;;  %v290_v5 = vmul.f32 %v1476_v1, %v251_v51  ;;  %v291_v6 = vmul.f32 %v1476_v1, %v252_v52 }
  0x1d   : > { %398 = vst.msk [vmem:[#allocation2 + $0x10] sm:$0xff] %vm395_vm0, %v381_v59  ;;  %399 = vst.msk [vmem:[#allocation2 + $0x18] sm:$0xff] %vm395_vm0, %v382_v60  ;;  %v327_v7 = vadd.f32 %v1487_v2, %v288_v61  ;;  %v328_v8 = vadd.f32 %v1487_v2, %v289_v62  ;;  %v292_v9 = vmul.f32 %v1476_v1, %v253_v57  ;;  %v265_v61 = vld [vmem:[%s1482_s25 + $0xe0] sm:$0xff] }
  0x1e   : > { %v293_v10 = vmul.f32 %v1476_v1, %v254_v58  ;;  %400 = vst.msk [vmem:[#allocation2 + $0x20] sm:$0xff] %vm395_vm0, %v383_v3  ;;  %401 = vst.msk [vmem:[#allocation2 + $0x28] sm:$0xff] %vm395_vm0, %v384_v4  ;;  %v329_v11 = vadd.f32 %v1487_v2, %v290_v5  ;;  %v330_v12 = vadd.f32 %v1487_v2, %v291_v6  ;;  %v266_v4 = vld [vmem:[%s1482_s25 + $0xe8] sm:$0xff]  ;;  %v267_v5 = vld [vmem:[%s1482_s25 + $0xf0] sm:$0xff] }
  0x1f   : > { %v294_v13 = vmul.f32 %v1476_v1, %v255_v63  ;;  %v295_v14 = vmul.f32 %v1476_v1, %v256_v0  ;;  %v359_v17 = vmax.f32 %v327_v7, 0.0  ;;  %v360_v18 = vmax.f32 %v328_v8, 0.0 }
  0x20   : > { %v331_v19 = vadd.f32 %v1487_v2, %v292_v9  ;;  %v332_v20 = vadd.f32 %v1487_v2, %v293_v10  ;;  %v361_v24 = vmax.f32 %v329_v11, 0.0  ;;  %v362_v25 = vmax.f32 %v330_v12, 0.0  ;;  %v268_v10 = vld [vmem:[%s1482_s25 + $0xf8] sm:$0xff]  ;;  %v497_v11 = vld [vmem:[#allocation3 + $0x2] sm:$0xff] }
  0x21   : > { %v333_v26 = vadd.f32 %v1487_v2, %v294_v13  ;;  %v334_v27 = vadd.f32 %v1487_v2, %v295_v14  ;;  %v412_v31 = vld [vmem:[#allocation2] ss:$2 sm:$0xff]  ;;  %v428_v32 = vld [vmem:[#allocation2 + $0x1] ss:$2 sm:$0xff]  ;;  %v296_v35 = vmul.f32 %v1476_v1, %v257_v15  ;;  %v297_v36 = vmul.f32 %v1476_v1, %v258_v16 }
  0x22   : > { %v363_v33 = vmax.f32 %v331_v19, 0.0  ;;  %v364_v34 = vmax.f32 %v332_v20, 0.0  ;;  %v443_v37 = vmax.f32 %v412_v31, %v428_v32  ;;  %v385_v38 = vmax.f32 %v359_v17, %v361_v24  ;;  %v489_v12 = vld [vmem:[#allocation3 + $0x1] sm:$0xff] }
  0x23   : > { %v386_v39 = vmax.f32 %v360_v18, %v362_v25  ;;  %v365_v40 = vmax.f32 %v333_v26, 0.0  ;;  %v366_v41 = vmax.f32 %v334_v27, 0.0  ;;  %v298_v42 = vmul.f32 %v1476_v1, %v259_v21 }
  0x24   : > { %v299_v43 = vmul.f32 %v1476_v1, %v260_v22  ;;  %v300_v44 = vmul.f32 %v1476_v1, %v261_v23  ;;  %473 = vst.msk [vmem:[#allocation3 + $0x11] sm:$0xff] %vm395_vm0, %v443_v37  ;;  %v414_v45 = vld [vmem:[#allocation2 + $0x10] ss:$2 sm:$0xff]  ;;  %v430_v46 = vld [vmem:[#allocation2 + $0x11] ss:$2 sm:$0xff]  ;;  %402 = vst.msk [vmem:[#allocation2 + $0x30] sm:$0xff] %vm395_vm0, %v385_v38  ;;  %v301_v48 = vmul.f32 %v1476_v1, %v262_v28 }
  0x25   : > { %403 = vst.msk [vmem:[#allocation2 + $0x38] sm:$0xff] %vm395_vm0, %v386_v39  ;;  %v387_v47 = vmax.f32 %v363_v33, %v365_v40  ;;  %v302_v49 = vmul.f32 %v1476_v1, %v263_v29  ;;  %v303_v50 = vmul.f32 %v1476_v1, %v264_v30  ;;  %v416_v51 = vld [vmem:[#allocation2 + $0x20] ss:$2 sm:$0xff]  ;;  %v432_v52 = vld [vmem:[#allocation2 + $0x21] ss:$2 sm:$0xff]  ;;  %v444_v53 = vmax.f32 %v414_v45, %v430_v46 }
  0x26   : > { %v388_v54 = vmax.f32 %v364_v34, %v366_v41  ;;  %v335_v55 = vadd.f32 %v1487_v2, %v296_v35  ;;  %v336_v56 = vadd.f32 %v1487_v2, %v297_v36  ;;  %v445_v57 = vmax.f32 %v416_v51, %v432_v52 }
  0x27   : > { %404 = vst.msk [vmem:[#allocation2 + $0x40] sm:$0xff] %vm395_vm0, %v387_v47  ;;  %v337_v58 = vadd.f32 %v1487_v2, %v298_v42  ;;  %v338_v59 = vadd.f32 %v1487_v2, %v299_v43  ;;  %v339_v60 = vadd.f32 %v1487_v2, %v300_v44  ;;  %474 = vst.msk [vmem:[#allocation3 + $0x21] sm:$0xff] %vm395_vm0, %v444_v53  ;;  %v1391_v53 = vld [vmem:[%s1830_s3] sm:$0xff]  }
  0x28   : > { %405 = vst.msk [vmem:[#allocation2 + $0x48] sm:$0xff] %vm395_vm0, %v388_v54  ;;  %v340_v62 = vadd.f32 %v1487_v2, %v301_v48  ;;  %v341_v63 = vadd.f32 %v1487_v2, %v302_v49  ;;  %v342_v0 = vadd.f32 %v1487_v2, %v303_v50  ;;  %v367_v3 = vmax.f32 %v335_v55, 0.0  ;;  %475 = vst.msk [vmem:[#allocation3 + $0x31] sm:$0xff] %vm395_vm0, %v445_v57 }
  0x29   : > { %v368_v6 = vmax.f32 %v336_v56, 0.0  ;;  %v369_v7 = vmax.f32 %v337_v58, 0.0  ;;  %v370_v8 = vmax.f32 %v338_v59, 0.0  ;;  %v371_v9 = vmax.f32 %v339_v60, 0.0  ;;  %1184 = vmatprep.subr.bf16.mxu0 %v1391_v53  ;;  %1202 = vmatprep.subr.bf16.mxu1 %v1391_v53 }
  0x2a   : > { %v372_v13 = vmax.f32 %v340_v62, 0.0  ;;  %v373_v14 = vmax.f32 %v341_v63, 0.0  ;;  %v374_v15 = vmax.f32 %v342_v0, 0.0  ;;  %v304_v16 = vmul.f32 %v1476_v1, %v265_v61  ;;  %1185 = vmatpush3.bf16.msra.mxu0 %v1391_v53  ;;  %v1392_v63 = vld [vmem:[%s1830_s3 + $0x8] sm:$0xff]   ;;  %1207 = vmatpush3.bf16.msra.mxu1 %v1391_v53 }
  0x2b   : > { %v389_v17 = vmax.f32 %v367_v3, %v369_v7  ;;  %v390_v18 = vmax.f32 %v368_v6, %v370_v8  ;;  %v305_v19 = vmul.f32 %v1476_v1, %v266_v4  ;;  %v306_v20 = vmul.f32 %v1476_v1, %v267_v5  ;;  %v1593_v21 = vld [vmem:[#allocation3 + $0x12] sm:$0xff]  ;;  %1186 = vmatprep.subr.bf16.mxu0 %v1392_v63 }
  0x2c   : > { %v1595_v22 = vld [vmem:[#allocation3 + $0x11] sm:$0xff]  ;;  %v391_v24 = vmax.f32 %v371_v9, %v373_v14  ;;  %v392_v25 = vmax.f32 %v372_v13, %v374_v15  ;;  %v307_v26 = vmul.f32 %v1476_v1, %v268_v10  ;;  %v343_v27 = vadd.f32 %v1487_v2, %v304_v16  ;;  %1203 = vmatprep.subr.bf16.mxu1 %v1392_v63  ;;  %v1395_v15 = vld [vmem:[%s1830_s3 + $0x20] ss:$0 sps:$4 sm:$0xff]  }
  0x2d   : > { %v418_v23 = vld [vmem:[#allocation2 + $0x30] ss:$2 sm:$0xff]  ;;  %v1241_v28 = vpack.i.bf16 %v1593_v21, %v497_v11  ;;  %v1231_v29 = vpack.i.bf16 %v1595_v22, %v489_v12  ;;  %v434_v30 = vld [vmem:[#allocation2 + $0x31] ss:$2 sm:$0xff]  ;;  %406 = vst.msk [vmem:[#allocation2 + $0x50] sm:$0xff] %vm395_vm0, %v389_v17  ;;  %407 = vst.msk [vmem:[#allocation2 + $0x58] sm:$0xff] %vm395_vm0, %v390_v18  ;;  %v344_v31 = vadd.f32 %v1487_v2, %v305_v19 }
  0x2e   : > { %v345_v32 = vadd.f32 %v1487_v2, %v306_v20  ;;  %v446_v33 = vmax.f32 %v418_v23, %v434_v30  ;;  %408 = vst.msk [vmem:[#allocation2 + $0x60] sm:$0xff] %vm395_vm0, %v391_v24  ;;  %409 = vst.msk [vmem:[#allocation2 + $0x68] sm:$0xff] %vm395_vm0, %v392_v25  ;;  %v346_v1 = vadd.f32 %v1487_v2, %v307_v26  ;;  %v375_v34 = vmax.f32 %v343_v27, 0.0  ;;  %v499_v35 = vld [vmem:[#allocation3 + $0x22] sm:$0xff]  ;;  %v1610_v37 = vld [vmem:[#allocation3 + $0x10] sm:$0xff] }
  0x2f   : > { %1242 = vrot.lane.b32.xlu1 %v1241_v28, %s1405_s28  ;;  %1232 = vrot.lane.b32.xlu0 %v1231_v29, %s1406_s29  ;;  %v491_v36 = vld [vmem:[#allocation3 + $0x21] sm:$0xff]  ;;  %v376_v38 = vmax.f32 %v344_v31, 0.0  ;;  %v1612_v40 = vld [vmem:[#allocation3 + $0x32] sm:$0xff]  ;;  %v1271_v4 = vpack.i.bf16 %v499_v35, %v1593_v21  ;;  %v936_v17 = vsel %vm934_vm2, %v1395_v15, 0 }
  0x30   : > { %v377_v39 = vmax.f32 %v345_v32, 0.0  ;;  %v492_v41 = vld [vmem:[#allocation3 + $0x31] sm:$0xff]  ;;  %476 = vst.msk [vmem:[#allocation3 + $0x41] sm:$0xff] %vm395_vm0, %v446_v33  ;;  %v1615_v42 = vld [vmem:[#allocation3 + $0x20] sm:$0xff]  ;;  %v378_v2 = vmax.f32 %v346_v1, 0.0  ;;  %v1618_v43 = vpack.i.bf16 %v1612_v40, %v499_v35  ;;  %v1261_v61 = vpack.i.bf16 %v491_v36, %v1595_v22  ;;  %1187 = vmatpush3.bf16.msra.mxu0 %v1392_v63  ;;  %1208 = vmatpush3.bf16.msra.mxu1 %v1392_v63 }
  0x31   : > { %v1620_v44 = vpack.i.bf16 %v492_v41, %v491_v36  ;;  %v420_v45 = vld [vmem:[#allocation2 + $0x40] ss:$2 sm:$0xff]  ;;  %v436_v46 = vld [vmem:[#allocation2 + $0x41] ss:$2 sm:$0xff]  ;;  %v1251_v50 = vpack.i.bf16 %v1615_v42, %v1610_v37  ;;  %v1634_v54 = vld [vmem:[#allocation3 + $0x30] sm:$0xff] }
  0x32   : > { %v393_v47 = vmax.f32 %v375_v34, %v377_v39  ;;  %v447_v48 = vmax.f32 %v420_v45, %v436_v46  ;;  %v394_v49 = vmax.f32 %v376_v38, %v378_v2  ;;  %v1393_v7 = vld [vmem:[%s1830_s3 + $0x10] sm:$0xff]   ;;  %v1281_v11 = vpack.i.bf16 %v1634_v54, %v1615_v42  ;;  %v1394_v12 = vld [vmem:[%s1830_s3 + $0x18] sm:$0xff]  }
  0x33   : > { %1247 = vrot.lane.b32.xlu1 %v1618_v43, %s1405_s28  ;;  %1237 = vrot.lane.b32.xlu0 %v1620_v44, %s1406_s29  ;;  %v537_v36 = vld [vmem:[#allocation3 + $0x90] sm:$0xff] }
  0x34   : > { %410 = vst.msk [vmem:[#allocation2 + $0x70] sm:$0xff] %vm395_vm0, %v393_v47  ;;  %477 = vst.msk [vmem:[#allocation3 + $0x51] sm:$0xff] %vm395_vm0, %v447_v48  ;;  %v422_v51 = vld [vmem:[#allocation2 + $0x50] ss:$2 sm:$0xff]  ;;  %v438_v52 = vld [vmem:[#allocation2 + $0x51] ss:$2 sm:$0xff]  ;;  %1188 = vmatprep.subr.bf16.mxu0 %v1393_v7  ;;  %1204 = vmatprep.subr.bf16.mxu1 %v1393_v7 }
  0x35   : > { %411 = vst.msk [vmem:[#allocation2 + $0x78] sm:$0xff] %vm395_vm0, %v394_v49  ;;  %v424_v55 = vld [vmem:[#allocation2 + $0x60] ss:$2 sm:$0xff]  ;;  %v440_v56 = vld [vmem:[#allocation2 + $0x61] ss:$2 sm:$0xff]  ;;  %v448_v57 = vmax.f32 %v422_v51, %v438_v52  ;;  %1189 = vmatpush3.bf16.msra.mxu0 %v1393_v7  ;;  %1209 = vmatpush3.bf16.msra.mxu1 %v1393_v7  ;;  %v553_v2 = vld [vmem:[#allocation3 + $0x92] sm:$0xff] }
  0x36   : > { %v449_v58 = vmax.f32 %v424_v55, %v440_v56  ;;  %1190 = vmatprep.subr.bf16.mxu0 %v1394_v12  ;;  %1205 = vmatprep.subr.bf16.mxu1 %v1394_v12  ;;  %v481_v55 = vld [vmem:[#allocation3] sm:$0xff] }
  0x37   : > { %v1636_v59 = vld [vmem:[#allocation3 + $0x40] sm:$0xff]  ;;  %1252 = vrot.lane.b32.xlu0 %v1251_v50, %s1407_s7  ;;  %478 = vst.msk [vmem:[#allocation3 + $0x61] sm:$0xff] %vm395_vm0, %v448_v57 }
  0x38   : > { %v516_v60 = vld [vmem:[#allocation3 + $0x41] sm:$0xff]  ;;  %v1256_v62 = vpack.i.bf16 %v1636_v59, %v1634_v54  ;;  %479 = vst.msk [vmem:[#allocation3 + $0x71] sm:$0xff] %vm395_vm0, %v449_v58 }
  0x39   : > { %v1266_v0 = vpack.i.bf16 %v516_v60, %v492_v41  ;;  %v524_v3 = vld [vmem:[#allocation3 + $0x42] sm:$0xff]  ;;  %1191 = vmatpush3.bf16.msra.mxu0 %v1394_v12  ;;  %1210 = vmatpush3.bf16.msra.mxu1 %v1394_v12 }
  0x3a   : > { %1257 = vrot.lane.b32.xlu1 %v1256_v62, %s1407_s7  ;;  %v1276_v9 = vpack.i.bf16 %v524_v3, %v1612_v40  ;;  %1212 = vmatprep.subr.msk.bf16.mxu0 %vm934_vm2, %v1395_v15  ;;  %v545_v40 = vld [vmem:[#allocation3 + $0x91] sm:$0xff] }
  0x3b   : > { %1262 = vrot.lane.b32.xlu0 %v1261_v61, %s1408_s10  ;;  %v1656_v10 = vld [vmem:[#allocation3 + $0x50] sm:$0xff]  ;;  %1213 = vmatprep.subr.msk.bf16.mxu1 %vm934_vm2, %v1395_v15 }
  0x3c   : > { %v426_v5 = vld [vmem:[#allocation2 + $0x70] ss:$2 sm:$0xff]  ;;  %v442_v6 = vld [vmem:[#allocation2 + $0x71] ss:$2 sm:$0xff]  ;;  %v1286_v13 = vpack.i.bf16 %v1656_v10, %v1636_v59 }
  0x3d   : > { %v450_v8 = vmax.f32 %v426_v5, %v442_v6  ;;  %v541_v14 = vld [vmem:[#allocation3 + $0x51] sm:$0xff]  ;;  %1193 = vmatpush3.bf16.msra.mxu0 %v936_v17  ;;  %1211 = vmatpush3.bf16.msra.mxu1 %v936_v17 }
  0x3e   : > { %1267 = vrot.lane.b32.xlu1 %v1266_v0, %s1408_s10  ;;  %v1296_v16 = vpack.i.bf16 %v541_v14, %v516_v60  ;;  %v549_v18 = vld [vmem:[#allocation3 + $0x52] sm:$0xff]  ;;  %v495_v19 = vld [vmem:[#allocation3 + $0x61] sm:$0xff] }
  0x3f   : > { %1272 = vrot.lane.b32.xlu0 %v1271_v4, %s1409_s13  ;;  %480 = vst.msk [vmem:[#allocation3 + $0x81] sm:$0xff] %vm395_vm0, %v450_v8  ;;  %v496_v20 = vld [vmem:[#allocation3 + $0x71] sm:$0xff]  ;;  %v1311_v21 = vpack.i.bf16 %v549_v18, %v524_v3  ;;  %v503_v23 = vld [vmem:[#allocation3 + $0x62] sm:$0xff]  ;;  %v1341_v32 = vpack.i.bf16 %v495_v19, %v541_v14 }
  0x40   : > { %v1316_v22 = vpack.i.bf16 %v496_v20, %v495_v19  ;;  %v504_v24 = vld [vmem:[#allocation3 + $0x72] sm:$0xff]  ;;  %v1679_v25 = vld [vmem:[#allocation3 + $0x60] sm:$0xff]  ;;  %v1351_v34 = vpack.i.bf16 %v503_v23, %v549_v18 }
  0x41   : > { %v1326_v26 = vpack.i.bf16 %v504_v24, %v503_v23  ;;  %v1683_v27 = vld [vmem:[#allocation3 + $0x70] sm:$0xff]  ;;  %v1331_v29 = vpack.i.bf16 %v1679_v25, %v1656_v10 }
  0x42   : > { %1277 = vrot.lane.b32.xlu1 %v1276_v9, %s1409_s13  ;;  %v1361_v38 = vpack.i.bf16 %v1683_v27, %v1679_v25 }
  0x43   : > { %1282 = vrot.lane.b32.xlu0 %v1281_v11, %s1410_s16 }
  0x46   : > { %1287 = vrot.lane.b32.xlu1 %v1286_v13, %s1410_s16  ;;  %v512_v28 = vld [vmem:[#allocation3 + $0x80] sm:$0xff] }
  0x47   : > { %1292 = vrot.lane.b32.xlu0 %v1620_v44, %s1411_s21  ;;  %v1336_v30 = vpack.i.bf16 %v512_v28, %v1683_v27  ;;  %v520_v31 = vld [vmem:[#allocation3 + $0x81] sm:$0xff]  ;;  %v1366_v39 = vpack.i.bf16 %v537_v36, %v512_v28 }
  0x48   : > { %v1346_v33 = vpack.i.bf16 %v520_v31, %v496_v20  ;;  %v528_v1 = vld [vmem:[#allocation3 + $0x82] sm:$0xff]  ;;  %v1376_v41 = vpack.i.bf16 %v545_v40, %v520_v31 }
  0x49   : > { %v1356_v35 = vpack.i.bf16 %v528_v1, %v504_v24 }
  0x4a   : > { %1297 = vrot.lane.b32.xlu1 %v1296_v16, %s1411_s21 }
  0x4b   : > { %1302 = vrot.lane.b32.xlu0 %v1618_v43, %s1412_s22  ;;  %v1386_v43 = vpack.i.bf16 %v553_v2, %v528_v1 }
  0x4e   : > { %1307 = vrot.lane.b32.xlu1 %v1296_v16, %s1406_s29 }
  0x4f   : > { %1312 = vrot.lane.b32.xlu0 %v1311_v21, %s1412_s22 }
  0x52   : > { %1317 = vrot.lane.b32.xlu1 %v1316_v22, %s1406_s29 }
  0x53   : > { %1322 = vrot.lane.b32.xlu0 %v1311_v21, %s1405_s28 }
  0x56   : > { %1327 = vrot.lane.b32.xlu1 %v1326_v26, %s1405_s28 }
  0x57   : > { %1332 = vrot.lane.b32.xlu0 %v1331_v29, %s1407_s7 }
  0x5a   : > { %1337 = vrot.lane.b32.xlu1 %v1336_v30, %s1407_s7 }
  0x5b   : > { %1342 = vrot.lane.b32.xlu0 %v1341_v32, %s1408_s10 }
  0x5e   : > { %1347 = vrot.lane.b32.xlu1 %v1346_v33, %s1408_s10 }
  0x5f   : > { %1352 = vrot.lane.b32.xlu0 %v1351_v34, %s1409_s13 }
  0x62   : > { %1357 = vrot.lane.b32.xlu1 %v1356_v35, %s1409_s13 }
  0x63   : > { %1362 = vrot.lane.b32.xlu0 %v1361_v38, %s1410_s16 }
  0x66   : > { %1367 = vrot.lane.b32.xlu1 %v1366_v39, %s1410_s16 }
  0x67   : > { %1372 = vrot.lane.b32.xlu0 %v1316_v22, %s1411_s21 }
  0x6a   : > { %1377 = vrot.lane.b32.xlu1 %v1376_v41, %s1411_s21 }
  0x6b   : > { %1382 = vrot.lane.b32.xlu0 %v1326_v26, %s1412_s22 }
  0x6e   : > { %1387 = vrot.lane.b32.xlu1 %v1386_v43, %s1412_s22 }
  0xa1   : > { %v1243_v44 = vpop.permute.xlu1 %1242  ;;  %v1233_v45 = vpop.permute.xlu0 %1232 }
  0xa2   : > { %v1235_v51 = vunpack.i.h.bf16 %v1233_v45  ;;  %v1234_v52 = vunpack.i.l.bf16 %v1233_v45  ;;  %v1245_v60 = vunpack.i.h.bf16 %v1243_v44  ;;  %v1244_v61 = vunpack.i.l.bf16 %v1243_v44 }
  0xa4   : > { %v810_v62 = vsel %vm395_vm0, %v481_v55, %v1234_v52  ;;  %v811_v63 = vsel %vm395_vm0, %v1610_v37, %v1235_v51 }
  0xa5   : > { %v1238_v46 = vpop.permute.xlu0 %1237  ;;  %v1248_v47 = vpop.permute.xlu1 %1247  ;;  %v819_v37 = vsel %vm818_vm3, %v810_v62, %v1244_v61  ;;  %v820_v15 = vsel %vm818_vm3, %v811_v63, %v1245_v60 }
  0xa6   : > { %v1240_v56 = vunpack.i.h.bf16 %v1238_v46  ;;  %v1239_v57 = vunpack.i.l.bf16 %v1238_v46  ;;  %v1250_v3 = vunpack.i.h.bf16 %v1248_v47  ;;  %v1249_v4 = vunpack.i.l.bf16 %v1248_v47 }
  0xa8   : > { %v813_v5 = vsel %vm395_vm0, %v1634_v54, %v1240_v56  ;;  %v812_v6 = vsel %vm395_vm0, %v1615_v42, %v1239_v57 }
  0xa9   : > { %v1253_v48 = vpop.permute.xlu0 %1252  ;;  %v821_v54 = vsel %vm818_vm3, %v812_v6, %v1249_v4  ;;  %v822_v42 = vsel %vm818_vm3, %v813_v5, %v1250_v3 }
  0xaa   : > { %v1255_v11 = vunpack.i.h.bf16 %v1253_v48  ;;  %v1254_v12 = vunpack.i.l.bf16 %v1253_v48 }
  0xac   : > { %v1258_v49 = vpop.permute.xlu1 %1257  ;;  %v828_v24 = vsel %vm827_vm4, %v819_v37, %v1254_v12  ;;  %v829_v26 = vsel %vm827_vm4, %v820_v15, %v1255_v11 }
  0xad   : > { %v1263_v50 = vpop.permute.xlu0 %1262  ;;  %v1260_v8 = vunpack.i.h.bf16 %v1258_v49  ;;  %v1259_v9 = vunpack.i.l.bf16 %v1258_v49 }
  0xae   : > { %v1265_v13 = vunpack.i.h.bf16 %v1263_v50  ;;  %v1264_v14 = vunpack.i.l.bf16 %v1263_v50 }
  0xaf   : > { %v830_v22 = vsel %vm827_vm4, %v821_v54, %v1259_v9  ;;  %v831_v23 = vsel %vm827_vm4, %v822_v42, %v1260_v8 }
  0xb0   : > { %v1703_v53 = vpop.permute.xlu1 %1267  ;;  %v837_v28 = vsel %vm836_vm5, %v828_v24, %v1264_v14  ;;  %v838_v29 = vsel %vm836_vm5, %v829_v26, %v1265_v13 }
  0xb1   : > { %v1273_v58 = vpop.permute.xlu0 %1272  ;;  %v1270_v32 = vunpack.i.h.bf16 %v1703_v53  ;;  %v1269_v33 = vunpack.i.l.bf16 %v1703_v53 }
  0xb2   : > { %v1275_v16 = vunpack.i.h.bf16 %v1273_v58  ;;  %v1274_v17 = vunpack.i.l.bf16 %v1273_v58 }
  0xb3   : > { %v839_v50 = vsel %vm836_vm5, %v830_v22, %v1269_v33  ;;  %v840_v51 = vsel %vm836_vm5, %v831_v23, %v1270_v32 }
  0xb4   : > { %v1278_v0 = vpop.permute.xlu1 %1277  ;;  %v846_v1 = vsel %vm845_vm6, %v837_v28, %v1274_v17  ;;  %v847_v34 = vsel %vm845_vm6, %v838_v29, %v1275_v16 }
  0xb5   : > { %v1283_v7 = vpop.permute.xlu0 %1282  ;;  %v1280_v36 = vunpack.i.h.bf16 %v1278_v0  ;;  %v1279_v38 = vunpack.i.l.bf16 %v1278_v0 }
  0xb6   : > { %v1285_v19 = vunpack.i.h.bf16 %v1283_v7  ;;  %v1284_v20 = vunpack.i.l.bf16 %v1283_v7 }
  0xb7   : > { %v848_v56 = vsel %vm845_vm6, %v839_v50, %v1279_v38  ;;  %v849_v57 = vsel %vm845_vm6, %v840_v51, %v1280_v36 }
  0xb8   : > { %v1288_v18 = vpop.permute.xlu1 %1287  ;;  %v855_v39 = vsel %vm854_vm7, %v846_v1, %v1284_v20  ;;  %v856_v40 = vsel %vm854_vm7, %v847_v34, %v1285_v19 }
  0xb9   : > { %v1293_v21 = vpop.permute.xlu0 %1292  ;;  %v1290_v2 = vunpack.i.h.bf16 %v1288_v18  ;;  %v1289_v43 = vunpack.i.l.bf16 %v1288_v18 }
  0xba   : > { %v1295_v30 = vunpack.i.h.bf16 %v1293_v21  ;;  %v1294_v31 = vunpack.i.l.bf16 %v1293_v21 }
  0xbb   : > { %v857_v61 = vsel %vm854_vm7, %v848_v56, %v1289_v43  ;;  %v858_v62 = vsel %vm854_vm7, %v849_v57, %v1290_v2 }
  0xbc   : > { %v1298_v35 = vpop.permute.xlu1 %1297  ;;  %v864_v48 = vsel %vm863_vm8, %v855_v39, %v1294_v31  ;;  %v865_v49 = vsel %vm863_vm8, %v856_v40, %v1295_v30 }
  0xbd   : > { %v1303_v41 = vpop.permute.xlu0 %1302  ;;  %v1300_v46 = vunpack.i.h.bf16 %v1298_v35  ;;  %v1299_v47 = vunpack.i.l.bf16 %v1298_v35 }
  0xbe   : > { %v1305_v44 = vunpack.i.h.bf16 %v1303_v41  ;;  %v1304_v45 = vunpack.i.l.bf16 %v1303_v41 }
  0xbf   : > { %v866_v3 = vsel %vm863_vm8, %v857_v61, %v1299_v47  ;;  %v867_v4 = vsel %vm863_vm8, %v858_v62, %v1300_v46 }
  0xc0   : > { %v1308_v52 = vpop.permute.xlu1 %1307  ;;  %v873_v53 = vsel %vm872_vm9, %v864_v48, %v1304_v45  ;;  %v874_v55 = vsel %vm872_vm9, %v865_v49, %v1305_v44 }
  0xc1   : > { %v1313_v58 = vpop.permute.xlu0 %1312  ;;  %v881_v60 = vpack.c.bf16 %v874_v55, %v873_v53  ;;  %v1310_v15 = vunpack.i.h.bf16 %v1308_v52  ;;  %v1309_v16 = vunpack.i.l.bf16 %v1308_v52 }
  0xc2   : > { %v1315_v63 = vunpack.i.h.bf16 %v1313_v58  ;;  %v1314_v0 = vunpack.i.l.bf16 %v1313_v58 }
  0xc3   : > { %1194 = vmatprep.mubr.msk.bf16.mxu0 %vm921_vm10, %v881_v60  ;;  %v815_v24 = vsel %vm395_vm0, %v1656_v10, %v1310_v15  ;;  %v814_v26 = vsel %vm395_vm0, %v1636_v59, %v1309_v16 }
  0xc4   : > { %v1318_v5 = vpop.permute.xlu1 %1317  ;;  %v875_v6 = vsel %vm872_vm9, %v866_v3, %v1314_v0  ;;  %v876_v7 = vsel %vm872_vm9, %v867_v4, %v1315_v63 }
  0xc5   : > { %v882_v8 = vpack.c.bf16 %v876_v7, %v875_v6  ;;  %v1323_v9 = vpop.permute.xlu0 %1322  ;;  %v1319_v17 = vunpack.i.l.bf16 %v1318_v5  ;;  %v1320_v54 = vunpack.i.h.bf16 %v1318_v5 }
  0xc6   : > { %v1325_v19 = vunpack.i.h.bf16 %v1323_v9  ;;  %v1324_v20 = vunpack.i.l.bf16 %v1323_v9 }
  0xc7   : > { %1195 = vmatmul.mubr.msk.bf16.vlgmr.msra.gmra.mrb[0].mxu0 %vm921_vm10, %v882_v8  ;;  %v816_v28 = vsel %vm395_vm0, %v1679_v25, %v1319_v17  ;;  %v817_v34 = vsel %vm395_vm0, %v1683_v27, %v1320_v54 }
  0xc8   : > { %v1328_v11 = vpop.permute.xlu1 %1327  ;;  %v824_v36 = vsel %vm818_vm3, %v815_v24, %v1325_v19  ;;  %v823_v10 = vsel %vm818_vm3, %v814_v26, %v1324_v20 }
  0xc9   : > { %v1333_v12 = vpop.permute.xlu0 %1332  ;;  %v1329_v42 = vunpack.i.l.bf16 %v1328_v11  ;;  %v1330_v21 = vunpack.i.h.bf16 %v1328_v11 }
  0xca   : > { %v1334_v22 = vunpack.i.l.bf16 %v1333_v12  ;;  %v1335_v29 = vunpack.i.h.bf16 %v1333_v12 }
  0xcb   : > { %v825_v35 = vsel %vm818_vm3, %v816_v28, %v1329_v42  ;;  %v826_v59 = vsel %vm818_vm3, %v817_v34, %v1330_v21 }
  0xcc   : > { %v1338_v13 = vpop.permute.xlu1 %1337  ;;  %v832_v38 = vsel %vm827_vm4, %v823_v10, %v1334_v22  ;;  %v833_v41 = vsel %vm827_vm4, %v824_v36, %v1335_v29 }
  0xcd   : > { %v1343_v14 = vpop.permute.xlu0 %1342  ;;  %v1340_v31 = vunpack.i.h.bf16 %v1338_v13  ;;  %v1339_v32 = vunpack.i.l.bf16 %v1338_v13 }
  0xce   : > { %v1345_v33 = vunpack.i.h.bf16 %v1343_v14  ;;  %v1344_v1 = vunpack.i.l.bf16 %v1343_v14 }
  0xcf   : > { %v834_v27 = vsel %vm827_vm4, %v825_v35, %v1339_v32  ;;  %v835_v46 = vsel %vm827_vm4, %v826_v59, %v1340_v31 }
  0xd0   : > { %v1348_v37 = vpop.permute.xlu1 %1347  ;;  %v841_v47 = vsel %vm836_vm5, %v832_v38, %v1344_v1  ;;  %v842_v48 = vsel %vm836_vm5, %v833_v41, %v1345_v33 }
  0xd1   : > { %v1353_v18 = vpop.permute.xlu0 %1352  ;;  %v1349_v2 = vunpack.i.l.bf16 %v1348_v37  ;;  %v1350_v49 = vunpack.i.h.bf16 %v1348_v37 }
  0xd2   : > { %v1355_v25 = vunpack.i.h.bf16 %v1353_v18  ;;  %v1354_v39 = vunpack.i.l.bf16 %v1353_v18 }
  0xd3   : > { %v843_v60 = vsel %vm836_vm5, %v834_v27, %v1349_v2  ;;  %v844_v7 = vsel %vm836_vm5, %v835_v46, %v1350_v49 }
  0xd4   : > { %v1358_v23 = vpop.permute.xlu1 %1357  ;;  %v850_v55 = vsel %vm845_vm6, %v841_v47, %v1354_v39  ;;  %v851_v56 = vsel %vm845_vm6, %v842_v48, %v1355_v25 }
  0xd5   : > { %v1363_v30 = vpop.permute.xlu0 %1362  ;;  %v1359_v50 = vunpack.i.l.bf16 %v1358_v23  ;;  %v1360_v53 = vunpack.i.h.bf16 %v1358_v23 }
  0xd6   : > { %v1365_v43 = vunpack.i.h.bf16 %v1363_v30  ;;  %v1364_v44 = vunpack.i.l.bf16 %v1363_v30 }
  0xd7   : > { %v852_v8 = vsel %vm845_vm6, %v843_v60, %v1359_v50  ;;  %v853_v12 = vsel %vm845_vm6, %v844_v7, %v1360_v53 }
  0xd8   : > { %v1368_v40 = vpop.permute.xlu1 %1367  ;;  %v859_v62 = vsel %vm854_vm7, %v850_v55, %v1364_v44  ;;  %v860_v63 = vsel %vm854_vm7, %v851_v56, %v1365_v43 }
  0xd9   : > { %v1373_v45 = vpop.permute.xlu0 %1372  ;;  %v1369_v57 = vunpack.i.l.bf16 %v1368_v40  ;;  %v1370_v61 = vunpack.i.h.bf16 %v1368_v40 }
  0xda   : > { %v1375_v51 = vunpack.i.h.bf16 %v1373_v45  ;;  %v1374_v52 = vunpack.i.l.bf16 %v1373_v45 }
  0xdb   : > { %v861_v13 = vsel %vm854_vm7, %v852_v8, %v1369_v57  ;;  %v862_v16 = vsel %vm854_vm7, %v853_v12, %v1370_v61 }
  0xdc   : > { %v1378_v58 = vpop.permute.xlu1 %1377  ;;  %v868_v9 = vsel %vm863_vm8, %v859_v62, %v1374_v52  ;;  %v869_v11 = vsel %vm863_vm8, %v860_v63, %v1375_v51 }
  0xdd   : > { %v1383_v0 = vpop.permute.xlu0 %1382  ;;  %v1380_v3 = vunpack.i.h.bf16 %v1378_v58  ;;  %v1379_v4 = vunpack.i.l.bf16 %v1378_v58 }
  0xde   : > { %v1385_v5 = vunpack.i.h.bf16 %v1383_v0  ;;  %v1384_v6 = vunpack.i.l.bf16 %v1383_v0 }
  0xdf   : > { %v870_v42 = vsel %vm863_vm8, %v861_v13, %v1379_v4  ;;  %v871_v19 = vsel %vm863_vm8, %v862_v16, %v1380_v3 }
  0xe0   : > { %v1388_v14 = vpop.permute.xlu1 %1387  ;;  %v877_v37 = vsel %vm872_vm9, %v868_v9, %v1384_v6  ;;  %v878_v15 = vsel %vm872_vm9, %v869_v11, %v1385_v5 }
  0xe1   : > { %v1390_v17 = vunpack.i.h.bf16 %v1388_v14  ;;  %v1389_v18 = vunpack.i.l.bf16 %v1388_v14  ;;  %v883_v54 = vpack.c.bf16 %v878_v15, %v877_v37 }
  0xe3   : > { %v879_v20 = vsel %vm872_vm9, %v870_v42, %v1389_v18  ;;  %v880_v21 = vsel %vm872_vm9, %v871_v19, %v1390_v17  ;;  %1198 = vmatprep.mubr.msk.bf16.mxu1 %vm921_vm10, %v883_v54 }
  0xe4   : > { %v884_v22 = vpack.c.bf16 %v880_v21, %v879_v20 }
  0xe6   : > { %1199 = vmatmul.mubr.msk.bf16.vlgmr.msra.gmra.mrb[0].mxu1 %vm921_vm10, %v884_v22 }
 0x19a   : > { %v1196_v23 = vpop.f32.mrb[0].mxu0 }
 0x19b   : > { %1005 = vst.msk [vmem:[%s1786_s26 + $0x10] sm:$0xff] %vm395_vm0, %v1196_v23  ;;  %v972_v24 = vpop.f32.mrb[1].mxu0  ;;  %v1036_v30 = vmul.f32 %v1196_v23, %v1196_v23  ;;  %v1014_v34 = vsel %vm395_vm0, %v1196_v23, 0.0 }
 0x19c   : > { %1003 = vst.msk [vmem:[%s1786_s26] sm:$0xff] %vm395_vm0, %v972_v24  ;;  %v1034_v26 = vmul.f32 %v972_v24, %v972_v24  ;;  %v1197_v28 = vpop.f32.mrb[2].mxu0  ;;  %v1011_v31 = vsel %vm395_vm0, %v972_v24, 0.0 }
 0x19d   : > { %1006 = vst.msk [vmem:[%s1786_s26 + $0x18] sm:$0xff] %vm395_vm0, %v1197_v28  ;;  %v975_v29 = vpop.f32.mrb[3].mxu0  ;;  %v1037_v36 = vmul.f32 %v1197_v28, %v1197_v28  ;;  %v1045_v25 = vsel %vm395_vm0, %v1036_v30, 0.0  ;;  %v1016_v39 = vsel %vm395_vm0, %v1197_v28, 0.0 }
 0x19e   : > { %1004 = vst.msk [vmem:[%s1786_s26 + $0x8] sm:$0xff] %vm395_vm0, %v975_v29  ;;  %v1012_v32 = vsel %vm395_vm0, %v975_v29, 0.0  ;;  %v1035_v33 = vmul.f32 %v975_v29, %v975_v29  ;;  %v1042_v35 = vsel %vm395_vm0, %v1034_v26, 0.0 }
 0x19f   : > { %v1013_v1 = vadd.f32 %v1012_v32, %v1011_v31  ;;  %v1047_v2 = vsel %vm395_vm0, %v1037_v36, 0.0 }
 0x1a0   : > { %v1043_v10 = vsel %vm395_vm0, %v1035_v33, 0.0 }
 0x1a1   : > { %v1015_v59 = vadd.f32 %v1014_v34, %v1013_v1  ;;  %v1044_v38 = vadd.f32 %v1043_v10, %v1042_v35 }
 0x1a3   : > { %v1046_v40 = vadd.f32 %v1045_v25, %v1044_v38  ;;  %v1017_v41 = vadd.f32 %v1016_v39, %v1015_v59 }
 0x1a5   : > { %v1048_v43 = vadd.f32 %v1047_v2, %v1046_v40 }
 0x1b9   : > { %v1200_v44 = vpop.f32.mrb[0].mxu1 }
 0x1ba   : > { %1009 = vst.msk [vmem:[%s1786_s26 + $0x30] sm:$0xff] %vm395_vm0, %v1200_v44  ;;  %v988_v45 = vpop.f32.mrb[1].mxu1  ;;  %v1040_v50 = vmul.f32 %v1200_v44, %v1200_v44  ;;  %v1022_v57 = vsel %vm395_vm0, %v1200_v44, 0.0 }
 0x1bb   : > { %1007 = vst.msk [vmem:[%s1786_s26 + $0x20] sm:$0xff] %vm395_vm0, %v988_v45  ;;  %v1018_v27 = vsel %vm395_vm0, %v988_v45, 0.0  ;;  %v1038_v46 = vmul.f32 %v988_v45, %v988_v45  ;;  %v1201_v47 = vpop.f32.mrb[2].mxu1 }
 0x1bc   : > { %v1019_v48 = vadd.f32 %v1018_v27, %v1017_v41  ;;  %1010 = vst.msk [vmem:[%s1786_s26 + $0x38] sm:$0xff] %vm395_vm0, %v1201_v47  ;;  %v991_v49 = vpop.f32.mrb[3].mxu1  ;;  %v1041_v58 = vmul.f32 %v1201_v47, %v1201_v47  ;;  %v1053_v63 = vsel %vm395_vm0, %v1040_v50, 0.0  ;;  %v1024_v0 = vsel %vm395_vm0, %v1201_v47, 0.0 }
 0x1bd   : > { %v1049_v51 = vsel %vm395_vm0, %v1038_v46, 0.0  ;;  %1008 = vst.msk [vmem:[%s1786_s26 + $0x28] sm:$0xff] %vm395_vm0, %v991_v49  ;;  %v1020_v52 = vsel %vm395_vm0, %v991_v49, 0.0  ;;  %v1039_v53 = vmul.f32 %v991_v49, %v991_v49 }
 0x1be   : > { %v1050_v55 = vadd.f32 %v1049_v51, %v1048_v43  ;;  %v1021_v56 = vadd.f32 %v1020_v52, %v1019_v48  ;;  %v1055_v5 = vsel %vm395_vm0, %v1041_v58, 0.0 }
 0x1bf   : > { %v1051_v60 = vsel %vm395_vm0, %v1039_v53, 0.0 }
 0x1c0   : > { %v1023_v61 = vadd.f32 %v1022_v57, %v1021_v56  ;;  %v1052_v62 = vadd.f32 %v1051_v60, %v1050_v55 }
 0x1c2   : > { %v1025_v3 = vadd.f32 %v1024_v0, %v1023_v61  ;;  %v1054_v4 = vadd.f32 %v1053_v63, %v1052_v62 }
 0x1c4   : > { %v1026_v6 = vrot.slane %v1025_v3, 4  ;;  %v1056_v7 = vadd.f32 %v1055_v5, %v1054_v4 }
 0x1c6   : > { %v1027_v8 = vadd.f32 %v1026_v6, %v1025_v3  ;;  %v1057_v9 = vrot.slane %v1056_v7, 4 }
 0x1c8   : > { %v1028_v11 = vrot.slane %v1027_v8, 2  ;;  %v1058_v12 = vadd.f32 %v1057_v9, %v1056_v7 }
 0x1ca   : > { %v1029_v13 = vadd.f32 %v1028_v11, %v1027_v8  ;;  %v1059_v14 = vrot.slane %v1058_v12, 2 }
 0x1cc   : > { %v1030_v37 = vrot.slane %v1029_v13, 1  ;;  %v1060_v15 = vadd.f32 %v1059_v14, %v1058_v12 }
 0x1ce   : > { %v1031_v16 = vadd.f32 %v1030_v37, %v1029_v13  ;;  %v1061_v17 = vrot.slane %v1060_v15, 1 }
 0x1d0   : > { %1033 = vst.msk [vmem:[%s235_s30] sm:$0x1] %vm1032_vm11, %v1031_v16  ;;  %v1062_v18 = vadd.f32 %v1061_v17, %v1060_v15 }
 0x1d2   : > { %1063 = vst.msk [vmem:[%s235_s30 + $0x1] sm:$0x1] %vm1032_vm11, %v1062_v18 }
 0x1d3 PF: > { %s16_s18 = sadd.s32 1, %s1402_s18  }
 0x1d4   : > { %p13_p4 = scmp.ge.s32.totalorder %s16_s18, 4  }
 0x1d6   :  { %15 = sbr.rel (!%p13_p4) target bundleno = 1 (0x1), region = 95 }

// kernel: basic_block_forward.3
= control target key start
LH: loop header
LB: loop body
LE: loop exit
PB: predicated region body
PF: predicated region fallthrough
CT: control target
= control target key end

     0   :  { %s3298_s12 = smov 0   ;;  %s4446_s0 = inlined_call_operand.vmem [shape: f32[2,18,18,4], index: 0, kind: input, shape index: {}]   ;;  %s4447_s1 = inlined_call_operand.vmem [shape: bf16[36,8], index: 1, kind: input, shape index: {}]   ;;  %s4448_s2 = inlined_call_operand.vmem [shape: f32[2,256,8], index: 2, kind: output, shape index: {0}]   ;;  %s4449_s3 = inlined_call_operand.vmem [shape: f32[2,2,8], index: 3, kind: output, shape index: {1}]  }
   0x1 LB: > { %s2302_s13 = sadd.s32 4294967295, %s3268_s12   ;;  %p2306_p0 = scmp.ge.s32.totalorder %s3268_s12, 1  ;;  %s3268_s12 = sphi %s3298_s12, %s14_s12  }
   0x2   : > { %p140_p1 = scmp.lt.s32.totalorder %s3268_s12, 3 }
   0x4   : > { %p141_p2 = pnand %p2306_p0, %p140_p1 }
   0x6   : > { %144 = sbr.rel (%p141_p2) target bundleno = 633 (0x279), region = 28 }
   0xd   : > { %p168_p3 = scmp.lt.s32.totalorder %s2302_s13, 1  ;;  %s3270_s18 = smov 4   ;;  %vm1846_vm0 = vcmask 1041408   ;;  %vm1497_vm1 = vcmask 31744   ;;  %vm1530_vm2 = vcmask 64512   ;;  %vm1563_vm3 = vcmask 97280  }
   0xe   : > { %s3271_s19 = smov 8   ;;  %s3272_s20 = smov 12   ;;  %vm1596_vm4 = vcmask 130048   ;;  %vm1629_vm5 = vcmask 162816   ;;  %vm1662_vm6 = vcmask 195584   ;;  %vm1695_vm7 = vcmask 228352  }
   0xf   : > { %s4492_s13 = smov (!%p168_p3, %s2302_s13), 1  ;;  %s3273_s23 = smov 16   ;;  %vm1728_vm8 = vcmask 261120   ;;  %vm1797_vm9 = vcmask 293888   ;;  %vm2112_vm10 = vcmask 57344  }
  0x10   : > { %s2590_s14 = smul.u32 432, %s4492_s13  ;;  %s3274_s26 = smov 20  }
  0x11   : > { %s3275_s29 = smov 24   ;;  %s3276_s30 = smov 28  }
  0x12   : > { %s3312_s17 = scalar_lea.vmem %s4446_s0, %s2590_s14  ;;  %s3277_s4 = smov 32  }
  0x13   : > { %v219_v0 = vld [vmem:[%s3312_s17 + $0x31] sm:$0xff]  ;;  %v220_v1 = vld [vmem:[%s3312_s17 + $0x39] sm:$0xff]  ;;  %v215_v2 = vld [vmem:[%s3312_s17 + $0x1] sm:$0xff]  ;;  %s2524_s5 = sshll.u32 %s4492_s13, 8  ;;  %s2310_s9 = sshll.u32 %s4492_s13, 1 }
  0x14   : > { %v3317_v3 = vpack.i.bf16 %v220_v1, %v219_v0  ;;  %v216_v4 = vld [vmem:[%s3312_s17 + $0x9] sm:$0xff]  ;;  %v222_v6 = vld [vmem:[%s3312_s17 + $0x51] sm:$0xff]  ;;  %v217_v8 = vld [vmem:[%s3312_s17 + $0x19] sm:$0xff]  ;;  %s4309_s8 = scalar_lea.vmem %s4448_s2, %s2524_s5  ;;  %s181_s14 = scalar_lea.vmem %s4449_s3, %s2310_s9 }
  0x15   : > { %v221_v5 = vld [vmem:[%s3312_s17 + $0x49] sm:$0xff]  ;;  %v2607_v7 = vpack.i.bf16 %v216_v4, %v215_v2  ;;  %v218_v9 = vld [vmem:[%s3312_s17 + $0x21] sm:$0xff]  ;;  %v225_v12 = vld [vmem:[%s3312_s17 + $0x79] sm:$0xff] }
  0x16   : > { %2618 = vrot.lane.b32.xlu1 %v3317_v3, %s3270_s18  ;;  %v3326_v10 = vpack.i.bf16 %v222_v6, %v221_v5  ;;  %v3329_v11 = vpack.i.bf16 %v218_v9, %v217_v8  ;;  %v226_v13 = vld [vmem:[%s3312_s17 + $0x81] sm:$0xff]  ;;  %v224_v15 = vld [vmem:[%s3312_s17 + $0x69] sm:$0xff]  ;;  %v230_v19 = vld [vmem:[%s3312_s17 + $0xb1] sm:$0xff] }
  0x17   : > { %2608 = vrot.lane.b32.xlu0 %v2607_v7, %s3270_s18  ;;  %v223_v14 = vld [vmem:[%s3312_s17 + $0x61] sm:$0xff]  ;;  %v3337_v16 = vpack.i.bf16 %v226_v13, %v225_v12  ;;  %v229_v18 = vld [vmem:[%s3312_s17 + $0xa9] sm:$0xff]  ;;  %v227_v20 = vld [vmem:[%s3312_s17 + $0x91] sm:$0xff] }
  0x18   : > { %v3341_v17 = vpack.i.bf16 %v224_v15, %v223_v14  ;;  %v228_v21 = vld [vmem:[%s3312_s17 + $0x99] sm:$0xff]  ;;  %v3349_v22 = vpack.i.bf16 %v230_v19, %v229_v18  ;;  %v234_v25 = vld [vmem:[%s3312_s17 + $0xe1] sm:$0xff]  ;;  %v232_v27 = vld [vmem:[%s3312_s17 + $0xc9] sm:$0xff] }
  0x19   : > { %v3353_v23 = vpack.i.bf16 %v228_v21, %v227_v20  ;;  %v233_v24 = vld [vmem:[%s3312_s17 + $0xd9] sm:$0xff]  ;;  %v231_v26 = vld [vmem:[%s3312_s17 + $0xc1] sm:$0xff]  ;;  %v237_v30 = vld [vmem:[%s3312_s17 + $0x109] sm:$0xff] }
  0x1a   : > { %2623 = vrot.lane.b32.xlu1 %v3326_v10, %s3270_s18  ;;  %v3361_v28 = vpack.i.bf16 %v234_v25, %v233_v24  ;;  %v3365_v29 = vpack.i.bf16 %v232_v27, %v231_v26  ;;  %v238_v31 = vld [vmem:[%s3312_s17 + $0x111] sm:$0xff]  ;;  %v236_v33 = vld [vmem:[%s3312_s17 + $0xf9] sm:$0xff]  ;;  %v242_v37 = vld [vmem:[%s3312_s17 + $0x141] sm:$0xff] }
  0x1b   : > { %2613 = vrot.lane.b32.xlu0 %v3329_v11, %s3270_s18  ;;  %v235_v32 = vld [vmem:[%s3312_s17 + $0xf1] sm:$0xff]  ;;  %v2662_v34 = vpack.i.bf16 %v238_v31, %v237_v30  ;;  %v241_v36 = vld [vmem:[%s3312_s17 + $0x139] sm:$0xff]  ;;  %v239_v38 = vld [vmem:[%s3312_s17 + $0x121] sm:$0xff] }
  0x1c   : > { %v3375_v35 = vpack.i.bf16 %v236_v33, %v235_v32  ;;  %v240_v39 = vld [vmem:[%s3312_s17 + $0x129] sm:$0xff]  ;;  %v2672_v40 = vpack.i.bf16 %v242_v37, %v241_v36  ;;  %v246_v43 = vld [vmem:[%s3312_s17 + $0x171] sm:$0xff]  ;;  %v244_v45 = vld [vmem:[%s3312_s17 + $0x159] sm:$0xff] }
  0x1d   : > { %v2667_v41 = vpack.i.bf16 %v240_v39, %v239_v38  ;;  %v245_v42 = vld [vmem:[%s3312_s17 + $0x169] sm:$0xff]  ;;  %v243_v44 = vld [vmem:[%s3312_s17 + $0x151] sm:$0xff]  ;;  %v249_v48 = vld [vmem:[%s3312_s17 + $0x1a] sm:$0xff] }
  0x1e   : > { %2633 = vrot.lane.b32.xlu1 %v3337_v16, %s3270_s18  ;;  %v2682_v46 = vpack.i.bf16 %v246_v43, %v245_v42  ;;  %v2677_v47 = vpack.i.bf16 %v244_v45, %v243_v44  ;;  %v250_v49 = vld [vmem:[%s3312_s17 + $0x22] sm:$0xff]  ;;  %v248_v51 = vld [vmem:[%s3312_s17 + $0xa] sm:$0xff]  ;;  %v254_v55 = vld [vmem:[%s3312_s17 + $0x52] sm:$0xff] }
  0x1f   : > { %2628 = vrot.lane.b32.xlu0 %v3341_v17, %s3270_s18  ;;  %v247_v50 = vld [vmem:[%s3312_s17 + $0x2] sm:$0xff]  ;;  %v3395_v52 = vpack.i.bf16 %v250_v49, %v249_v48  ;;  %v253_v54 = vld [vmem:[%s3312_s17 + $0x4a] sm:$0xff]  ;;  %v251_v56 = vld [vmem:[%s3312_s17 + $0x32] sm:$0xff] }
  0x20   : > { %v2687_v53 = vpack.i.bf16 %v248_v51, %v247_v50  ;;  %v252_v57 = vld [vmem:[%s3312_s17 + $0x3a] sm:$0xff]  ;;  %v3404_v58 = vpack.i.bf16 %v254_v55, %v253_v54  ;;  %v258_v61 = vld [vmem:[%s3312_s17 + $0x82] sm:$0xff]  ;;  %v256_v63 = vld [vmem:[%s3312_s17 + $0x6a] sm:$0xff] }
  0x21   : > { %v3407_v59 = vpack.i.bf16 %v252_v57, %v251_v56  ;;  %v257_v60 = vld [vmem:[%s3312_s17 + $0x7a] sm:$0xff]  ;;  %v255_v62 = vld [vmem:[%s3312_s17 + $0x62] sm:$0xff]  ;;  %v261_v2 = vld [vmem:[%s3312_s17 + $0xaa] sm:$0xff] }
  0x22   : > { %2643 = vrot.lane.b32.xlu1 %v3349_v22, %s3270_s18  ;;  %v3415_v0 = vpack.i.bf16 %v258_v61, %v257_v60  ;;  %v3419_v1 = vpack.i.bf16 %v256_v63, %v255_v62  ;;  %v262_v4 = vld [vmem:[%s3312_s17 + $0xb2] sm:$0xff]  ;;  %v260_v6 = vld [vmem:[%s3312_s17 + $0x9a] sm:$0xff]  ;;  %v266_v12 = vld [vmem:[%s3312_s17 + $0xe2] sm:$0xff] }
  0x23   : > { %2638 = vrot.lane.b32.xlu0 %v3353_v23, %s3270_s18  ;;  %v259_v5 = vld [vmem:[%s3312_s17 + $0x92] sm:$0xff]  ;;  %v3427_v7 = vpack.i.bf16 %v262_v4, %v261_v2  ;;  %v265_v9 = vld [vmem:[%s3312_s17 + $0xda] sm:$0xff]  ;;  %v263_v13 = vld [vmem:[%s3312_s17 + $0xc2] sm:$0xff] }
  0x24   : > { %v3431_v8 = vpack.i.bf16 %v260_v6, %v259_v5  ;;  %v264_v14 = vld [vmem:[%s3312_s17 + $0xca] sm:$0xff]  ;;  %v3439_v15 = vpack.i.bf16 %v266_v12, %v265_v9  ;;  %v270_v20 = vld [vmem:[%s3312_s17 + $0x112] sm:$0xff]  ;;  %v268_v24 = vld [vmem:[%s3312_s17 + $0xfa] sm:$0xff] }
  0x25   : > { %v3443_v18 = vpack.i.bf16 %v264_v14, %v263_v13  ;;  %v269_v19 = vld [vmem:[%s3312_s17 + $0x10a] sm:$0xff]  ;;  %v267_v21 = vld [vmem:[%s3312_s17 + $0xf2] sm:$0xff]  ;;  %v273_v27 = vld [vmem:[%s3312_s17 + $0x13a] sm:$0xff] }
  0x26   : > { %2653 = vrot.lane.b32.xlu1 %v3361_v28, %s3270_s18  ;;  %v3451_v25 = vpack.i.bf16 %v270_v20, %v269_v19  ;;  %v3455_v26 = vpack.i.bf16 %v268_v24, %v267_v21  ;;  %v274_v30 = vld [vmem:[%s3312_s17 + $0x142] sm:$0xff]  ;;  %v272_v32 = vld [vmem:[%s3312_s17 + $0x12a] sm:$0xff]  ;;  %v278_v37 = vld [vmem:[%s3312_s17 + $0x172] sm:$0xff] }
  0x27   : > { %2648 = vrot.lane.b32.xlu0 %v3365_v29, %s3270_s18  ;;  %v271_v31 = vld [vmem:[%s3312_s17 + $0x122] sm:$0xff]  ;;  %v2752_v33 = vpack.i.bf16 %v274_v30, %v273_v27  ;;  %v277_v36 = vld [vmem:[%s3312_s17 + $0x16a] sm:$0xff]  ;;  %v275_v38 = vld [vmem:[%s3312_s17 + $0x152] sm:$0xff] }
  0x28   : > { %v276_v39 = vld [vmem:[%s3312_s17 + $0x15a] sm:$0xff]  ;;  %v3475_v42 = vld [vmem:[%s3312_s17 + $0x30] sm:$0xff]  ;;  %v3496_v49 = vld [vmem:[%s3312_s17 + $0x68] sm:$0xff] }
  0x29   : > { %v3478_v43 = vld [vmem:[%s3312_s17 + $0x38] sm:$0xff]  ;;  %v3484_v45 = vld [vmem:[%s3312_s17 + $0x20] sm:$0xff]  ;;  %v3499_v50 = vld [vmem:[%s3312_s17 + $0x48] sm:$0xff] }
  0x2a   : > { %2663 = vrot.lane.b32.xlu1 %v2662_v34, %s3270_s18  ;;  %v3465_v34 = vpack.i.bf16 %v272_v32, %v271_v31  ;;  %v3481_v44 = vld [vmem:[%s3312_s17 + $0x18] sm:$0xff]  ;;  %v3493_v48 = vld [vmem:[%s3312_s17 + $0x60] sm:$0xff]  ;;  %v3502_v51 = vld [vmem:[%s3312_s17 + $0x50] sm:$0xff] }
  0x2b   : > { %2658 = vrot.lane.b32.xlu0 %v3375_v35, %s3270_s18  ;;  %v2777_v54 = vpack.i.bf16 %v3502_v51, %v3499_v50  ;;  %v3511_v55 = vld [vmem:[%s3312_s17 + $0x90] sm:$0xff]  ;;  %v3514_v56 = vld [vmem:[%s3312_s17 + $0x98] sm:$0xff]  ;;  %v3520_v60 = vld [vmem:[%s3312_s17 + $0x80] sm:$0xff] }
  0x2c   : > { %v3517_v57 = vld [vmem:[%s3312_s17 + $0x78] sm:$0xff]  ;;  %v2792_v61 = vpack.i.bf16 %v3514_v56, %v3511_v55  ;;  %v2323_v63 = vld [vmem:[%s3312_s17 + $0xa8] sm:$0xff]  ;;  %v2324_v2 = vld [vmem:[%s3312_s17 + $0xb0] sm:$0xff] }
  0x2d   : > { %v2787_v62 = vpack.i.bf16 %v3520_v60, %v3517_v57  ;;  %v2797_v4 = vpack.i.bf16 %v2324_v2, %v2323_v63  ;;  %v3247_v5 = vld [vmem:[%s4447_s1] sm:$0xff]   ;;  %v3248_v6 = vld [vmem:[%s4447_s1 + $0x8] sm:$0xff]   ;;  %v3635_v30 = vld [vmem:[%s3312_s17 + $0x170] sm:$0xff] }
  0x2e   : > { %2673 = vrot.lane.b32.xlu1 %v2672_v40, %s3270_s18  ;;  %v2762_v40 = vpack.i.bf16 %v278_v37, %v277_v36  ;;  %2544 = vmatprep.subr.bf16.mxu0 %v3247_v5  ;;  %v200_v12 = vld [vmem:[%s3312_s17 + $0xc8] sm:$0xff]  ;;  %v3638_v31 = vld [vmem:[%s3312_s17 + $0xd8] sm:$0xff]  ;;  %v3641_v32 = vld [vmem:[%s3312_s17 + $0xe0] sm:$0xff] }
  0x2f   : > { %2668 = vrot.lane.b32.xlu0 %v2667_v41, %s3270_s18  ;;  %v2757_v41 = vpack.i.bf16 %v276_v39, %v275_v38  ;;  %2545 = vmatpush3.bf16.msra.mxu0 %v3247_v5  ;;  %v3632_v27 = vld [vmem:[%s3312_s17 + $0x168] sm:$0xff]  ;;  %4465 = vst [vmem:[#allocation6_spill] sm:$0xff] %v3638_v31  ;;  %4466 = vst [vmem:[#allocation7_spill] sm:$0xff] %v3641_v32 }
  0x30   : > { %2582 = vmatprep.subr.bf16.mxu1 %v3247_v5  ;;  %2546 = vmatprep.subr.bf16.mxu0 %v3248_v6 }
  0x31   : > { %2585 = vmatpush3.bf16.msra.mxu1 %v3247_v5  ;;  %v205_v5 = vld [vmem:[%s3312_s17 + $0x108] sm:$0xff] }
  0x32   : > { %2683 = vrot.lane.b32.xlu1 %v2682_v46, %s3270_s18  ;;  %v2772_v46 = vpack.i.bf16 %v3478_v43, %v3475_v42  ;;  %2583 = vmatprep.subr.bf16.mxu1 %v3248_v6 }
  0x33   : > { %2678 = vrot.lane.b32.xlu0 %v2677_v47, %s3270_s18  ;;  %v2767_v47 = vpack.i.bf16 %v3484_v45, %v3481_v44  ;;  %2547 = vmatpush3.bf16.msra.mxu0 %v3248_v6 }
  0x35   : > { %2586 = vmatpush3.bf16.msra.mxu1 %v3248_v6  ;;  %v206_v6 = vld [vmem:[%s3312_s17 + $0x110] sm:$0xff] }
  0x36   : > { %2693 = vrot.lane.b32.xlu1 %v3395_v52, %s3271_s19 }
  0x37   : > { %2688 = vrot.lane.b32.xlu0 %v2687_v53, %s3271_s19  ;;  %v2782_v53 = vpack.i.bf16 %v3496_v49, %v3493_v48 }
  0x3a   : > { %2703 = vrot.lane.b32.xlu1 %v3404_v58, %s3271_s19 }
  0x3b   : > { %2698 = vrot.lane.b32.xlu0 %v3407_v59, %s3271_s19 }
  0x3e   : > { %2713 = vrot.lane.b32.xlu1 %v3415_v0, %s3271_s19 }
  0x3f   : > { %2708 = vrot.lane.b32.xlu0 %v3419_v1, %s3271_s19 }
  0x42   : > { %2723 = vrot.lane.b32.xlu1 %v3427_v7, %s3271_s19 }
  0x43   : > { %2718 = vrot.lane.b32.xlu0 %v3431_v8, %s3271_s19 }
  0x46   : > { %2733 = vrot.lane.b32.xlu1 %v3439_v15, %s3271_s19 }
  0x47   : > { %2728 = vrot.lane.b32.xlu0 %v3443_v18, %s3271_s19 }
  0x4a   : > { %2743 = vrot.lane.b32.xlu1 %v3451_v25, %s3271_s19 }
  0x4b   : > { %2738 = vrot.lane.b32.xlu0 %v3455_v26, %s3271_s19 }
  0x4e   : > { %2753 = vrot.lane.b32.xlu1 %v2752_v33, %s3271_s19 }
  0x4f   : > { %2748 = vrot.lane.b32.xlu0 %v3465_v34, %s3271_s19 }
  0x52   : > { %2763 = vrot.lane.b32.xlu1 %v2762_v40, %s3271_s19 }
  0x53   : > { %2758 = vrot.lane.b32.xlu0 %v2757_v41, %s3271_s19 }
  0x56   : > { %2773 = vrot.lane.b32.xlu1 %v2772_v46, %s3272_s20 }
  0x57   : > { %2768 = vrot.lane.b32.xlu0 %v2767_v47, %s3272_s20 }
  0x5a   : > { %2783 = vrot.lane.b32.xlu1 %v2782_v53, %s3272_s20 }
  0x5b   : > { %2778 = vrot.lane.b32.xlu0 %v2777_v54, %s3272_s20 }
  0x5e   : > { %2793 = vrot.lane.b32.xlu1 %v2792_v61, %s3272_s20 }
  0x5f   : > { %2788 = vrot.lane.b32.xlu0 %v2787_v62, %s3272_s20 }
  0x62   : > { %2803 = vrot.lane.b32.xlu1 %v3329_v11, %s3273_s23  ;;  %v3249_v11 = vld [vmem:[%s4447_s1 + $0x10] ss:$0 sps:$4 sm:$0x33]  }
  0x63   : > { %2798 = vrot.lane.b32.xlu0 %v2797_v4, %s3272_s20  ;;  %2588 = vmatprep.subr.msk.bf16.mxu0 %vm1846_vm0, %v3249_v11 }
  0x64   : > { %2589 = vmatprep.subr.msk.bf16.mxu1 %vm1846_vm0, %v3249_v11 }
  0x66   : > { %2813 = vrot.lane.b32.xlu1 %v3395_v52, %s3274_s26  ;;  %v1848_v52 = vsel %vm1846_vm0, %v3249_v11, 0 }
  0x67   : > { %2808 = vrot.lane.b32.xlu0 %v3317_v3, %s3273_s23  ;;  %2549 = vmatpush3.bf16.msra.mxu0 %v1848_v52 }
  0x68   : > { %2587 = vmatpush3.bf16.msra.mxu1 %v1848_v52  ;;  %v3042_v52 = vpack.i.bf16 %v206_v6, %v205_v5  ;;  %v3715_v5 = vld [vmem:[%s3312_s17 + $0x158] sm:$0xff] }
  0x6a   : > { %2823 = vrot.lane.b32.xlu1 %v2772_v46, %s3275_s29 }
  0x6b   : > { %2818 = vrot.lane.b32.xlu0 %v3407_v59, %s3274_s26 }
  0x6e   : > { %2833 = vrot.lane.b32.xlu1 %v3317_v3, %s3276_s30 }
  0x6f   : > { %2828 = vrot.lane.b32.xlu0 %v2777_v54, %s3275_s29  ;;  %v204_v54 = vld [vmem:[%s3312_s17 + $0xf8] sm:$0xff] }
  0x72   : > { %2843 = vrot.lane.b32.xlu1 %v3407_v59, %s3277_s4 }
  0x73   : > { %2838 = vrot.lane.b32.xlu0 %v3326_v10, %s3276_s30 }
  0x76   : > { %2853 = vrot.lane.b32.xlu1 %v3326_v10, %s3273_s23 }
  0x77   : > { %2848 = vrot.lane.b32.xlu0 %v3404_v58, %s3277_s4 }
  0x7a   : > { %2863 = vrot.lane.b32.xlu1 %v3404_v58, %s3274_s26 }
  0x7b   : > { %2858 = vrot.lane.b32.xlu0 %v3341_v17, %s3273_s23 }
  0x7e   : > { %2873 = vrot.lane.b32.xlu1 %v2782_v53, %s3275_s29 }
  0x7f   : > { %2868 = vrot.lane.b32.xlu0 %v3419_v1, %s3274_s26 }
  0x82   : > { %2883 = vrot.lane.b32.xlu1 %v3341_v17, %s3276_s30 }
  0x83   : > { %2878 = vrot.lane.b32.xlu0 %v2787_v62, %s3275_s29 }
  0x86   : > { %2893 = vrot.lane.b32.xlu1 %v3419_v1, %s3277_s4 }
  0x87   : > { %2888 = vrot.lane.b32.xlu0 %v3337_v16, %s3276_s30 }
  0x88   : > { %v3576_v3 = vpop.permute.xlu1 %2618 }
  0x89   : > { %v3578_v10 = vpop.permute.xlu0 %2608 }
  0x8a   : > { %2903 = vrot.lane.b32.xlu1 %v3337_v16, %s3273_s23 }
  0x8b   : > { %2898 = vrot.lane.b32.xlu0 %v3415_v0, %s3277_s4 }
  0x8c   : > { %v3584_v17 = vpop.permute.xlu1 %2623 }
  0x8d   : > { %v3586_v58 = vpop.permute.xlu0 %2613 }
  0x8e   : > { %2913 = vrot.lane.b32.xlu1 %v3415_v0, %s3274_s26  ;;  %v199_v0 = vld [vmem:[%s3312_s17 + $0xc0] sm:$0xff] }
  0x8f   : > { %2908 = vrot.lane.b32.xlu0 %v3353_v23, %s3273_s23  ;;  %v2952_v19 = vpack.i.bf16 %v200_v12, %v199_v0  ;;  %v2457_v0 = vld [vmem:[%s3312_s17 + $0x109] sm:$0xff] }
  0x90   : > { %v3592_v59 = vpop.permute.xlu1 %2633 }
  0x91   : > { %v3594_v1 = vpop.permute.xlu0 %2628 }
  0x92   : > { %2923 = vrot.lane.b32.xlu1 %v2792_v61, %s3275_s29 }
  0x93   : > { %2918 = vrot.lane.b32.xlu0 %v3431_v8, %s3274_s26 }
  0x94   : > { %v3599_v16 = vpop.permute.xlu1 %2643 }
  0x95   : > { %v3601_v9 = vpop.permute.xlu0 %2638 }
  0x96   : > { %2933 = vrot.lane.b32.xlu1 %v3353_v23, %s3276_s30 }
  0x97   : > { %2928 = vrot.lane.b32.xlu0 %v2797_v4, %s3275_s29 }
  0x98   : > { %v3608_v13 = vpop.permute.xlu1 %2653 }
  0x99   : > { %v3610_v14 = vpop.permute.xlu0 %2648 }
  0x9a   : > { %2943 = vrot.lane.b32.xlu1 %v3431_v8, %s3277_s4 }
  0x9b   : > { %2938 = vrot.lane.b32.xlu0 %v3349_v22, %s3276_s30 }
  0x9c   : > { %v3616_v23 = vpop.permute.xlu1 %2663 }
  0x9d   : > { %4461 = vst [vmem:[#allocation2_spill] sm:$0xff] %v3616_v23  ;;  %v3618_v20 = vpop.permute.xlu0 %2658  ;;  %v183_v23 = vld [vmem:[%s3312_s17] sm:$0xff] }
  0x9e   : > { %4462 = vst [vmem:[#allocation3_spill] sm:$0xff] %v3618_v20  ;;  %2953 = vrot.lane.b32.xlu1 %v2952_v19, %s3272_s20 }
  0x9f   : > { %2948 = vrot.lane.b32.xlu0 %v3427_v7, %s3277_s4 }
  0xa0   : > { %v3623_v21 = vpop.permute.xlu1 %2673 }
  0xa1   : > { %4463 = vst [vmem:[#allocation4_spill] sm:$0xff] %v3623_v21  ;;  %v3625_v24 = vpop.permute.xlu0 %2668 }
  0xa2   : > { %4464 = vst [vmem:[#allocation5_spill] sm:$0xff] %v3625_v24  ;;  %2963 = vrot.lane.b32.xlu1 %v3365_v29, %s3273_s23 }
  0xa3   : > { %2958 = vrot.lane.b32.xlu0 %v3349_v22, %s3273_s23  ;;  %v2982_v22 = vpack.i.bf16 %v3641_v32, %v3638_v31  ;;  %v184_v32 = vld [vmem:[%s3312_s17 + $0x8] sm:$0xff] }
  0xa4   : > { %v2684_v8 = vpop.permute.xlu1 %2683 }
  0xa5   : > { %v2686_v33 = vunpack.i.h.bf16 %v2684_v8  ;;  %v2685_v36 = vunpack.i.l.bf16 %v2684_v8  ;;  %v2679_v37 = vpop.permute.xlu0 %2678 }
  0xa6   : > { %2973 = vrot.lane.b32.xlu1 %v3443_v18, %s3274_s26 }
  0xa7   : > { %v1528_v38 = vsel %vm1497_vm1, %v3632_v27, %v2685_v36  ;;  %v1529_v39 = vsel %vm1497_vm1, %v3635_v30, %v2686_v33  ;;  %2968 = vrot.lane.b32.xlu0 %v3427_v7, %s3274_s26  ;;  %v203_v7 = vld [vmem:[%s3312_s17 + $0xf0] sm:$0xff]  ;;  %v2681_v36 = vunpack.i.h.bf16 %v2679_v37 }
  0xa8   : > { %v3653_v40 = vpop.permute.xlu1 %2693  ;;  %v3012_v62 = vpack.i.bf16 %v204_v54, %v203_v7  ;;  %v3712_v54 = vld [vmem:[%s3312_s17 + $0x150] sm:$0xff] }
  0xa9   : > { %v3655_v41 = vpop.permute.xlu0 %2688 }
  0xaa   : > { %2983 = vrot.lane.b32.xlu1 %v2982_v22, %s3275_s29  ;;  %v2690_v31 = vunpack.i.l.bf16 %v3655_v41 }
  0xab   : > { %2978 = vrot.lane.b32.xlu0 %v2952_v19, %s3275_s29  ;;  %v2456_v19 = vld [vmem:[%s3312_s17 + $0xf9] sm:$0xff] }
  0xac   : > { %v3659_v46 = vpop.permute.xlu1 %2703 }
  0xad   : > { %v3661_v47 = vpop.permute.xlu0 %2698 }
  0xae   : > { %2993 = vrot.lane.b32.xlu1 %v3361_v28, %s3276_s30 }
  0xaf   : > { %2988 = vrot.lane.b32.xlu0 %v3365_v29, %s3276_s30 }
  0xb0   : > { %v3667_v53 = vpop.permute.xlu1 %2713 }
  0xb1   : > { %v3671_v61 = vpop.permute.xlu0 %2708 }
  0xb2   : > { %3003 = vrot.lane.b32.xlu1 %v3439_v15, %s3277_s4 }
  0xb3   : > { %2998 = vrot.lane.b32.xlu0 %v3443_v18, %s3277_s4 }
  0xb4   : > { %v3677_v63 = vpop.permute.xlu1 %2723 }
  0xb5   : > { %v3679_v29 = vpop.permute.xlu0 %2718 }
  0xb6   : > { %3013 = vrot.lane.b32.xlu1 %v3012_v62, %s3272_s20 }
  0xb7   : > { %3008 = vrot.lane.b32.xlu0 %v2982_v22, %s3272_s20  ;;  %v2680_v22 = vunpack.i.l.bf16 %v2679_v37 }
  0xb8   : > { %v3683_v2 = vpop.permute.xlu1 %2733 }
  0xb9   : > { %v3685_v4 = vpop.permute.xlu0 %2728  ;;  %v1526_v37 = vsel %vm1497_vm1, %v3712_v54, %v2680_v22  ;;  %v207_v22 = vld [vmem:[%s3312_s17 + $0x120] sm:$0xff] }
  0xba   : > { %4467 = vst [vmem:[#allocation8_spill] sm:$0xff] %v3685_v4  ;;  %3023 = vrot.lane.b32.xlu1 %v3375_v35, %s3273_s23  ;;  %v2458_v35 = vld [vmem:[%s3312_s17 + $0x111] sm:$0xff] }
  0xbb   : > { %3018 = vrot.lane.b32.xlu0 %v3361_v28, %s3273_s23  ;;  %v2455_v28 = vld [vmem:[%s3312_s17 + $0xf1] sm:$0xff]  ;;  %v3052_v33 = vpack.i.bf16 %v2458_v35, %v2457_v0 }
  0xbc   : > { %v3691_v18 = vpop.permute.xlu1 %2743  ;;  %v3047_v7 = vpack.i.bf16 %v2456_v19, %v2455_v28 }
  0xbd   : > { %4468 = vst [vmem:[#allocation9_spill] sm:$0xff] %v3691_v18  ;;  %v3695_v11 = vpop.permute.xlu0 %2738 }
  0xbe   : > { %4469 = vst [vmem:[#allocation10_spill] sm:$0xff] %v3695_v11  ;;  %3033 = vrot.lane.b32.xlu1 %v3455_v26, %s3274_s26 }
  0xbf   : > { %3028 = vrot.lane.b32.xlu0 %v3439_v15, %s3274_s26 }
  0xc0   : > { %v3703_v12 = vpop.permute.xlu1 %2753 }
  0xc1   : > { %4470 = vst [vmem:[#allocation11_spill] sm:$0xff] %v3703_v12  ;;  %v3707_v8 = vpop.permute.xlu0 %2748 }
  0xc2   : > { %4471 = vst [vmem:[#allocation12_spill] sm:$0xff] %v3707_v8  ;;  %3043 = vrot.lane.b32.xlu1 %v3042_v52, %s3275_s29 }
  0xc3   : > { %3038 = vrot.lane.b32.xlu0 %v3012_v62, %s3275_s29  ;;  %v1527_v62 = vsel %vm1497_vm1, %v3715_v5, %v2681_v36  ;;  %v208_v36 = vld [vmem:[%s3312_s17 + $0x128] sm:$0xff] }
  0xc4   : > { %v2764_v15 = vpop.permute.xlu1 %2763 }
  0xc5   : > { %v2766_v6 = vunpack.i.h.bf16 %v2764_v15  ;;  %v2765_v12 = vunpack.i.l.bf16 %v2764_v15  ;;  %v2759_v24 = vpop.permute.xlu0 %2758 }
  0xc6   : > { %v2761_v8 = vunpack.i.h.bf16 %v2759_v24  ;;  %v2760_v21 = vunpack.i.l.bf16 %v2759_v24  ;;  %3053 = vrot.lane.b32.xlu1 %v3052_v33, %s3276_s30 }
  0xc7   : > { %v3723_v0 = vsel %vm1530_vm2, %v1528_v38, %v2765_v12  ;;  %v3726_v35 = vsel %vm1530_vm2, %v1529_v39, %v2766_v6  ;;  %3048 = vrot.lane.b32.xlu0 %v3047_v7, %s3276_s30  ;;  %v3072_v38 = vpack.i.bf16 %v208_v36, %v207_v22  ;;  %v2366_v39 = vld [vmem:[%s3312_s17 + $0x129] sm:$0xff]  ;;  %v2640_v22 = vunpack.i.l.bf16 %v3601_v9 }
  0xc8   : > { %4472 = vst [vmem:[#allocation13_spill] sm:$0xff] %v3723_v0  ;;  %4473 = vst [vmem:[#allocation14_spill] sm:$0xff] %v3726_v35  ;;  %v3730_v24 = vsel %vm1530_vm2, %v1526_v37, %v2760_v21  ;;  %v3733_v28 = vsel %vm1530_vm2, %v1527_v62, %v2761_v8  ;;  %v3735_v19 = vpop.permute.xlu1 %2773  ;;  %v2365_v21 = vld [vmem:[%s3312_s17 + $0x121] sm:$0xff]  ;;  %v2396_v37 = vld [vmem:[%s3312_s17 + $0x112] sm:$0xff]  ;;  %v2721_v36 = vunpack.i.h.bf16 %v3679_v29 }
  0xc9   : > { %4474 = vst [vmem:[#allocation15_spill] sm:$0xff] %v3730_v24  ;;  %4475 = vst [vmem:[#allocation16_spill] sm:$0xff] %v3733_v28  ;;  %v3739_v15 = vpop.permute.xlu0 %2768  ;;  %v3752_v7 = vpack.i.bf16 %v2366_v39, %v2365_v21  ;;  %v209_v39 = vld [vmem:[%s3312_s17 + $0x138] sm:$0xff]  ;;  %v210_v28 = vld [vmem:[%s3312_s17 + $0x140] sm:$0xff]  ;;  %v1510_v0 = vsel %vm1497_vm1, %v3511_v55, %v2640_v22 }
  0xca   : > { %3063 = vrot.lane.b32.xlu1 %v3451_v25, %s3277_s4  ;;  %v2395_v25 = vld [vmem:[%s3312_s17 + $0x10a] sm:$0xff]  ;;  %v3772_v35 = vpack.i.bf16 %v210_v28, %v209_v39  ;;  %v2494_v55 = vld [vmem:[%s3312_s17 + $0x142] sm:$0xff] }
  0xcb   : > { %3058 = vrot.lane.b32.xlu0 %v3455_v26, %s3277_s4  ;;  %v2641_v26 = vunpack.i.h.bf16 %v3601_v9  ;;  %v3087_v21 = vpack.i.bf16 %v2396_v37, %v2395_v25  ;;  %v2462_v25 = vld [vmem:[%s3312_s17 + $0x141] sm:$0xff]  ;;  %v2369_v39 = vld [vmem:[%s3312_s17 + $0x151] sm:$0xff] }
  0xcc   : > { %v3747_v12 = vpop.permute.xlu1 %2783  ;;  %v2493_v37 = vld [vmem:[%s3312_s17 + $0x13a] sm:$0xff] }
  0xcd   : > { %v3749_v8 = vpop.permute.xlu0 %2778  ;;  %v1511_v11 = vsel %vm1497_vm1, %v3514_v56, %v2641_v26  ;;  %v3788_v56 = vld [vmem:[%s3312_s17 + $0x122] sm:$0xff]  ;;  %v3791_v26 = vld [vmem:[%s3312_s17 + $0x12a] sm:$0xff] }
  0xce   : > { %3073 = vrot.lane.b32.xlu1 %v3072_v38, %s3272_s20  ;;  %v1544_v28 = vsel %vm1530_vm2, %v1511_v11, %v2721_v36  ;;  %v2611_v11 = vunpack.i.h.bf16 %v3578_v10  ;;  %v2610_v36 = vunpack.i.l.bf16 %v3578_v10  ;;  %v3117_v10 = vpack.i.bf16 %v3791_v26, %v3788_v56 }
  0xcf   : > { %3068 = vrot.lane.b32.xlu0 %v3042_v52, %s3272_s20  ;;  %v2720_v52 = vunpack.i.l.bf16 %v3679_v29 }
  0xd0   : > { %v3755_v6 = vpop.permute.xlu1 %2793  ;;  %v1498_v56 = vsel %vm1497_vm1, %v183_v23, %v2610_v36  ;;  %v1499_v26 = vsel %vm1497_vm1, %v184_v32, %v2611_v11 }
  0xd1   : > { %v3759_v62 = vpop.permute.xlu0 %2788  ;;  %v1543_v20 = vsel %vm1530_vm2, %v1510_v0, %v2720_v52 }
  0xd2   : > { %3083 = vrot.lane.b32.xlu1 %v3752_v7, %s3273_s23 }
  0xd3   : > { %3078 = vrot.lane.b32.xlu0 %v3052_v33, %s3273_s23  ;;  %v2461_v33 = vld [vmem:[%s3312_s17 + $0x139] sm:$0xff] }
  0xd4   : > { %v3770_v24 = vpop.permute.xlu1 %2803 }
  0xd5   : > { %v2799_v9 = vpop.permute.xlu0 %2798  ;;  %v2805_v11 = vunpack.i.l.bf16 %v3770_v24 }
  0xd6   : > { %v2801_v29 = vunpack.i.h.bf16 %v2799_v9  ;;  %v2800_v18 = vunpack.i.l.bf16 %v2799_v9  ;;  %3093 = vrot.lane.b32.xlu1 %v3465_v34, %s3274_s26  ;;  %v2370_v9 = vld [vmem:[%s3312_s17 + $0x159] sm:$0xff] }
  0xd7   : > { %3088 = vrot.lane.b32.xlu0 %v3087_v21, %s3274_s26  ;;  %v3805_v21 = vpack.i.bf16 %v2462_v25, %v2461_v33  ;;  %v2696_v33 = vunpack.i.h.bf16 %v3653_v40  ;;  %v2695_v25 = vunpack.i.l.bf16 %v3653_v40  ;;  %v2776_v40 = vunpack.i.h.bf16 %v3735_v19 }
  0xd8   : > { %v3794_v34 = vsel %vm1563_vm3, %v1543_v20, %v2800_v18  ;;  %v3797_v0 = vsel %vm1563_vm3, %v1544_v28, %v2801_v29  ;;  %v3799_v22 = vpop.permute.xlu1 %2813  ;;  %v2616_v20 = vunpack.i.h.bf16 %v3586_v58  ;;  %v2615_v18 = vunpack.i.l.bf16 %v3586_v58 }
  0xd9   : > { %v3803_v52 = vpop.permute.xlu0 %2808  ;;  %v3815_v29 = vpack.i.bf16 %v2494_v55, %v2493_v37  ;;  %v3824_v28 = vpack.i.bf16 %v3715_v5, %v3712_v54  ;;  %v2691_v58 = vunpack.i.h.bf16 %v3655_v41  ;;  %v3828_v55 = vpack.i.bf16 %v2370_v9, %v2369_v39 }
  0xda   : > { %3103 = vrot.lane.b32.xlu1 %v3772_v35, %s3275_s29  ;;  %v1500_v54 = vsel %vm1497_vm1, %v3481_v44, %v2615_v18  ;;  %v1501_v5 = vsel %vm1497_vm1, %v3484_v45, %v2616_v20  ;;  %v2771_v41 = vunpack.i.h.bf16 %v3739_v15  ;;  %v2770_v39 = vunpack.i.l.bf16 %v3739_v15 }
  0xdb   : > { %3098 = vrot.lane.b32.xlu0 %v3072_v38, %s3275_s29  ;;  %v2775_v38 = vunpack.i.l.bf16 %v3735_v19  ;;  %v1533_v23 = vsel %vm1530_vm2, %v1500_v54, %v2695_v25  ;;  %v1534_v32 = vsel %vm1530_vm2, %v1501_v5, %v2696_v33  ;;  %v2806_v19 = vunpack.i.h.bf16 %v3770_v24 }
  0xdc   : > { %v2824_v37 = vpop.permute.xlu1 %2823  ;;  %v1531_v44 = vsel %vm1530_vm2, %v1498_v56, %v2690_v31  ;;  %v1532_v45 = vsel %vm1530_vm2, %v1499_v26, %v2691_v58  ;;  %v2816_v15 = vunpack.i.h.bf16 %v3799_v22  ;;  %v2815_v36 = vunpack.i.l.bf16 %v3799_v22 }
  0xdd   : > { %v2819_v4 = vpop.permute.xlu0 %2818  ;;  %v1566_v20 = vsel %vm1563_vm3, %v1533_v23, %v2775_v38  ;;  %v1567_v18 = vsel %vm1563_vm3, %v1534_v32, %v2776_v40  ;;  %v2826_v33 = vunpack.i.h.bf16 %v2824_v37  ;;  %v2825_v25 = vunpack.i.l.bf16 %v2824_v37 }
  0xde   : > { %3113 = vrot.lane.b32.xlu1 %v3805_v21, %s3276_s30  ;;  %v1564_v54 = vsel %vm1563_vm3, %v1531_v44, %v2770_v39  ;;  %v2811_v56 = vunpack.i.h.bf16 %v3803_v52  ;;  %v2810_v26 = vunpack.i.l.bf16 %v3803_v52  ;;  %v2821_v38 = vunpack.i.h.bf16 %v2819_v4 }
  0xdf   : > { %3108 = vrot.lane.b32.xlu0 %v3752_v7, %s3276_s30  ;;  %v1565_v7 = vsel %vm1563_vm3, %v1532_v45, %v2771_v41  ;;  %v1597_v58 = vsel %vm1596_vm4, %v1564_v54, %v2805_v11  ;;  %v2820_v41 = vunpack.i.l.bf16 %v2819_v4 }
  0xe0   : > { %v2834_v9 = vpop.permute.xlu1 %2833  ;;  %v1598_v22 = vsel %vm1596_vm4, %v1565_v7, %v2806_v19  ;;  %v1630_v37 = vsel %vm1629_vm5, %v1597_v58, %v2815_v36  ;;  %v1600_v7 = vsel %vm1596_vm4, %v1567_v18, %v2811_v56 }
  0xe1   : > { %v2829_v24 = vpop.permute.xlu0 %2828  ;;  %v2836_v5 = vunpack.i.h.bf16 %v2834_v9  ;;  %v2835_v31 = vunpack.i.l.bf16 %v2834_v9  ;;  %v1631_v40 = vsel %vm1629_vm5, %v1598_v22, %v2816_v15  ;;  %v1663_v23 = vsel %vm1662_vm6, %v1630_v37, %v2825_v25  ;;  %v2401_v15 = vld [vmem:[%s3312_s17 + $0x152] sm:$0xff]  ;;  %v2402_v9 = vld [vmem:[%s3312_s17 + $0x15a] sm:$0xff] }
  0xe2   : > { %3123 = vrot.lane.b32.xlu1 %v3815_v29, %s3277_s4  ;;  %v1664_v32 = vsel %vm1662_vm6, %v1631_v40, %v2826_v33  ;;  %v2831_v45 = vunpack.i.h.bf16 %v2829_v24  ;;  %v2830_v52 = vunpack.i.l.bf16 %v2829_v24  ;;  %v1599_v24 = vsel %vm1596_vm4, %v1566_v20, %v2810_v26 }
  0xe3   : > { %3118 = vrot.lane.b32.xlu0 %v3117_v10, %s3277_s4  ;;  %v1696_v10 = vsel %vm1695_vm7, %v1663_v23, %v2835_v31  ;;  %v1697_v36 = vsel %vm1695_vm7, %v1664_v32, %v2836_v5  ;;  %v1632_v5 = vsel %vm1629_vm5, %v1599_v24, %v2820_v41  ;;  %v1633_v22 = vsel %vm1629_vm5, %v1600_v7, %v2821_v38  ;;  %v2465_v32 = vld [vmem:[%s3312_s17 + $0x169] sm:$0xff] }
  0xe4   : > { %v2844_v39 = vpop.permute.xlu1 %2843  ;;  %v1665_v40 = vsel %vm1662_vm6, %v1632_v5, %v2830_v52  ;;  %v2700_v24 = vunpack.i.l.bf16 %v3661_v47  ;;  %v2785_v5 = vunpack.i.l.bf16 %v3747_v12 }
  0xe5   : > { %v2846_v19 = vunpack.i.h.bf16 %v2844_v39  ;;  %v2845_v11 = vunpack.i.l.bf16 %v2844_v39  ;;  %v2839_v44 = vpop.permute.xlu0 %2838  ;;  %v1666_v39 = vsel %vm1662_vm6, %v1633_v22, %v2831_v45  ;;  %v2620_v45 = vunpack.i.l.bf16 %v3576_v3 }
  0xe6   : > { %3133 = vrot.lane.b32.xlu1 %v3824_v28, %s3272_s20  ;;  %v2841_v4 = vunpack.i.h.bf16 %v2839_v44  ;;  %v2840_v54 = vunpack.i.l.bf16 %v2839_v44  ;;  %v2621_v44 = vunpack.i.h.bf16 %v3576_v3  ;;  %v2705_v3 = vunpack.i.l.bf16 %v3659_v46 }
  0xe7   : > { %3128 = vrot.lane.b32.xlu0 %v3772_v35, %s3272_s20  ;;  %v1729_v33 = vsel %vm1728_vm8, %v1696_v10, %v2845_v11  ;;  %v1730_v25 = vsel %vm1728_vm8, %v1697_v36, %v2846_v19  ;;  %v3883_v35 = vpack.i.bf16 %v2402_v9, %v2401_v15  ;;  %v2466_v19 = vld [vmem:[%s3312_s17 + $0x171] sm:$0xff]  ;;  %v2341_v15 = vld [vmem:[%s3312_s17 + $0x180] sm:$0xff]  ;;  %v2342_v9 = vld [vmem:[%s3312_s17 + $0x188] sm:$0xff] }
  0xe8   : > { %v3879_v58 = vpop.permute.xlu1 %2853  ;;  %v1761_v31 = vpack.c.bf16 %v1730_v25, %v1729_v33  ;;  %v1698_v18 = vsel %vm1695_vm7, %v1665_v40, %v2840_v54  ;;  %v1699_v56 = vsel %vm1695_vm7, %v1666_v39, %v2841_v4  ;;  %v2497_v11 = vld [vmem:[%s3312_s17 + $0x16a] sm:$0xff]  ;;  %v2498_v36 = vld [vmem:[%s3312_s17 + $0x172] sm:$0xff]  ;;  %v2625_v4 = vunpack.i.l.bf16 %v3584_v17 }
  0xe9   : > { %v2849_v37 = vpop.permute.xlu0 %2848  ;;  %v3914_v54 = vpack.i.bf16 %v3635_v30, %v3632_v27  ;;  %v2706_v33 = vunpack.i.h.bf16 %v3659_v46  ;;  %v3921_v25 = vpack.i.bf16 %v2466_v19, %v2465_v32  ;;  %v3927_v27 = vpack.i.bf16 %v2342_v9, %v2341_v15 }
  0xea   : > { %v2851_v20 = vunpack.i.h.bf16 %v2849_v37  ;;  %v2850_v26 = vunpack.i.l.bf16 %v2849_v37  ;;  %3143 = vrot.lane.b32.xlu1 %v3828_v55, %s3273_s23  ;;  %2550 = vmatprep.mubr.msk.bf16.mxu0 %vm1797_vm9, %v1761_v31  ;;  %v3925_v31 = vpack.i.bf16 %v2498_v36, %v2497_v11  ;;  %v1502_v30 = vsel %vm1497_vm1, %v3475_v42, %v2620_v45 }
  0xeb   : > { %3138 = vrot.lane.b32.xlu0 %v3805_v21, %s3273_s23  ;;  %v2626_v21 = vunpack.i.h.bf16 %v3584_v17  ;;  %v2701_v17 = vunpack.i.h.bf16 %v3661_v47  ;;  %v1503_v46 = vsel %vm1497_vm1, %v3478_v43, %v2621_v44  ;;  %v1504_v37 = vsel %vm1497_vm1, %v3499_v50, %v2625_v4 }
  0xec   : > { %v1731_v38 = vsel %vm1728_vm8, %v1698_v18, %v2850_v26  ;;  %v1732_v41 = vsel %vm1728_vm8, %v1699_v56, %v2851_v20  ;;  %v3896_v23 = vpop.permute.xlu1 %2863  ;;  %v2781_v40 = vunpack.i.h.bf16 %v3749_v8  ;;  %v2780_v39 = vunpack.i.l.bf16 %v3749_v8 }
  0xed   : > { %v1762_v52 = vpack.c.bf16 %v1732_v41, %v1731_v38  ;;  %v3903_v10 = vpop.permute.xlu0 %2858  ;;  %v1505_v47 = vsel %vm1497_vm1, %v3502_v51, %v2626_v21  ;;  %v1537_v42 = vsel %vm1530_vm2, %v1504_v37, %v2705_v3  ;;  %v2855_v20 = vunpack.i.l.bf16 %v3879_v58  ;;  %v2374_v37 = vld [vmem:[%s3312_s17 + $0x189] sm:$0xff] }
  0xee   : > { %3153 = vrot.lane.b32.xlu1 %v3883_v35, %s3274_s26  ;;  %v1538_v43 = vsel %vm1530_vm2, %v1505_v47, %v2706_v33  ;;  %v1535_v50 = vsel %vm1530_vm2, %v1502_v30, %v2700_v24  ;;  %v1536_v51 = vsel %vm1530_vm2, %v1503_v46, %v2701_v17  ;;  %v2866_v8 = vunpack.i.h.bf16 %v3896_v23 }
  0xef   : > { %3148 = vrot.lane.b32.xlu0 %v3815_v29, %s3274_s26  ;;  %2551 = vmatmul.mubr.msk.bf16.vlgmr.msra.gmra.mrb[0].mxu0 %vm1797_vm9, %v1762_v52  ;;  %v2786_v29 = vunpack.i.h.bf16 %v3747_v12  ;;  %v2856_v12 = vunpack.i.h.bf16 %v3879_v58  ;;  %v2865_v26 = vunpack.i.l.bf16 %v3896_v23  ;;  %v1570_v56 = vsel %vm1563_vm3, %v1537_v42, %v2785_v5  ;;  %v2373_v5 = vld [vmem:[%s3312_s17 + $0x181] sm:$0xff] }
  0xf0   : > { %v2874_v7 = vpop.permute.xlu1 %2873  ;;  %v1568_v58 = vsel %vm1563_vm3, %v1535_v50, %v2780_v39  ;;  %v2861_v52 = vunpack.i.h.bf16 %v3903_v10  ;;  %v2860_v36 = vunpack.i.l.bf16 %v3903_v10 }
  0xf1   : > { %v2869_v22 = vpop.permute.xlu0 %2868  ;;  %v1571_v38 = vsel %vm1563_vm3, %v1538_v43, %v2786_v29  ;;  %v2876_v41 = vunpack.i.h.bf16 %v2874_v7  ;;  %v2875_v32 = vunpack.i.l.bf16 %v2874_v7  ;;  %v1601_v45 = vsel %vm1596_vm4, %v1568_v58, %v2855_v20  ;;  %v2406_v58 = vld [vmem:[%s3312_s17 + $0x18a] sm:$0xff] }
  0xf2   : > { %3163 = vrot.lane.b32.xlu1 %v3914_v54, %s3275_s29  ;;  %v1634_v15 = vsel %vm1629_vm5, %v1601_v45, %v2865_v26  ;;  %v2871_v21 = vunpack.i.h.bf16 %v2869_v22  ;;  %v2870_v4 = vunpack.i.l.bf16 %v2869_v22  ;;  %v1603_v42 = vsel %vm1596_vm4, %v1570_v56, %v2860_v36  ;;  %v2437_v45 = vld [vmem:[%s3312_s17 + $0x198] sm:$0xff] }
  0xf3   : > { %3158 = vrot.lane.b32.xlu0 %v3824_v28, %s3275_s29  ;;  %v1569_v28 = vsel %vm1563_vm3, %v1536_v51, %v2781_v40  ;;  %v1667_v3 = vsel %vm1662_vm6, %v1634_v15, %v2875_v32  ;;  %v1604_v43 = vsel %vm1596_vm4, %v1571_v38, %v2861_v52  ;;  %v3985_v26 = vpack.i.bf16 %v2374_v37, %v2373_v5  ;;  %v4005_v52 = vld [vmem:[%s3312_s17 + $0x199] sm:$0xff] }
  0xf4   : > { %v2884_v18 = vpop.permute.xlu1 %2883  ;;  %v1602_v23 = vsel %vm1596_vm4, %v1569_v28, %v2856_v12  ;;  %v1636_v50 = vsel %vm1629_vm5, %v1603_v42, %v2870_v4  ;;  %v1637_v51 = vsel %vm1629_vm5, %v1604_v43, %v2871_v21  ;;  %v2636_v36 = vunpack.i.h.bf16 %v3592_v59  ;;  %v4015_v4 = vld [vmem:[%s3312_s17 + $0x19a] sm:$0xff] }
  0xf5   : > { %v2879_v19 = vpop.permute.xlu0 %2878  ;;  %v2886_v11 = vunpack.i.h.bf16 %v2884_v18  ;;  %v2885_v44 = vunpack.i.l.bf16 %v2884_v18  ;;  %v1635_v9 = vsel %vm1629_vm5, %v1602_v23, %v2866_v8  ;;  %v2438_v23 = vld [vmem:[%s3312_s17 + $0x1a0] sm:$0xff]  ;;  %v2635_v15 = vunpack.i.l.bf16 %v3592_v59 }
  0xf6   : > { %3173 = vrot.lane.b32.xlu1 %v3921_v25, %s3276_s30  ;;  %v1668_v17 = vsel %vm1662_vm6, %v1635_v9, %v2876_v41  ;;  %v2881_v46 = vunpack.i.h.bf16 %v2879_v19  ;;  %v2880_v29 = vunpack.i.l.bf16 %v2879_v19  ;;  %v2405_v19 = vld [vmem:[%s3312_s17 + $0x182] sm:$0xff]  ;;  %v2716_v59 = vunpack.i.h.bf16 %v3667_v53 }
  0xf7   : > { %3168 = vrot.lane.b32.xlu0 %v3828_v55, %s3276_s30  ;;  %v1700_v10 = vsel %vm1695_vm7, %v1667_v3, %v2885_v44  ;;  %v1701_v55 = vsel %vm1695_vm7, %v1668_v17, %v2886_v11  ;;  %v2631_v3 = vunpack.i.h.bf16 %v3594_v1  ;;  %v2630_v17 = vunpack.i.l.bf16 %v3594_v1 }
  0xf8   : > { %v2894_v33 = vpop.permute.xlu1 %2893  ;;  %v1670_v18 = vsel %vm1662_vm6, %v1637_v51, %v2881_v46  ;;  %v2796_v5 = vunpack.i.h.bf16 %v3755_v6  ;;  %v2795_v37 = vunpack.i.l.bf16 %v3755_v6 }
  0xf9   : > { %v2896_v24 = vunpack.i.h.bf16 %v2894_v33  ;;  %v2895_v7 = vunpack.i.l.bf16 %v2894_v33  ;;  %v2889_v30 = vpop.permute.xlu0 %2888  ;;  %v4018_v33 = vld [vmem:[%s3312_s17 + $0x1a2] sm:$0xff] }
  0xfa   : > { %3183 = vrot.lane.b32.xlu1 %v3925_v31, %s3277_s4  ;;  %v2891_v40 = vunpack.i.h.bf16 %v2889_v30  ;;  %v2890_v39 = vunpack.i.l.bf16 %v2889_v30  ;;  %v3222_v30 = vpack.i.bf16 %v2438_v23, %v2437_v45 }
  0xfb   : > { %v1733_v22 = vsel %vm1728_vm8, %v1700_v10, %v2895_v7  ;;  %v1734_v47 = vsel %vm1728_vm8, %v1701_v55, %v2896_v24  ;;  %3178 = vrot.lane.b32.xlu0 %v3883_v35, %s3277_s4  ;;  %v1669_v35 = vsel %vm1662_vm6, %v1636_v50, %v2880_v29  ;;  %v4024_v24 = vpack.i.bf16 %v2406_v58, %v2405_v19 }
  0xfc   : > { %v1763_v12 = vpack.c.bf16 %v1734_v47, %v1733_v22  ;;  %v3981_v20 = vpop.permute.xlu1 %2903  ;;  %v1702_v41 = vsel %vm1695_vm7, %v1669_v35, %v2890_v39  ;;  %v1703_v32 = vsel %vm1695_vm7, %v1670_v18, %v2891_v40  ;;  %v2715_v7 = vunpack.i.l.bf16 %v3667_v53 }
  0xfd   : > { %v2899_v8 = vpop.permute.xlu0 %2898  ;;  %v2711_v10 = vunpack.i.h.bf16 %v3671_v61  ;;  %v2710_v55 = vunpack.i.l.bf16 %v3671_v61  ;;  %v3242_v29 = vpack.i.bf16 %v4018_v33, %v4015_v4  ;;  %v1508_v53 = vsel %vm1497_vm1, %v3517_v57, %v2635_v15 }
  0xfe   : > { %v2901_v56 = vunpack.i.h.bf16 %v2899_v8  ;;  %v2900_v38 = vunpack.i.l.bf16 %v2899_v8  ;;  %3193 = vrot.lane.b32.xlu1 %v3927_v27, %s3272_s20  ;;  %2554 = vmatprep.mubr.msk.bf16.mxu0 %vm1797_vm9, %v1763_v12  ;;  %v1506_v61 = vsel %vm1497_vm1, %v3493_v48, %v2630_v17  ;;  %v1507_v47 = vsel %vm1497_vm1, %v3496_v49, %v2631_v3 }
  0xff   : > { %3188 = vrot.lane.b32.xlu0 %v3914_v54, %s3272_s20  ;;  %v4012_v54 = vld [vmem:[%s3312_s17 + $0x1a1] sm:$0xff]  ;;  %v2791_v40 = vunpack.i.h.bf16 %v3759_v62  ;;  %v2790_v39 = vunpack.i.l.bf16 %v3759_v62  ;;  %v1541_v57 = vsel %vm1530_vm2, %v1508_v53, %v2715_v7  ;;  %v2906_v6 = vunpack.i.h.bf16 %v3981_v20 }
 0x100   : > { %v1735_v28 = vsel %vm1728_vm8, %v1702_v41, %v2900_v38  ;;  %v1736_v11 = vsel %vm1728_vm8, %v1703_v32, %v2901_v56  ;;  %v4000_v44 = vpop.permute.xlu1 %2913  ;;  %v3232_v46 = vpack.i.bf16 %v4012_v54, %v4005_v52  ;;  %v2905_v42 = vunpack.i.l.bf16 %v3981_v20 }
 0x101   : > { %v1764_v9 = vpack.c.bf16 %v1736_v11, %v1735_v28  ;;  %v4009_v21 = vpop.permute.xlu0 %2908  ;;  %v1539_v48 = vsel %vm1530_vm2, %v1506_v61, %v2710_v55  ;;  %v1540_v49 = vsel %vm1530_vm2, %v1507_v47, %v2711_v10  ;;  %v2916_v62 = vunpack.i.h.bf16 %v4000_v44 }
 0x102   : > { %3203 = vrot.lane.b32.xlu1 %v3985_v26, %s3273_s23  ;;  %v2915_v43 = vunpack.i.l.bf16 %v4000_v44  ;;  %v1574_v50 = vsel %vm1563_vm3, %v1541_v57, %v2795_v37  ;;  %v1572_v20 = vsel %vm1563_vm3, %v1539_v48, %v2790_v39  ;;  %v2911_v19 = vunpack.i.h.bf16 %v4009_v21 }
 0x103   : > { %3198 = vrot.lane.b32.xlu0 %v3921_v25, %s3273_s23  ;;  %2555 = vmatmul.mubr.msk.bf16.gmra.mrb[4].mxu0 %vm1797_vm9, %v1764_v9  ;;  %v1509_v25 = vsel %vm1497_vm1, %v3520_v60, %v2636_v36  ;;  %v1605_v41 = vsel %vm1596_vm4, %v1572_v20, %v2905_v42  ;;  %v2910_v58 = vunpack.i.l.bf16 %v4009_v21  ;;  %v2646_v33 = vunpack.i.h.bf16 %v3599_v16 }
 0x104   : > { %v2924_v1 = vpop.permute.xlu1 %2923  ;;  %v1542_v60 = vsel %vm1530_vm2, %v1509_v25, %v2716_v59  ;;  %v1638_v28 = vsel %vm1629_vm5, %v1605_v41, %v2915_v43 }
 0x105   : > { %v2919_v22 = vpop.permute.xlu0 %2918  ;;  %v1575_v51 = vsel %vm1563_vm3, %v1542_v60, %v2796_v5  ;;  %v2926_v8 = vunpack.i.h.bf16 %v2924_v1  ;;  %v2925_v35 = vunpack.i.l.bf16 %v2924_v1  ;;  %v1607_v55 = vsel %vm1596_vm4, %v1574_v50, %v2910_v58 }
 0x106   : > { %3213 = vrot.lane.b32.xlu1 %v4024_v24, %s3274_s26  ;;  %v2921_v44 = vunpack.i.h.bf16 %v2919_v22  ;;  %v2920_v45 = vunpack.i.l.bf16 %v2919_v22  ;;  %v1608_v1 = vsel %vm1596_vm4, %v1575_v51, %v2911_v19  ;;  %v3250_v51 = vld [vmem:[%s3312_s17 + $0xa8] sm:$0xff] }
 0x107   : > { %3208 = vrot.lane.b32.xlu0 %v3925_v31, %s3274_s26  ;;  %v1573_v31 = vsel %vm1563_vm3, %v1540_v49, %v2791_v40  ;;  %v1671_v52 = vsel %vm1662_vm6, %v1638_v28, %v2925_v35  ;;  %v3251_v35 = vld [vmem:[%s3312_s17 + $0xb0] sm:$0xff] }
 0x108   : > { %v2934_v12 = vpop.permute.xlu1 %2933  ;;  %v1606_v32 = vsel %vm1596_vm4, %v1573_v31, %v2906_v6  ;;  %v1640_v5 = vsel %vm1629_vm5, %v1607_v55, %v2920_v45  ;;  %v1641_v37 = vsel %vm1629_vm5, %v1608_v1, %v2921_v44 }
 0x109   : > { %v2929_v18 = vpop.permute.xlu0 %2928  ;;  %v2936_v56 = vunpack.i.h.bf16 %v2934_v12  ;;  %v2935_v38 = vunpack.i.l.bf16 %v2934_v12  ;;  %v1639_v11 = vsel %vm1629_vm5, %v1606_v32, %v2916_v62  ;;  %v2726_v62 = vunpack.i.h.bf16 %v3677_v63 }
 0x10a   : > { %3223 = vrot.lane.b32.xlu1 %v3222_v30, %s3275_s29  ;;  %v1672_v36 = vsel %vm1662_vm6, %v1639_v11, %v2926_v8  ;;  %v2931_v17 = vunpack.i.h.bf16 %v2929_v18 }
 0x10b   : > { %3218 = vrot.lane.b32.xlu0 %v3927_v27, %s3275_s29  ;;  %v1704_v3 = vsel %vm1695_vm7, %v1671_v52, %v2935_v38  ;;  %v1705_v21 = vsel %vm1695_vm7, %v1672_v36, %v2936_v56  ;;  %v2930_v27 = vunpack.i.l.bf16 %v2929_v18  ;;  %v1513_v18 = vsel %vm1497_vm1, %v3251_v35, %v2646_v33 }
 0x10c   : > { %v2944_v23 = vpop.permute.xlu1 %2943  ;;  %v1674_v61 = vsel %vm1662_vm6, %v1641_v37, %v2931_v17  ;;  %v2736_v35 = vunpack.i.h.bf16 %v3683_v2 }
 0x10d   : > { %v2946_v15 = vunpack.i.h.bf16 %v2944_v23  ;;  %v2945_v9 = vunpack.i.l.bf16 %v2944_v23  ;;  %v2939_v54 = vpop.permute.xlu0 %2938  ;;  %v1673_v22 = vsel %vm1662_vm6, %v1640_v5, %v2930_v27 }
 0x10e   : > { %3233 = vrot.lane.b32.xlu1 %v3232_v46, %s3276_s30  ;;  %v2941_v30 = vunpack.i.h.bf16 %v2939_v54  ;;  %v2940_v10 = vunpack.i.l.bf16 %v2939_v54 }
 0x10f   : > { %v1737_v59 = vsel %vm1728_vm8, %v1704_v3, %v2945_v9  ;;  %v1738_v7 = vsel %vm1728_vm8, %v1705_v21, %v2946_v15  ;;  %3228 = vrot.lane.b32.xlu0 %v3985_v26, %s3276_s30 }
 0x110   : > { %v1765_v53 = vpack.c.bf16 %v1738_v7, %v1737_v59  ;;  %v2954_v25 = vpop.permute.xlu1 %2953  ;;  %v1706_v26 = vsel %vm1695_vm7, %v1673_v22, %v2940_v10  ;;  %v1707_v39 = vsel %vm1695_vm7, %v1674_v61, %v2941_v30 }
 0x111   : > { %v2949_v46 = vpop.permute.xlu0 %2948  ;;  %v2956_v43 = vunpack.i.h.bf16 %v2954_v25  ;;  %v2955_v12 = vunpack.i.l.bf16 %v2954_v25 }
 0x112   : > { %v2951_v47 = vunpack.i.h.bf16 %v2949_v46  ;;  %v2950_v40 = vunpack.i.l.bf16 %v2949_v46  ;;  %3243 = vrot.lane.b32.xlu1 %v3242_v29, %s3277_s4  ;;  %2558 = vmatprep.mubr.msk.bf16.mxu0 %vm1797_vm9, %v1765_v53  ;;  %v2645_v29 = vunpack.i.l.bf16 %v3599_v16  ;;  %v1546_v16 = vsel %vm1530_vm2, %v1513_v18, %v2726_v62 }
 0x113   : > { %3238 = vrot.lane.b32.xlu0 %v4024_v24, %s3277_s4  ;;  %v2725_v24 = vunpack.i.l.bf16 %v3677_v63  ;;  %v1579_v19 = vsel %vm1563_vm3, %v1546_v16, %v2956_v43  ;;  %v2735_v18 = vunpack.i.l.bf16 %v3683_v2  ;;  %v3253_v2 = vld [vmem:[%s3312_s17 + $0xc8] sm:$0xff] }
 0x114   : > { %v1739_v57 = vsel %vm1728_vm8, %v1706_v26, %v2950_v40  ;;  %v1740_v60 = vsel %vm1728_vm8, %v1707_v39, %v2951_v47  ;;  %v2964_v6 = vpop.permute.xlu1 %2963  ;;  %v1512_v8 = vsel %vm1497_vm1, %v3250_v51, %v2645_v29  ;;  %v2651_v51 = vunpack.i.h.bf16 %v3610_v14 }
 0x115   : > { %v1766_v42 = vpack.c.bf16 %v1740_v60, %v1739_v57  ;;  %v2959_v48 = vpop.permute.xlu0 %2958  ;;  %v2966_v20 = vunpack.i.h.bf16 %v2964_v6  ;;  %v2965_v31 = vunpack.i.l.bf16 %v2964_v6  ;;  %v1545_v38 = vsel %vm1530_vm2, %v1512_v8, %v2725_v24 }
 0x116   : > { %v2961_v41 = vunpack.i.h.bf16 %v2959_v48  ;;  %v2960_v32 = vunpack.i.l.bf16 %v2959_v48  ;;  %v1578_v63 = vsel %vm1563_vm3, %v1545_v38, %v2955_v12  ;;  %v2656_v12 = vunpack.i.h.bf16 %v3608_v13 }
 0x117   : > { %2559 = vmatmul.mubr.msk.bf16.gmra.mrb[8].mxu0 %vm1797_vm9, %v1766_v42  ;;  %v1611_v36 = vsel %vm1596_vm4, %v1578_v63, %v2965_v31  ;;  %v1612_v15 = vsel %vm1596_vm4, %v1579_v19, %v2966_v20  ;;  %v2650_v8 = vunpack.i.l.bf16 %v3610_v14  ;;  %v4476_v31 = vld [vmem:[#allocation8_spill] sm:$0xff]  ;;  %v4477_v63 = vld [vmem:[#allocation6_spill] sm:$0xff]  ;;  %v4478_v19 = vld [vmem:[#allocation7_spill] sm:$0xff] }
 0x118   : > { %v2974_v4 = vpop.permute.xlu1 %2973  ;;  %v1609_v21 = vsel %vm1596_vm4, %v3794_v34, %v2960_v32  ;;  %v1610_v17 = vsel %vm1596_vm4, %v3797_v0, %v2961_v41  ;;  %v2730_v38 = vunpack.i.l.bf16 %v4476_v31 }
 0x119   : > { %v2969_v49 = vpop.permute.xlu0 %2968  ;;  %v2976_v58 = vunpack.i.h.bf16 %v2974_v4  ;;  %v2975_v28 = vunpack.i.l.bf16 %v2974_v4 }
 0x11a   : > { %v2971_v11 = vunpack.i.h.bf16 %v2969_v49  ;;  %v2970_v44 = vunpack.i.l.bf16 %v2969_v49 }
 0x11b   : > { %v1644_v7 = vsel %vm1629_vm5, %v1611_v36, %v2975_v28  ;;  %v1645_v30 = vsel %vm1629_vm5, %v1612_v15, %v2976_v58  ;;  %v1517_v58 = vsel %vm1497_vm1, %v4478_v19, %v2656_v12 }
 0x11c   : > { %v2984_v50 = vpop.permute.xlu1 %2983  ;;  %v1642_v1 = vsel %vm1629_vm5, %v1609_v21, %v2970_v44  ;;  %v1643_v53 = vsel %vm1629_vm5, %v1610_v17, %v2971_v11  ;;  %v3252_v11 = vld [vmem:[%s3312_s17 + $0xc0] sm:$0xff] }
 0x11d   : > { %v2979_v56 = vpop.permute.xlu0 %2978  ;;  %v2986_v45 = vunpack.i.h.bf16 %v2984_v50  ;;  %v2985_v23 = vunpack.i.l.bf16 %v2984_v50  ;;  %v2655_v50 = vunpack.i.l.bf16 %v3608_v13  ;;  %v1514_v44 = vsel %vm1497_vm1, %v3252_v11, %v2650_v8  ;;  %v4479_v11 = vld [vmem:[#allocation2_spill] sm:$0xff] }
 0x11e   : > { %v2981_v9 = vunpack.i.h.bf16 %v2979_v56  ;;  %v2980_v54 = vunpack.i.l.bf16 %v2979_v56  ;;  %v2731_v56 = vunpack.i.h.bf16 %v4476_v31  ;;  %v1547_v15 = vsel %vm1530_vm2, %v1514_v44, %v2730_v38 }
 0x11f   : > { %v1677_v25 = vsel %vm1662_vm6, %v1644_v7, %v2985_v23  ;;  %v1678_v5 = vsel %vm1662_vm6, %v1645_v30, %v2986_v45  ;;  %v1516_v13 = vsel %vm1497_vm1, %v4477_v63, %v2655_v50  ;;  %v1515_v45 = vsel %vm1497_vm1, %v3253_v2, %v2651_v51 }
 0x120   : > { %v2994_v52 = vpop.permute.xlu1 %2993  ;;  %v1675_v37 = vsel %vm1662_vm6, %v1642_v1, %v2980_v54  ;;  %v1676_v0 = vsel %vm1662_vm6, %v1643_v53, %v2981_v9  ;;  %v1549_v23 = vsel %vm1530_vm2, %v1516_v13, %v2735_v18  ;;  %v1548_v9 = vsel %vm1530_vm2, %v1515_v45, %v2731_v56  ;;  %v4480_v45 = vld [vmem:[#allocation3_spill] sm:$0xff] }
 0x121   : > { %v2989_v3 = vpop.permute.xlu0 %2988  ;;  %v2996_v27 = vunpack.i.h.bf16 %v2994_v52  ;;  %v2995_v59 = vunpack.i.l.bf16 %v2994_v52  ;;  %v1550_v52 = vsel %vm1530_vm2, %v1517_v58, %v2736_v35  ;;  %v2666_v44 = vunpack.i.h.bf16 %v4479_v11 }
 0x122   : > { %v2991_v10 = vunpack.i.h.bf16 %v2989_v3  ;;  %v2990_v55 = vunpack.i.l.bf16 %v2989_v3  ;;  %v2665_v2 = vunpack.i.l.bf16 %v4479_v11 }
 0x123   : > { %v1710_v47 = vsel %vm1695_vm7, %v1677_v25, %v2995_v59  ;;  %v1711_v40 = vsel %vm1695_vm7, %v1678_v5, %v2996_v27 }
 0x124   : > { %v3004_v34 = vpop.permute.xlu1 %3003  ;;  %v1708_v57 = vsel %vm1695_vm7, %v1675_v37, %v2990_v55  ;;  %v1709_v60 = vsel %vm1695_vm7, %v1676_v0, %v2991_v10 }
 0x125   : > { %v3006_v46 = vunpack.i.h.bf16 %v3004_v34  ;;  %v3005_v22 = vunpack.i.l.bf16 %v3004_v34  ;;  %v2999_v61 = vpop.permute.xlu0 %2998 }
 0x126   : > { %v3001_v26 = vunpack.i.h.bf16 %v2999_v61  ;;  %v3000_v39 = vunpack.i.l.bf16 %v2999_v61 }
 0x127   : > { %v1743_v6 = vsel %vm1728_vm8, %v1710_v47, %v3005_v22  ;;  %v1744_v42 = vsel %vm1728_vm8, %v1711_v40, %v3006_v46 }
 0x128   : > { %v1768_v48 = vpack.c.bf16 %v1744_v42, %v1743_v6  ;;  %v1741_v4 = vsel %vm1728_vm8, %v1708_v57, %v3000_v39  ;;  %v1742_v33 = vsel %vm1728_vm8, %v1709_v60, %v3001_v26  ;;  %v3014_v29 = vpop.permute.xlu1 %3013 }
 0x129   : > { %v1767_v49 = vpack.c.bf16 %v1742_v33, %v1741_v4  ;;  %v3009_v62 = vpop.permute.xlu0 %3008  ;;  %v3016_v41 = vunpack.i.h.bf16 %v3014_v29  ;;  %v3015_v32 = vunpack.i.l.bf16 %v3014_v29 }
 0x12a   : > { %v3011_v28 = vunpack.i.h.bf16 %v3009_v62  ;;  %v3010_v14 = vunpack.i.l.bf16 %v3009_v62 }
 0x12b   : > { %2562 = vmatprep.mubr.msk.bf16.mxu0 %vm1797_vm9, %v1767_v49  ;;  %v1582_v17 = vsel %vm1563_vm3, %v1549_v23, %v3015_v32  ;;  %v1583_v27 = vsel %vm1563_vm3, %v1550_v52, %v3016_v41  ;;  %v2661_v23 = vunpack.i.h.bf16 %v4480_v45  ;;  %v2660_v52 = vunpack.i.l.bf16 %v4480_v45 }
 0x12c   : > { %2563 = vmatmul.mubr.msk.bf16.gmra.mrb[12].mxu0 %vm1797_vm9, %v1768_v48  ;;  %v3024_v24 = vpop.permute.xlu1 %3023  ;;  %v1580_v30 = vsel %vm1563_vm3, %v1547_v15, %v3010_v14  ;;  %v1581_v10 = vsel %vm1563_vm3, %v1548_v9, %v3011_v28 }
 0x12d   : > { %v3019_v43 = vpop.permute.xlu0 %3018  ;;  %v3026_v54 = vunpack.i.h.bf16 %v3024_v24  ;;  %v3025_v3 = vunpack.i.l.bf16 %v3024_v24 }
 0x12e   : > { %v3021_v59 = vunpack.i.h.bf16 %v3019_v43  ;;  %v3020_v7 = vunpack.i.l.bf16 %v3019_v43 }
 0x12f   : > { %v1615_v0 = vsel %vm1596_vm4, %v1582_v17, %v3025_v3  ;;  %v1616_v46 = vsel %vm1596_vm4, %v1583_v27, %v3026_v54  ;;  %v4482_v3 = vld [vmem:[#allocation10_spill] sm:$0xff] }
 0x130   : > { %v3034_v20 = vpop.permute.xlu1 %3033  ;;  %v1613_v40 = vsel %vm1596_vm4, %v1580_v30, %v3020_v7  ;;  %v1614_v26 = vsel %vm1596_vm4, %v1581_v10, %v3021_v59  ;;  %v2740_v17 = vunpack.i.l.bf16 %v4482_v3  ;;  %v3254_v30 = vld [vmem:[%s3312_s17 + $0x108] sm:$0xff] }
 0x131   : > { %v3029_v16 = vpop.permute.xlu0 %3028  ;;  %v3036_v55 = vunpack.i.h.bf16 %v3034_v20  ;;  %v3035_v1 = vunpack.i.l.bf16 %v3034_v20  ;;  %v1520_v10 = vsel %vm1497_vm1, %v3254_v30, %v2665_v2 }
 0x132   : > { %v3031_v53 = vunpack.i.h.bf16 %v3029_v16  ;;  %v3030_v25 = vunpack.i.l.bf16 %v3029_v16 }
 0x133   : > { %v1648_v60 = vsel %vm1629_vm5, %v1615_v0, %v3035_v1  ;;  %v1649_v6 = vsel %vm1629_vm5, %v1616_v46, %v3036_v55  ;;  %v3255_v55 = vld [vmem:[%s3312_s17 + $0x110] sm:$0xff] }
 0x134   : > { %v3044_v36 = vpop.permute.xlu1 %3043  ;;  %v1646_v4 = vsel %vm1629_vm5, %v1613_v40, %v3030_v25  ;;  %v1647_v33 = vsel %vm1629_vm5, %v1614_v26, %v3031_v53  ;;  %v1521_v1 = vsel %vm1497_vm1, %v3255_v55, %v2666_v44 }
 0x135   : > { %v3039_v21 = vpop.permute.xlu0 %3038  ;;  %v3046_v5 = vunpack.i.h.bf16 %v3044_v36  ;;  %v3045_v34 = vunpack.i.l.bf16 %v3044_v36  ;;  %v4481_v36 = vld [vmem:[#allocation9_spill] sm:$0xff] }
 0x136   : > { %v3041_v22 = vunpack.i.h.bf16 %v3039_v21  ;;  %v3040_v61 = vunpack.i.l.bf16 %v3039_v21  ;;  %v2746_v15 = vunpack.i.h.bf16 %v4481_v36  ;;  %v2745_v9 = vunpack.i.l.bf16 %v4481_v36 }
 0x137   : > { %v1681_v29 = vsel %vm1662_vm6, %v1648_v60, %v3045_v34  ;;  %v1682_v49 = vsel %vm1662_vm6, %v1649_v6, %v3046_v5  ;;  %v2741_v21 = vunpack.i.h.bf16 %v4482_v3  ;;  %v3256_v5 = vld [vmem:[%s3312_s17 + $0xf0] sm:$0xff] }
 0x138   : > { %v3054_v37 = vpop.permute.xlu1 %3053  ;;  %v1679_v24 = vsel %vm1662_vm6, %v1646_v4, %v3040_v61  ;;  %v1680_v43 = vsel %vm1662_vm6, %v1647_v33, %v3041_v22  ;;  %v1518_v34 = vsel %vm1497_vm1, %v3256_v5, %v2660_v52  ;;  %v1553_v46 = vsel %vm1530_vm2, %v1520_v10, %v2745_v9  ;;  %v4483_v5 = vld [vmem:[#allocation4_spill] sm:$0xff] }
 0x139   : > { %v3049_v47 = vpop.permute.xlu0 %3048  ;;  %v3056_v39 = vunpack.i.h.bf16 %v3054_v37  ;;  %v3055_v57 = vunpack.i.l.bf16 %v3054_v37  ;;  %v3257_v37 = vld [vmem:[%s3312_s17 + $0xf8] sm:$0xff]  ;;  %v1554_v22 = vsel %vm1530_vm2, %v1521_v1, %v2746_v15 }
 0x13a   : > { %v3051_v42 = vunpack.i.h.bf16 %v3049_v47  ;;  %v3050_v48 = vunpack.i.l.bf16 %v3049_v47  ;;  %v1519_v0 = vsel %vm1497_vm1, %v3257_v37, %v2661_v23  ;;  %v1551_v47 = vsel %vm1530_vm2, %v1518_v34, %v2740_v17 }
 0x13b   : > { %v1714_v8 = vsel %vm1695_vm7, %v1681_v29, %v3055_v57  ;;  %v1715_v35 = vsel %vm1695_vm7, %v1682_v49, %v3056_v39  ;;  %v1552_v40 = vsel %vm1530_vm2, %v1519_v0, %v2741_v21  ;;  %v2676_v34 = vunpack.i.h.bf16 %v4483_v5  ;;  %v4484_v0 = vld [vmem:[#allocation5_spill] sm:$0xff] }
 0x13c   : > { %v3064_v62 = vpop.permute.xlu1 %3063  ;;  %v1712_v38 = vsel %vm1695_vm7, %v1679_v24, %v3050_v48  ;;  %v1713_v16 = vsel %vm1695_vm7, %v1680_v43, %v3051_v42  ;;  %v2675_v37 = vunpack.i.l.bf16 %v4483_v5 }
 0x13d   : > { %v3066_v12 = vunpack.i.h.bf16 %v3064_v62  ;;  %v3065_v50 = vunpack.i.l.bf16 %v3064_v62  ;;  %v3059_v51 = vpop.permute.xlu0 %3058 }
 0x13e   : > { %v3061_v18 = vunpack.i.h.bf16 %v3059_v51  ;;  %v3060_v20 = vunpack.i.l.bf16 %v3059_v51 }
 0x13f   : > { %v1747_v31 = vsel %vm1728_vm8, %v1714_v8, %v3065_v50  ;;  %v1748_v56 = vsel %vm1728_vm8, %v1715_v35, %v3066_v12 }
 0x140   : > { %v1770_v41 = vpack.c.bf16 %v1748_v56, %v1747_v31  ;;  %v3074_v32 = vpop.permute.xlu1 %3073  ;;  %v1745_v63 = vsel %vm1728_vm8, %v1712_v38, %v3060_v20  ;;  %v1746_v13 = vsel %vm1728_vm8, %v1713_v16, %v3061_v18 }
 0x141   : > { %v3069_v19 = vpop.permute.xlu0 %3068  ;;  %v1769_v58 = vpack.c.bf16 %v1746_v13, %v1745_v63  ;;  %v3076_v59 = vunpack.i.h.bf16 %v3074_v32  ;;  %v3075_v7 = vunpack.i.l.bf16 %v3074_v32 }
 0x142   : > { %v3071_v53 = vunpack.i.h.bf16 %v3069_v19  ;;  %v3070_v25 = vunpack.i.l.bf16 %v3069_v19 }
 0x143   : > { %2566 = vmatprep.mubr.msk.bf16.mxu1 %vm1797_vm9, %v1769_v58  ;;  %v1586_v60 = vsel %vm1563_vm3, %v1553_v46, %v3075_v7  ;;  %v1587_v6 = vsel %vm1563_vm3, %v1554_v22, %v3076_v59  ;;  %v2671_v46 = vunpack.i.h.bf16 %v4484_v0  ;;  %v2670_v22 = vunpack.i.l.bf16 %v4484_v0 }
 0x144   : > { %2567 = vmatmul.mubr.msk.bf16.vlgmr.msra.gmra.mrb[0].mxu1 %vm1797_vm9, %v1770_v41  ;;  %v3084_v28 = vpop.permute.xlu1 %3083  ;;  %v1584_v4 = vsel %vm1563_vm3, %v1551_v47, %v3070_v25  ;;  %v1585_v33 = vsel %vm1563_vm3, %v1552_v40, %v3071_v53 }
 0x145   : > { %v3079_v14 = vpop.permute.xlu0 %3078  ;;  %v3086_v26 = vunpack.i.h.bf16 %v3084_v28  ;;  %v3085_v39 = vunpack.i.l.bf16 %v3084_v28 }
 0x146   : > { %v3081_v42 = vunpack.i.h.bf16 %v3079_v14  ;;  %v3080_v48 = vunpack.i.l.bf16 %v3079_v14 }
 0x147   : > { %v1619_v51 = vsel %vm1596_vm4, %v1586_v60, %v3085_v39  ;;  %v1620_v8 = vsel %vm1596_vm4, %v1587_v6, %v3086_v26  ;;  %v4486_v39 = vld [vmem:[#allocation12_spill] sm:$0xff] }
 0x148   : > { %v3094_v54 = vpop.permute.xlu1 %3093  ;;  %v1617_v31 = vsel %vm1596_vm4, %v1584_v4, %v3080_v48  ;;  %v1618_v56 = vsel %vm1596_vm4, %v1585_v33, %v3081_v42  ;;  %v2750_v60 = vunpack.i.l.bf16 %v4486_v39  ;;  %v3258_v4 = vld [vmem:[%s3312_s17 + $0x138] sm:$0xff] }
 0x149   : > { %v3089_v27 = vpop.permute.xlu0 %3088  ;;  %v3096_v29 = vunpack.i.h.bf16 %v3094_v54  ;;  %v3095_v49 = vunpack.i.l.bf16 %v3094_v54  ;;  %v1524_v33 = vsel %vm1497_vm1, %v3258_v4, %v2675_v37 }
 0x14a   : > { %v3091_v62 = vunpack.i.h.bf16 %v3089_v27  ;;  %v3090_v24 = vunpack.i.l.bf16 %v3089_v27 }
 0x14b   : > { %v1652_v41 = vsel %vm1629_vm5, %v1619_v51, %v3095_v49  ;;  %v1653_v32 = vsel %vm1629_vm5, %v1620_v8, %v3096_v29  ;;  %v3259_v29 = vld [vmem:[%s3312_s17 + $0x140] sm:$0xff] }
 0x14c   : > { %v3104_v61 = vpop.permute.xlu1 %3103  ;;  %v1650_v19 = vsel %vm1629_vm5, %v1617_v31, %v3090_v24  ;;  %v1651_v58 = vsel %vm1629_vm5, %v1618_v56, %v3091_v62  ;;  %v1525_v49 = vsel %vm1497_vm1, %v3259_v29, %v2676_v34 }
 0x14d   : > { %v3099_v57 = vpop.permute.xlu0 %3098  ;;  %v3106_v43 = vunpack.i.h.bf16 %v3104_v61  ;;  %v3105_v12 = vunpack.i.l.bf16 %v3104_v61  ;;  %v4485_v61 = vld [vmem:[#allocation11_spill] sm:$0xff] }
 0x14e   : > { %v3101_v35 = vunpack.i.h.bf16 %v3099_v57  ;;  %v3100_v18 = vunpack.i.l.bf16 %v3099_v57  ;;  %v2756_v47 = vunpack.i.h.bf16 %v4485_v61  ;;  %v2755_v40 = vunpack.i.l.bf16 %v4485_v61 }
 0x14f   : > { %v1685_v28 = vsel %vm1662_vm6, %v1652_v41, %v3105_v12  ;;  %v1686_v14 = vsel %vm1662_vm6, %v1653_v32, %v3106_v43  ;;  %v2751_v57 = vunpack.i.h.bf16 %v4486_v39  ;;  %v3260_v43 = vld [vmem:[%s3312_s17 + $0x120] sm:$0xff] }
 0x150   : > { %v3114_v50 = vpop.permute.xlu1 %3113  ;;  %v1683_v44 = vsel %vm1662_vm6, %v1650_v19, %v3100_v18  ;;  %v1684_v2 = vsel %vm1662_vm6, %v1651_v58, %v3101_v35  ;;  %v1522_v12 = vsel %vm1497_vm1, %v3260_v43, %v2670_v22  ;;  %v1557_v8 = vsel %vm1530_vm2, %v1524_v33, %v2755_v40 }
 0x151   : > { %v3109_v20 = vpop.permute.xlu0 %3108  ;;  %v3116_v38 = vunpack.i.h.bf16 %v3114_v50  ;;  %v3115_v16 = vunpack.i.l.bf16 %v3114_v50  ;;  %v3261_v50 = vld [vmem:[%s3312_s17 + $0x128] sm:$0xff]  ;;  %v1558_v35 = vsel %vm1530_vm2, %v1525_v49, %v2756_v47 }
 0x152   : > { %v3111_v63 = vunpack.i.h.bf16 %v3109_v20  ;;  %v3110_v13 = vunpack.i.l.bf16 %v3109_v20  ;;  %v1523_v51 = vsel %vm1497_vm1, %v3261_v50, %v2671_v46  ;;  %v1555_v20 = vsel %vm1530_vm2, %v1522_v12, %v2750_v60 }
 0x153   : > { %v1718_v36 = vsel %vm1695_vm7, %v1685_v28, %v3115_v16  ;;  %v1719_v15 = vsel %vm1695_vm7, %v1686_v14, %v3116_v38  ;;  %v1556_v31 = vsel %vm1530_vm2, %v1523_v51, %v2751_v57 }
 0x154   : > { %v3124_v11 = vpop.permute.xlu1 %3123  ;;  %v1716_v3 = vsel %vm1695_vm7, %v1683_v44, %v3110_v13  ;;  %v1717_v21 = vsel %vm1695_vm7, %v1684_v2, %v3111_v63 }
 0x155   : > { %v3126_v45 = vunpack.i.h.bf16 %v3124_v11  ;;  %v3125_v23 = vunpack.i.l.bf16 %v3124_v11  ;;  %v3119_v52 = vpop.permute.xlu0 %3118 }
 0x156   : > { %v3121_v9 = vunpack.i.h.bf16 %v3119_v52  ;;  %v3120_v54 = vunpack.i.l.bf16 %v3119_v52 }
 0x157   : > { %v1751_v17 = vsel %vm1728_vm8, %v1718_v36, %v3125_v23  ;;  %v1752_v27 = vsel %vm1728_vm8, %v1719_v15, %v3126_v45 }
 0x158   : > { %v1772_v59 = vpack.c.bf16 %v1752_v27, %v1751_v17  ;;  %v1749_v7 = vsel %vm1728_vm8, %v1716_v3, %v3120_v54  ;;  %v1750_v30 = vsel %vm1728_vm8, %v1717_v21, %v3121_v9  ;;  %v3134_v10 = vpop.permute.xlu1 %3133 }
 0x159   : > { %v1771_v55 = vpack.c.bf16 %v1750_v30, %v1749_v7  ;;  %v3129_v1 = vpop.permute.xlu0 %3128  ;;  %v3136_v42 = vunpack.i.h.bf16 %v3134_v10  ;;  %v3135_v48 = vunpack.i.l.bf16 %v3134_v10 }
 0x15a   : > { %v3131_v62 = vunpack.i.h.bf16 %v3129_v1  ;;  %v3130_v24 = vunpack.i.l.bf16 %v3129_v1 }
 0x15b   : > { %2570 = vmatprep.mubr.msk.bf16.mxu1 %vm1797_vm9, %v1771_v55  ;;  %v1590_v41 = vsel %vm1563_vm3, %v1557_v8, %v3135_v48  ;;  %v1591_v32 = vsel %vm1563_vm3, %v1558_v35, %v3136_v42 }
 0x15c   : > { %2571 = vmatmul.mubr.msk.bf16.gmra.mrb[4].mxu1 %vm1797_vm9, %v1772_v59  ;;  %v3144_v53 = vpop.permute.xlu1 %3143  ;;  %v1588_v19 = vsel %vm1563_vm3, %v1555_v20, %v3130_v24  ;;  %v1589_v58 = vsel %vm1563_vm3, %v1556_v31, %v3131_v62 }
 0x15d   : > { %v3139_v25 = vpop.permute.xlu0 %3138  ;;  %v3146_v56 = vunpack.i.h.bf16 %v3144_v53  ;;  %v3145_v38 = vunpack.i.l.bf16 %v3144_v53 }
 0x15e   : > { %v3141_v63 = vunpack.i.h.bf16 %v3139_v25  ;;  %v3140_v13 = vunpack.i.l.bf16 %v3139_v25 }
 0x15f   : > { %v1623_v52 = vsel %vm1596_vm4, %v1590_v41, %v3145_v38  ;;  %v1624_v36 = vsel %vm1596_vm4, %v1591_v32, %v3146_v56  ;;  %v4487_v38 = vld [vmem:[#allocation13_spill] sm:$0xff]  ;;  %v4488_v41 = vld [vmem:[#allocation14_spill] sm:$0xff] }
 0x160   : > { %v3154_v26 = vpop.permute.xlu1 %3153  ;;  %v1621_v3 = vsel %vm1596_vm4, %v1588_v19, %v3140_v13  ;;  %v1622_v21 = vsel %vm1596_vm4, %v1589_v58, %v3141_v63  ;;  %v4489_v19 = vld [vmem:[#allocation15_spill] sm:$0xff] }
 0x161   : > { %v3149_v6 = vpop.permute.xlu0 %3148  ;;  %v3156_v28 = vunpack.i.h.bf16 %v3154_v26  ;;  %v3155_v14 = vunpack.i.l.bf16 %v3154_v26 }
 0x162   : > { %v3151_v11 = vunpack.i.h.bf16 %v3149_v6  ;;  %v3150_v44 = vunpack.i.l.bf16 %v3149_v6 }
 0x163   : > { %v1656_v59 = vsel %vm1629_vm5, %v1623_v52, %v3155_v14  ;;  %v1657_v7 = vsel %vm1629_vm5, %v1624_v36, %v3156_v28  ;;  %v4490_v28 = vld [vmem:[#allocation16_spill] sm:$0xff] }
 0x164   : > { %v3164_v18 = vpop.permute.xlu1 %3163  ;;  %v1654_v55 = vsel %vm1629_vm5, %v1621_v3, %v3150_v44  ;;  %v1655_v1 = vsel %vm1629_vm5, %v1622_v21, %v3151_v11 }
 0x165   : > { %v3159_v16 = vpop.permute.xlu0 %3158  ;;  %v3166_v2 = vunpack.i.h.bf16 %v3164_v18  ;;  %v3165_v45 = vunpack.i.l.bf16 %v3164_v18 }
 0x166   : > { %v3161_v15 = vunpack.i.h.bf16 %v3159_v16  ;;  %v3160_v9 = vunpack.i.l.bf16 %v3159_v16 }
 0x167   : > { %v1689_v53 = vsel %vm1662_vm6, %v1656_v59, %v3165_v45  ;;  %v1690_v25 = vsel %vm1662_vm6, %v1657_v7, %v3166_v2 }
 0x168   : > { %v3174_v23 = vpop.permute.xlu1 %3173  ;;  %v1687_v34 = vsel %vm1662_vm6, %v1654_v55, %v3160_v9  ;;  %v1688_v37 = vsel %vm1662_vm6, %v1655_v1, %v3161_v15 }
 0x169   : > { %v3169_v54 = vpop.permute.xlu0 %3168  ;;  %v3176_v17 = vunpack.i.h.bf16 %v3174_v23  ;;  %v3175_v27 = vunpack.i.l.bf16 %v3174_v23 }
 0x16a   : > { %v3171_v30 = vunpack.i.h.bf16 %v3169_v54  ;;  %v3170_v10 = vunpack.i.l.bf16 %v3169_v54 }
 0x16b   : > { %v1722_v61 = vsel %vm1695_vm7, %v1689_v53, %v3175_v27  ;;  %v1723_v47 = vsel %vm1695_vm7, %v1690_v25, %v3176_v17 }
 0x16c   : > { %v3184_v5 = vpop.permute.xlu1 %3183  ;;  %v1720_v39 = vsel %vm1695_vm7, %v1687_v34, %v3170_v10  ;;  %v1721_v57 = vsel %vm1695_vm7, %v1688_v37, %v3171_v30 }
 0x16d   : > { %v3186_v0 = vunpack.i.h.bf16 %v3184_v5  ;;  %v3185_v46 = vunpack.i.l.bf16 %v3184_v5  ;;  %v3179_v22 = vpop.permute.xlu0 %3178 }
 0x16e   : > { %v3181_v40 = vunpack.i.h.bf16 %v3179_v22  ;;  %v3180_v26 = vunpack.i.l.bf16 %v3179_v22 }
 0x16f   : > { %v1755_v60 = vsel %vm1728_vm8, %v1722_v61, %v3185_v46  ;;  %v1756_v6 = vsel %vm1728_vm8, %v1723_v47, %v3186_v0 }
 0x170   : > { %v1774_v42 = vpack.c.bf16 %v1756_v6, %v1755_v60  ;;  %v1753_v48 = vsel %vm1728_vm8, %v1720_v39, %v3180_v26  ;;  %v1754_v4 = vsel %vm1728_vm8, %v1721_v57, %v3181_v40  ;;  %v3194_v33 = vpop.permute.xlu1 %3193 }
 0x171   : > { %v1773_v29 = vpack.c.bf16 %v1754_v4, %v1753_v48  ;;  %v3189_v49 = vpop.permute.xlu0 %3188  ;;  %v3196_v50 = vunpack.i.h.bf16 %v3194_v33  ;;  %v3195_v51 = vunpack.i.l.bf16 %v3194_v33 }
 0x172   : > { %v3191_v8 = vunpack.i.h.bf16 %v3189_v49  ;;  %v3190_v35 = vunpack.i.l.bf16 %v3189_v49 }
 0x173   : > { %2574 = vmatprep.mubr.msk.bf16.mxu1 %vm1797_vm9, %v1773_v29  ;;  %v1594_v16 = vsel %vm1563_vm3, %v4487_v38, %v3195_v51  ;;  %v1595_v32 = vsel %vm1563_vm3, %v4488_v41, %v3196_v50 }
 0x174   : > { %2575 = vmatmul.mubr.msk.bf16.gmra.mrb[8].mxu1 %vm1797_vm9, %v1774_v42  ;;  %v3204_v62 = vpop.permute.xlu1 %3203  ;;  %v1592_v58 = vsel %vm1563_vm3, %v4489_v19, %v3190_v35  ;;  %v1593_v14 = vsel %vm1563_vm3, %v4490_v28, %v3191_v8 }
 0x175   : > { %v3199_v24 = vpop.permute.xlu0 %3198  ;;  %v3206_v20 = vunpack.i.h.bf16 %v3204_v62  ;;  %v3205_v31 = vunpack.i.l.bf16 %v3204_v62 }
 0x176   : > { %v3201_v63 = vunpack.i.h.bf16 %v3199_v24  ;;  %v3200_v13 = vunpack.i.l.bf16 %v3199_v24 }
 0x177   : > { %v1627_v15 = vsel %vm1596_vm4, %v1594_v16, %v3205_v31  ;;  %v1628_v9 = vsel %vm1596_vm4, %v1595_v32, %v3206_v20 }
 0x178   : > { %v3214_v43 = vpop.permute.xlu1 %3213  ;;  %v1625_v17 = vsel %vm1596_vm4, %v1592_v58, %v3200_v13  ;;  %v1626_v27 = vsel %vm1596_vm4, %v1593_v14, %v3201_v63 }
 0x179   : > { %v3209_v12 = vpop.permute.xlu0 %3208  ;;  %v3216_v11 = vunpack.i.h.bf16 %v3214_v43  ;;  %v3215_v44 = vunpack.i.l.bf16 %v3214_v43 }
 0x17a   : > { %v3211_v2 = vunpack.i.h.bf16 %v3209_v12  ;;  %v3210_v45 = vunpack.i.l.bf16 %v3209_v12 }
 0x17b   : > { %v1660_v30 = vsel %vm1629_vm5, %v1627_v15, %v3215_v44  ;;  %v1661_v10 = vsel %vm1629_vm5, %v1628_v9, %v3216_v11 }
 0x17c   : > { %v3224_v18 = vpop.permute.xlu1 %3223  ;;  %v1658_v53 = vsel %vm1629_vm5, %v1625_v17, %v3210_v45  ;;  %v1659_v25 = vsel %vm1629_vm5, %v1626_v27, %v3211_v2 }
 0x17d   : > { %v3219_v56 = vpop.permute.xlu0 %3218  ;;  %v3226_v23 = vunpack.i.h.bf16 %v3224_v18  ;;  %v3225_v52 = vunpack.i.l.bf16 %v3224_v18 }
 0x17e   : > { %v3221_v54 = vunpack.i.h.bf16 %v3219_v56  ;;  %v3220_v3 = vunpack.i.l.bf16 %v3219_v56 }
 0x17f   : > { %v1693_v5 = vsel %vm1662_vm6, %v1660_v30, %v3225_v52  ;;  %v1694_v34 = vsel %vm1662_vm6, %v1661_v10, %v3226_v23 }
 0x180   : > { %v3234_v36 = vpop.permute.xlu1 %3233  ;;  %v1691_v0 = vsel %vm1662_vm6, %v1658_v53, %v3220_v3  ;;  %v1692_v46 = vsel %vm1662_vm6, %v1659_v25, %v3221_v54 }
 0x181   : > { %v3229_v21 = vpop.permute.xlu0 %3228  ;;  %v3236_v59 = vunpack.i.h.bf16 %v3234_v36  ;;  %v3235_v7 = vunpack.i.l.bf16 %v3234_v36 }
 0x182   : > { %v3231_v55 = vunpack.i.h.bf16 %v3229_v21  ;;  %v3230_v1 = vunpack.i.l.bf16 %v3229_v21 }
 0x183   : > { %v1726_v40 = vsel %vm1695_vm7, %v1693_v5, %v3235_v7  ;;  %v1727_v26 = vsel %vm1695_vm7, %v1694_v34, %v3236_v59 }
 0x184   : > { %v3244_v37 = vpop.permute.xlu1 %3243  ;;  %v1724_v60 = vsel %vm1695_vm7, %v1691_v0, %v3230_v1  ;;  %v1725_v6 = vsel %vm1695_vm7, %v1692_v46, %v3231_v55 }
 0x185   : > { %v3246_v22 = vunpack.i.h.bf16 %v3244_v37  ;;  %v3245_v61 = vunpack.i.l.bf16 %v3244_v37  ;;  %v3239_v47 = vpop.permute.xlu0 %3238 }
 0x186   : > { %v3241_v39 = vunpack.i.h.bf16 %v3239_v47  ;;  %v3240_v57 = vunpack.i.l.bf16 %v3239_v47 }
 0x187   : > { %v1759_v42 = vsel %vm1728_vm8, %v1726_v40, %v3245_v61  ;;  %v1760_v48 = vsel %vm1728_vm8, %v1727_v26, %v3246_v22 }
 0x188   : > { %v1776_v4 = vpack.c.bf16 %v1760_v48, %v1759_v42  ;;  %v1757_v33 = vsel %vm1728_vm8, %v1724_v60, %v3240_v57  ;;  %v1758_v29 = vsel %vm1728_vm8, %v1725_v6, %v3241_v39 }
 0x189   : > { %v1775_v49 = vpack.c.bf16 %v1758_v29, %v1757_v33 }
 0x18b   : > { %2578 = vmatprep.mubr.msk.bf16.mxu1 %vm1797_vm9, %v1775_v49 }
 0x18c   : > { %2579 = vmatmul.mubr.msk.bf16.gmra.mrb[12].mxu1 %vm1797_vm9, %v1776_v4 }
 0x1c2   : > { %v2552_v62 = vpop.f32.mrb[0].mxu0 }
 0x1c3   : > { %2013 = vst.msk [vmem:[%s4309_s8 + $0x10] sm:$0xff] %vm1530_vm2, %v2552_v62  ;;  %v1884_v24 = vpop.f32.mrb[1].mxu0  ;;  %v2116_v51 = vmul.f32 %v2552_v62, %v2552_v62  ;;  %v2046_v31 = vsel %vm1530_vm2, %v2552_v62, 0.0 }
 0x1c4   : > { %2011 = vst.msk [vmem:[%s4309_s8] sm:$0xff] %vm1530_vm2, %v1884_v24  ;;  %v2114_v43 = vmul.f32 %v1884_v24, %v1884_v24  ;;  %v2553_v12 = vpop.f32.mrb[2].mxu0  ;;  %v2043_v8 = vsel %vm1530_vm2, %v1884_v24, 0.0 }
 0x1c5   : > { %2014 = vst.msk [vmem:[%s4309_s8 + $0x18] sm:$0xff] %vm1530_vm2, %v2553_v12  ;;  %v1887_v50 = vpop.f32.mrb[3].mxu0  ;;  %v2117_v38 = vmul.f32 %v2553_v12, %v2553_v12  ;;  %v2149_v63 = vsel %vm1530_vm2, %v2116_v51, 0.0  ;;  %v2048_v13 = vsel %vm1530_vm2, %v2553_v12, 0.0 }
 0x1c6   : > { %2012 = vst.msk [vmem:[%s4309_s8 + $0x8] sm:$0xff] %vm1530_vm2, %v1887_v50  ;;  %v2044_v35 = vsel %vm1530_vm2, %v1887_v50, 0.0  ;;  %v2115_v18 = vmul.f32 %v1887_v50, %v1887_v50  ;;  %v2146_v56 = vsel %vm1530_vm2, %v2114_v43, 0.0 }
 0x1c7   : > { %v2045_v20 = vadd.f32 %v2044_v35, %v2043_v8  ;;  %v2151_v28 = vsel %vm1530_vm2, %v2117_v38, 0.0 }
 0x1c8   : > { %v2147_v16 = vsel %vm1530_vm2, %v2115_v18, 0.0 }
 0x1c9   : > { %v2047_v41 = vadd.f32 %v2046_v31, %v2045_v20  ;;  %v2148_v32 = vadd.f32 %v2147_v16, %v2146_v56 }
 0x1cb   : > { %v2150_v19 = vadd.f32 %v2149_v63, %v2148_v32  ;;  %v2049_v58 = vadd.f32 %v2048_v13, %v2047_v41 }
 0x1cd   : > { %v2152_v14 = vadd.f32 %v2151_v28, %v2150_v19 }
 0x1d6   : > { %v2556_v11 = vpop.f32.mrb[4].mxu0 }
 0x1d7   : > { %2017 = vst.msk [vmem:[%s4309_s8 + $0x30] sm:$0xff] %vm1530_vm2, %v2556_v11  ;;  %v1900_v44 = vpop.f32.mrb[5].mxu0  ;;  %v2120_v15 = vmul.f32 %v2556_v11, %v2556_v11  ;;  %v2054_v27 = vsel %vm1530_vm2, %v2556_v11, 0.0 }
 0x1d8   : > { %2015 = vst.msk [vmem:[%s4309_s8 + $0x20] sm:$0xff] %vm1530_vm2, %v1900_v44  ;;  %v2050_v2 = vsel %vm1530_vm2, %v1900_v44, 0.0  ;;  %v2118_v45 = vmul.f32 %v1900_v44, %v1900_v44  ;;  %v2557_v23 = vpop.f32.mrb[6].mxu0 }
 0x1d9   : > { %v2051_v52 = vadd.f32 %v2050_v2, %v2049_v58  ;;  %2018 = vst.msk [vmem:[%s4309_s8 + $0x38] sm:$0xff] %vm1530_vm2, %v2557_v23  ;;  %v1903_v36 = vpop.f32.mrb[7].mxu0  ;;  %v2121_v59 = vmul.f32 %v2557_v23, %v2557_v23  ;;  %v2157_v55 = vsel %vm1530_vm2, %v2120_v15, 0.0  ;;  %v2056_v1 = vsel %vm1530_vm2, %v2557_v23, 0.0 }
 0x1da   : > { %v2153_v9 = vsel %vm1530_vm2, %v2118_v45, 0.0  ;;  %2016 = vst.msk [vmem:[%s4309_s8 + $0x28] sm:$0xff] %vm1530_vm2, %v1903_v36  ;;  %v2052_v54 = vsel %vm1530_vm2, %v1903_v36, 0.0  ;;  %v2119_v3 = vmul.f32 %v1903_v36, %v1903_v36 }
 0x1db   : > { %v2154_v21 = vadd.f32 %v2153_v9, %v2152_v14  ;;  %v2053_v17 = vadd.f32 %v2052_v54, %v2051_v52  ;;  %v2159_v5 = vsel %vm1530_vm2, %v2121_v59, 0.0 }
 0x1dc   : > { %v2155_v7 = vsel %vm1530_vm2, %v2119_v3, 0.0 }
 0x1dd   : > { %v2055_v30 = vadd.f32 %v2054_v27, %v2053_v17  ;;  %v2156_v10 = vadd.f32 %v2155_v7, %v2154_v21 }
 0x1df   : > { %v2158_v53 = vadd.f32 %v2157_v55, %v2156_v10  ;;  %v2057_v25 = vadd.f32 %v2056_v1, %v2055_v30 }
 0x1e1   : > { %v2160_v34 = vadd.f32 %v2159_v5, %v2158_v53 }
 0x1ea   : > { %v2560_v37 = vpop.f32.mrb[8].mxu0 }
 0x1eb   : > { %2021 = vst.msk [vmem:[%s4309_s8 + $0x50] sm:$0xff] %vm1530_vm2, %v2560_v37  ;;  %v1916_v0 = vpop.f32.mrb[9].mxu0  ;;  %v2124_v26 = vmul.f32 %v2560_v37, %v2560_v37  ;;  %v2062_v48 = vsel %vm1530_vm2, %v2560_v37, 0.0 }
 0x1ec   : > { %2019 = vst.msk [vmem:[%s4309_s8 + $0x40] sm:$0xff] %vm1530_vm2, %v1916_v0  ;;  %v2058_v46 = vsel %vm1530_vm2, %v1916_v0, 0.0  ;;  %v2122_v22 = vmul.f32 %v1916_v0, %v1916_v0  ;;  %v2561_v61 = vpop.f32.mrb[10].mxu0 }
 0x1ed   : > { %v2059_v47 = vadd.f32 %v2058_v46, %v2057_v25  ;;  %2022 = vst.msk [vmem:[%s4309_s8 + $0x58] sm:$0xff] %vm1530_vm2, %v2561_v61  ;;  %v1919_v40 = vpop.f32.mrb[11].mxu0  ;;  %v2125_v4 = vmul.f32 %v2561_v61, %v2561_v61  ;;  %v2165_v62 = vsel %vm1530_vm2, %v2124_v26, 0.0  ;;  %v2064_v24 = vsel %vm1530_vm2, %v2561_v61, 0.0 }
 0x1ee   : > { %v2161_v39 = vsel %vm1530_vm2, %v2122_v22, 0.0  ;;  %2020 = vst.msk [vmem:[%s4309_s8 + $0x48] sm:$0xff] %vm1530_vm2, %v1919_v40  ;;  %v2060_v57 = vsel %vm1530_vm2, %v1919_v40, 0.0  ;;  %v2123_v60 = vmul.f32 %v1919_v40, %v1919_v40 }
 0x1ef   : > { %v2162_v6 = vadd.f32 %v2161_v39, %v2160_v34  ;;  %v2061_v42 = vadd.f32 %v2060_v57, %v2059_v47  ;;  %v2167_v50 = vsel %vm1530_vm2, %v2125_v4, 0.0 }
 0x1f0   : > { %v2163_v33 = vsel %vm1530_vm2, %v2123_v60, 0.0 }
 0x1f1   : > { %v2063_v29 = vadd.f32 %v2062_v48, %v2061_v42  ;;  %v2164_v49 = vadd.f32 %v2163_v33, %v2162_v6 }
 0x1f3   : > { %v2166_v43 = vadd.f32 %v2165_v62, %v2164_v49  ;;  %v2065_v12 = vadd.f32 %v2064_v24, %v2063_v29 }
 0x1f5   : > { %v2168_v51 = vadd.f32 %v2167_v50, %v2166_v43 }
 0x1ff   : > { %v2564_v8 = vpop.f32.mrb[12].mxu0 }
 0x200   : > { %2025 = vst.msk [vmem:[%s4309_s8 + $0x70] sm:$0xff] %vm1530_vm2, %v2564_v8  ;;  %v1932_v35 = vpop.f32.mrb[13].mxu0  ;;  %v2128_v16 = vmul.f32 %v2564_v8, %v2564_v8  ;;  %v2070_v58 = vsel %vm1530_vm2, %v2564_v8, 0.0 }
 0x201   : > { %2023 = vst.msk [vmem:[%s4309_s8 + $0x60] sm:$0xff] %vm1530_vm2, %v1932_v35  ;;  %v2066_v18 = vsel %vm1530_vm2, %v1932_v35, 0.0  ;;  %v2126_v20 = vmul.f32 %v1932_v35, %v1932_v35  ;;  %v2565_v31 = vpop.f32.mrb[14].mxu0 }
 0x202   : > { %v2067_v56 = vadd.f32 %v2066_v18, %v2065_v12  ;;  %2026 = vst.msk [vmem:[%s4309_s8 + $0x78] sm:$0xff] %vm1530_vm2, %v2565_v31  ;;  %v1935_v38 = vpop.f32.mrb[15].mxu0  ;;  %v2129_v28 = vmul.f32 %v2565_v31, %v2565_v31  ;;  %v2173_v2 = vsel %vm1530_vm2, %v2128_v16, 0.0  ;;  %v2072_v45 = vsel %vm1530_vm2, %v2565_v31, 0.0 }
 0x203   : > { %v2169_v41 = vsel %vm1530_vm2, %v2126_v20, 0.0  ;;  %2024 = vst.msk [vmem:[%s4309_s8 + $0x68] sm:$0xff] %vm1530_vm2, %v1935_v38  ;;  %v2068_v32 = vsel %vm1530_vm2, %v1935_v38, 0.0  ;;  %v2127_v63 = vmul.f32 %v1935_v38, %v1935_v38 }
 0x204   : > { %v2170_v13 = vadd.f32 %v2169_v41, %v2168_v51  ;;  %v2069_v19 = vadd.f32 %v2068_v32, %v2067_v56  ;;  %v2175_v36 = vsel %vm1530_vm2, %v2129_v28, 0.0 }
 0x205   : > { %v2171_v14 = vsel %vm1530_vm2, %v2127_v63, 0.0 }
 0x206   : > { %v2071_v11 = vadd.f32 %v2070_v58, %v2069_v19  ;;  %v2172_v44 = vadd.f32 %v2171_v14, %v2170_v13 }
 0x208   : > { %v2174_v23 = vadd.f32 %v2173_v2, %v2172_v44  ;;  %v2073_v52 = vadd.f32 %v2072_v45, %v2071_v11 }
 0x20a   : > { %v2176_v15 = vadd.f32 %v2175_v36, %v2174_v23 }
 0x217   : > { %v2568_v9 = vpop.f32.mrb[0].mxu1 }
 0x218   : > { %2029 = vst.msk [vmem:[%s4309_s8 + $0x90] sm:$0xff] %vm1530_vm2, %v2568_v9  ;;  %v1948_v54 = vpop.f32.mrb[1].mxu1  ;;  %v2132_v7 = vmul.f32 %v2568_v9, %v2568_v9  ;;  %v2078_v25 = vsel %vm1530_vm2, %v2568_v9, 0.0 }
 0x219   : > { %2027 = vst.msk [vmem:[%s4309_s8 + $0x80] sm:$0xff] %vm1530_vm2, %v1948_v54  ;;  %v2074_v3 = vsel %vm1530_vm2, %v1948_v54, 0.0  ;;  %v2130_v21 = vmul.f32 %v1948_v54, %v1948_v54  ;;  %v2569_v17 = vpop.f32.mrb[2].mxu1 }
 0x21a   : > { %v2075_v27 = vadd.f32 %v2074_v3, %v2073_v52  ;;  %2030 = vst.msk [vmem:[%s4309_s8 + $0x98] sm:$0xff] %vm1530_vm2, %v2569_v17  ;;  %v1951_v59 = vpop.f32.mrb[3].mxu1  ;;  %v2133_v5 = vmul.f32 %v2569_v17, %v2569_v17  ;;  %v2181_v46 = vsel %vm1530_vm2, %v2132_v7, 0.0  ;;  %v2080_v22 = vsel %vm1530_vm2, %v2569_v17, 0.0 }
 0x21b   : > { %v2177_v30 = vsel %vm1530_vm2, %v2130_v21, 0.0  ;;  %2028 = vst.msk [vmem:[%s4309_s8 + $0x88] sm:$0xff] %vm1530_vm2, %v1951_v59  ;;  %v2076_v10 = vsel %vm1530_vm2, %v1951_v59, 0.0  ;;  %v2131_v55 = vmul.f32 %v1951_v59, %v1951_v59 }
 0x21c   : > { %v2178_v1 = vadd.f32 %v2177_v30, %v2176_v15  ;;  %v2077_v53 = vadd.f32 %v2076_v10, %v2075_v27  ;;  %v2183_v40 = vsel %vm1530_vm2, %v2133_v5, 0.0 }
 0x21d   : > { %v2179_v34 = vsel %vm1530_vm2, %v2131_v55, 0.0 }
 0x21e   : > { %v2079_v37 = vadd.f32 %v2078_v25, %v2077_v53  ;;  %v2180_v0 = vadd.f32 %v2179_v34, %v2178_v1 }
 0x220   : > { %v2182_v61 = vadd.f32 %v2181_v46, %v2180_v0  ;;  %v2081_v47 = vadd.f32 %v2080_v22, %v2079_v37 }
 0x222   : > { %v2184_v26 = vadd.f32 %v2183_v40, %v2182_v61 }
 0x22f   : > { %v2572_v39 = vpop.f32.mrb[4].mxu1 }
 0x230   : > { %2033 = vst.msk [vmem:[%s4309_s8 + $0xb0] sm:$0xff] %vm1530_vm2, %v2572_v39  ;;  %v1964_v57 = vpop.f32.mrb[5].mxu1  ;;  %v2136_v33 = vmul.f32 %v2572_v39, %v2572_v39  ;;  %v2086_v12 = vsel %vm1530_vm2, %v2572_v39, 0.0 }
 0x231   : > { %2031 = vst.msk [vmem:[%s4309_s8 + $0xa0] sm:$0xff] %vm1530_vm2, %v1964_v57  ;;  %v2082_v60 = vsel %vm1530_vm2, %v1964_v57, 0.0  ;;  %v2134_v6 = vmul.f32 %v1964_v57, %v1964_v57  ;;  %v2573_v42 = vpop.f32.mrb[6].mxu1 }
 0x232   : > { %v2083_v48 = vadd.f32 %v2082_v60, %v2081_v47  ;;  %2034 = vst.msk [vmem:[%s4309_s8 + $0xb8] sm:$0xff] %vm1530_vm2, %v2573_v42  ;;  %v1967_v4 = vpop.f32.mrb[7].mxu1  ;;  %v2137_v50 = vmul.f32 %v2573_v42, %v2573_v42  ;;  %v2189_v18 = vsel %vm1530_vm2, %v2136_v33, 0.0  ;;  %v2088_v20 = vsel %vm1530_vm2, %v2573_v42, 0.0 }
 0x233   : > { %v2185_v29 = vsel %vm1530_vm2, %v2134_v6, 0.0  ;;  %2032 = vst.msk [vmem:[%s4309_s8 + $0xa8] sm:$0xff] %vm1530_vm2, %v1967_v4  ;;  %v2084_v49 = vsel %vm1530_vm2, %v1967_v4, 0.0  ;;  %v2135_v62 = vmul.f32 %v1967_v4, %v1967_v4 }
 0x234   : > { %v2186_v24 = vadd.f32 %v2185_v29, %v2184_v26  ;;  %v2085_v43 = vadd.f32 %v2084_v49, %v2083_v48  ;;  %v2191_v38 = vsel %vm1530_vm2, %v2137_v50, 0.0 }
 0x235   : > { %v2187_v51 = vsel %vm1530_vm2, %v2135_v62, 0.0 }
 0x236   : > { %v2087_v8 = vadd.f32 %v2086_v12, %v2085_v43  ;;  %v2188_v35 = vadd.f32 %v2187_v51, %v2186_v24 }
 0x238   : > { %v2190_v31 = vadd.f32 %v2189_v18, %v2188_v35  ;;  %v2089_v56 = vadd.f32 %v2088_v20, %v2087_v8 }
 0x23a   : > { %v2192_v16 = vadd.f32 %v2191_v38, %v2190_v31 }
 0x247   : > { %v2576_v41 = vpop.f32.mrb[8].mxu1 }
 0x248   : > { %2037 = vst.msk [vmem:[%s4309_s8 + $0xd0] sm:$0xff] %vm1530_vm2, %v2576_v41  ;;  %v1980_v32 = vpop.f32.mrb[9].mxu1  ;;  %v2140_v14 = vmul.f32 %v2576_v41, %v2576_v41  ;;  %v2094_v52 = vsel %vm1530_vm2, %v2576_v41, 0.0 }
 0x249   : > { %2035 = vst.msk [vmem:[%s4309_s8 + $0xc0] sm:$0xff] %vm1530_vm2, %v1980_v32  ;;  %v2090_v63 = vsel %vm1530_vm2, %v1980_v32, 0.0  ;;  %v2138_v13 = vmul.f32 %v1980_v32, %v1980_v32  ;;  %v2577_v19 = vpop.f32.mrb[10].mxu1 }
 0x24a   : > { %v2091_v58 = vadd.f32 %v2090_v63, %v2089_v56  ;;  %2038 = vst.msk [vmem:[%s4309_s8 + $0xd8] sm:$0xff] %vm1530_vm2, %v2577_v19  ;;  %v1983_v28 = vpop.f32.mrb[11].mxu1  ;;  %v2141_v36 = vmul.f32 %v2577_v19, %v2577_v19  ;;  %v2197_v3 = vsel %vm1530_vm2, %v2140_v14, 0.0  ;;  %v2096_v21 = vsel %vm1530_vm2, %v2577_v19, 0.0 }
 0x24b   : > { %v2193_v11 = vsel %vm1530_vm2, %v2138_v13, 0.0  ;;  %2036 = vst.msk [vmem:[%s4309_s8 + $0xc8] sm:$0xff] %vm1530_vm2, %v1983_v28  ;;  %v2092_v44 = vsel %vm1530_vm2, %v1983_v28, 0.0  ;;  %v2139_v2 = vmul.f32 %v1983_v28, %v1983_v28 }
 0x24c   : > { %v2194_v45 = vadd.f32 %v2193_v11, %v2192_v16  ;;  %v2093_v23 = vadd.f32 %v2092_v44, %v2091_v58  ;;  %v2199_v59 = vsel %vm1530_vm2, %v2141_v36, 0.0 }
 0x24d   : > { %v2195_v15 = vsel %vm1530_vm2, %v2139_v2, 0.0 }
 0x24e   : > { %v2095_v9 = vadd.f32 %v2094_v52, %v2093_v23  ;;  %v2196_v54 = vadd.f32 %v2195_v15, %v2194_v45 }
 0x250   : > { %v2198_v17 = vadd.f32 %v2197_v3, %v2196_v54  ;;  %v2097_v27 = vadd.f32 %v2096_v21, %v2095_v9 }
 0x252   : > { %v2200_v7 = vadd.f32 %v2199_v59, %v2198_v17 }
 0x25f   : > { %v2580_v30 = vpop.f32.mrb[12].mxu1 }
 0x260   : > { %2041 = vst.msk [vmem:[%s4309_s8 + $0xf0] sm:$0xff] %vm1530_vm2, %v2580_v30  ;;  %v1996_v10 = vpop.f32.mrb[13].mxu1  ;;  %v2144_v34 = vmul.f32 %v2580_v30, %v2580_v30  ;;  %v2102_v47 = vsel %vm1530_vm2, %v2580_v30, 0.0 }
 0x261   : > { %2039 = vst.msk [vmem:[%s4309_s8 + $0xe0] sm:$0xff] %vm1530_vm2, %v1996_v10  ;;  %v2098_v55 = vsel %vm1530_vm2, %v1996_v10, 0.0  ;;  %v2142_v1 = vmul.f32 %v1996_v10, %v1996_v10  ;;  %v2581_v53 = vpop.f32.mrb[14].mxu1 }
 0x262   : > { %v2099_v25 = vadd.f32 %v2098_v55, %v2097_v27  ;;  %2042 = vst.msk [vmem:[%s4309_s8 + $0xf8] sm:$0xff] %vm1530_vm2, %v2581_v53  ;;  %v1999_v5 = vpop.f32.mrb[15].mxu1  ;;  %v2145_v40 = vmul.f32 %v2581_v53, %v2581_v53  ;;  %v2205_v60 = vsel %vm1530_vm2, %v2144_v34, 0.0  ;;  %v2104_v6 = vsel %vm1530_vm2, %v2581_v53, 0.0 }
 0x263   : > { %v2201_v37 = vsel %vm1530_vm2, %v2142_v1, 0.0  ;;  %2040 = vst.msk [vmem:[%s4309_s8 + $0xe8] sm:$0xff] %vm1530_vm2, %v1999_v5  ;;  %v2100_v0 = vsel %vm1530_vm2, %v1999_v5, 0.0  ;;  %v2143_v46 = vmul.f32 %v1999_v5, %v1999_v5 }
 0x264   : > { %v2202_v22 = vadd.f32 %v2201_v37, %v2200_v7  ;;  %v2101_v61 = vadd.f32 %v2100_v0, %v2099_v25  ;;  %v2207_v4 = vsel %vm1530_vm2, %v2145_v40, 0.0 }
 0x265   : > { %v2203_v26 = vsel %vm1530_vm2, %v2143_v46, 0.0 }
 0x266   : > { %v2103_v39 = vadd.f32 %v2102_v47, %v2101_v61  ;;  %v2204_v57 = vadd.f32 %v2203_v26, %v2202_v22 }
 0x268   : > { %v2105_v42 = vadd.f32 %v2104_v6, %v2103_v39  ;;  %v2206_v48 = vadd.f32 %v2205_v60, %v2204_v57 }
 0x26a   : > { %v2106_v33 = vrot.slane %v2105_v42, 4  ;;  %v2208_v29 = vadd.f32 %v2207_v4, %v2206_v48 }
 0x26c   : > { %v2107_v49 = vadd.f32 %v2106_v33, %v2105_v42  ;;  %v2209_v62 = vrot.slane %v2208_v29, 4 }
 0x26e   : > { %v2108_v24 = vrot.slane %v2107_v49, 2  ;;  %v2210_v43 = vadd.f32 %v2209_v62, %v2208_v29 }
 0x270   : > { %v2109_v12 = vadd.f32 %v2108_v24, %v2107_v49  ;;  %v2211_v50 = vrot.slane %v2210_v43, 2 }
 0x272   : > { %v2110_v51 = vrot.slane %v2109_v12, 1  ;;  %v2212_v8 = vadd.f32 %v2211_v50, %v2210_v43 }
 0x274   : > { %v2111_v35 = vadd.f32 %v2110_v51, %v2109_v12  ;;  %v2213_v18 = vrot.slane %v2212_v8, 1 }
 0x276   : > { %2113 = vst.msk [vmem:[%s181_s14] sm:$0x1] %vm2112_vm10, %v2111_v35  ;;  %v2214_v20 = vadd.f32 %v2213_v18, %v2212_v8 }
 0x278   : > { %2215 = vst.msk [vmem:[%s181_s14 + $0x1] sm:$0x1] %vm2112_vm10, %v2214_v20 }
 0x279 PF: > { %s14_s12 = sadd.s32 1, %s3268_s12  }
 0x27a   : > { %p11_p4 = scmp.ge.s32.totalorder %s14_s12, 4  }
 0x27c   :  { %13 = sbr.rel (!%p11_p4) target bundleno = 1 (0x1), region = 72 }

</bundles_post_ra>
